<compile_context>
chip_gen: v5e
topology: v5e:2x2
jax: 0.10.0
libtpu: 0.0.40
codegen_flags: <defaults>
</compile_context>

<pallas_src>
import math
import functools

import jax
import jax.numpy as jnp
from jax import lax
from jax.experimental import pallas as pl
from jax.experimental.pallas import tpu as pltpu


def _round_up(x, m):
    return ((x + m - 1) // m) * m


def _refine_kernel(scale_ref, nvalid_ref, r_ref, g_ref, c_ref, csq_ref,
                   idx_ref, part_ref):
    # scale_ref  : SMEM (1,) f32   -- scale = -exp(10 * frame_entropy_scale)
    # nvalid_ref : SMEM (1,) i32   -- true (unpadded) number of frames B
    # r_ref      : VMEM (B_t, N*D) -- residuals for this B tile
    # g_ref      : VMEM (B_t, N*K) -- Gumbel noise for this B tile
    # c_ref      : VMEM (N, K, D)  -- all centers (resident)
    # csq_ref    : VMEM (N, K)     -- ||centers||^2 (resident)
    # idx_ref    : VMEM (B_t, N) i32  -- sampled indexes
    # part_ref   : VMEM (N+2, K) f32  -- rows 0..N-1: sum_b probs (masked)
    #                                    row N     : frame-entropy sum (broadcast)
    #                                    row N+1   : sum probs*sumsq (broadcast)
    N, K, D = c_ref.shape
    B_t = r_ref.shape[0]

    scale = scale_ref[0]
    nvalid = nvalid_ref[0]

    # validity mask for padded rows
    row0 = pl.program_id(0) * B_t
    rid = lax.broadcasted_iota(jnp.int32, (B_t, 1), 0) + row0
    mask = (rid < nvalid).astype(jnp.float32)                     # (B_t, 1)

    c_all = c_ref[...]                                            # (N, K, D)
    csq_all = csq_ref[...]                                        # (N, K)

    lane_n = lax.broadcasted_iota(jnp.int32, (B_t, N), 1)
    k_iota = lax.broadcasted_iota(jnp.int32, (B_t, K), 1)

    idx_acc = jnp.zeros((B_t, N), jnp.int32)
    ent_acc = jnp.zeros((1, 1), jnp.float32)
    ss_acc = jnp.zeros((1, 1), jnp.float32)

    for n in range(N):                                            # N is small & static
        r_n = r_ref[:, n * D:(n + 1) * D]                         # (B_t, D)
        c_n = c_all[n]                                            # (K, D)
        csq_n = csq_all[n:n + 1, :]                               # (1, K)

        # ||r + c_k||^2 = ||r||^2 + 2 r.c_k + ||c_k||^2  (cross term on the MXU)
        r_sq = jnp.sum(r_n * r_n, axis=-1, keepdims=True)         # (B_t, 1)
        cross = lax.dot_general(
            r_n, c_n, (((1,), (1,)), ((), ())),
            preferred_element_type=jnp.float32)                   # (B_t, K)
        sumsq = jnp.maximum(r_sq + 2.0 * cross + csq_n, 0.0)      # clamp cancellation

        # scaled softmax / log-softmax over the codebook axis
        scaled = sumsq * scale
        m = jnp.max(scaled, axis=-1, keepdims=True)
        z = scaled - m
        ez = jnp.exp(z)
        denom = jnp.sum(ez, axis=-1, keepdims=True)
        probs = ez * pl.reciprocal(denom, approx=True)
        logp = z - jnp.log(denom)

        # Gumbel-max categorical sample.  argmax(logp + g) == argmax(z + g)
        # because logp differs from z by a per-row constant.
        g_n = g_ref[:, n * K:(n + 1) * K]                         # (B_t, K)
        score = z + g_n
        mx = jnp.max(score, axis=-1, keepdims=True)
        idx_n = jnp.min(jnp.where(score >= mx, k_iota, K),
                        axis=-1, keepdims=True)                   # (B_t, 1) i32
        idx_acc = jnp.where(lane_n == n, idx_n, idx_acc)

        # masked partial reductions
        pm = probs * mask                                         # (B_t, K)
        part_ref[n:n + 1, :] = jnp.sum(pm, axis=0, keepdims=True)
        ent_acc = ent_acc - jnp.sum(logp * pm, axis=(0, 1), keepdims=True)
        ss_acc = ss_acc + jnp.sum(sumsq * pm, axis=(0, 1), keepdims=True)

    idx_ref[...] = idx_acc
    part_ref[N:N + 1, :] = jnp.broadcast_to(ent_acc, (1, K))
    part_ref[N + 1:N + 2, :] = jnp.broadcast_to(ss_acc, (1, K))


def _pallas_refine(scale, nvalid, r2, g2, centers, csq, *, B_tile):
    """scale (1,) f32, nvalid (1,) i32, r2 (B_pad, N*D) f32, g2 (B_pad, N*K) f32,
    centers (N, K, D) f32, csq (N, K) f32  ->  (idx (B_pad, N) i32,
    partial (num_tiles, N+2, K) f32)."""
    B_pad, ND = r2.shape
    N, K, D = centers.shape
    assert ND == N * D and B_pad % B_tile == 0
    num_tiles = B_pad // B_tile

    return pl.pallas_call(
        _refine_kernel,
        out_shape=(
            jax.ShapeDtypeStruct((B_pad, N), jnp.int32),
            jax.ShapeDtypeStruct((num_tiles, N + 2, K), jnp.float32),
        ),
        grid=(num_tiles,),
        in_specs=[
            pl.BlockSpec(memory_space=pltpu.MemorySpace.SMEM),        # scale
            pl.BlockSpec(memory_space=pltpu.MemorySpace.SMEM),        # nvalid
            pl.BlockSpec((B_tile, N * D), lambda b: (b, 0)),          # residuals
            pl.BlockSpec((B_tile, N * K), lambda b: (b, 0)),          # gumbel noise
            pl.BlockSpec((N, K, D), lambda b: (0, 0, 0)),             # centers (resident)
            pl.BlockSpec((N, K), lambda b: (0, 0)),                   # center sq norms
        ],
        out_specs=(
            pl.BlockSpec((B_tile, N), lambda b: (b, 0)),
            pl.BlockSpec((None, N + 2, K), lambda b: (b, 0, 0)),
        ),
        compiler_params=pltpu.CompilerParams(
            dimension_semantics=("parallel",),                        # B tiles independent
        ),
    )(scale, nvalid, r2, g2, centers, csq)


def refine_indexes_stochastic(x_flat, indexes, centers, frame_entropy_scale, key):
    """One iteration of stochastic index refinement (mirrors the PyTorch method)."""
    B, D = x_flat.shape
    N, K, _ = centers.shape
    x_flat = x_flat.astype(jnp.float32)
    centers_f32 = centers.astype(jnp.float32)

    # cur[b, n, :] = centers[n, indexes[b, n], :]
    cur = centers_f32[jnp.arange(N)[None, :], indexes]              # (B, N, D)
    x_err = cur.sum(axis=1) - x_flat                                # (B, D)
    # modified_errs[b, n, k] = (x_err[b] - cur[b, n]) + centers[n, k]
    r = x_err[:, None, :] - cur                                     # (B, N, D)
    r2 = r.reshape(B, N * D)                                        # free, contiguous

    # Tile B: multiple of 8 sublanes, capped so VMEM stays small on all generations.
    B_tile = min(512, _round_up(B, 8))
    B_pad = _round_up(B, B_tile)
    if B_pad > B:
        r2 = jnp.pad(r2, ((0, B_pad - B), (0, 0)))

    # Gumbel noise for categorical sampling (per (b, n, k)), drawn at padded size.
    g2 = jax.random.gumbel(key, (B_pad, N * K), dtype=jnp.float32)

    csq = jnp.sum(centers_f32 * centers_f32, axis=-1)               # (N, K)
    scale = (-jnp.exp(10.0 * frame_entropy_scale)).astype(jnp.float32).reshape(1)
    nvalid = jnp.full((1,), B, dtype=jnp.int32)

    idx_pad, partial = _pallas_refine(scale, nvalid, r2, g2, centers_f32, csq,
                                      B_tile=B_tile)

    new_indexes = idx_pad[:B]                                       # (B, N)
    probs_sum = partial[:, :N, :].sum(axis=0)                       # (N, K)
    ent_sum = partial[:, N, 0].sum()
    ss_sum = partial[:, N + 1, 0].sum()

    avg_frame_entropy = ent_sum / (B * N)
    expected_sumsq = ss_sum / N
    avg_probs = probs_sum / B                                       # (N, K)
    class_entropy = -(avg_probs * jnp.log(avg_probs + 1e-20)).sum(axis=1).mean()
    entropy_loss = math.log(K) - class_entropy
    reconstruction_loss = expected_sumsq / (x_flat ** 2).sum()
    return new_indexes, entropy_loss, avg_frame_entropy, reconstruction_loss


@functools.partial(jax.jit, static_argnames=("num_iters",))
def multi_kmeans_forward(x, centers, frame_entropy_scale, key, num_iters=4):
    """Equivalent of MultiKmeansQuantizer.forward.
    Returns (indexes, entropy_loss, frame_entropy, reconstruction_loss)."""
    N, K, dim = centers.shape
    assert x.shape[-1] == dim
    x_flat = x.reshape(-1, dim)
    B = x_flat.shape[0]

    key, sub = jax.random.split(key)
    # torch.randint(codebook_size - 1, ...) -> values in [0, codebook_size - 2]
    indexes = jax.random.randint(sub, (B, N), 0, K - 1)

    entropy_loss = frame_entropy = reconstruction_loss = None
    for _ in range(num_iters):
        key, sub = jax.random.split(key)
        indexes, entropy_loss, frame_entropy, reconstruction_loss = (
            refine_indexes_stochastic(x_flat, indexes, centers, frame_entropy_scale, sub)
        )

    indexes = indexes.reshape(*x.shape[:-1], N)
    return indexes, entropy_loss, frame_entropy, reconstruction_loss


if __name__ == "__main__":
    # Module hyper-parameters (small, consistent with (*, dim) inputs).
    dim = 32
    codebook_size = 16
    num_codebooks = 4

    root = jax.random.PRNGKey(0)
    k_centers, k_x, k_fwd = jax.random.split(root, 3)

    # Deterministic parameter init (matches __init__ shapes).
    centers = (dim ** -0.5) * jax.random.normal(
        k_centers, (num_codebooks, codebook_size, dim), dtype=jnp.float32
    )
    frame_entropy_scale = jnp.zeros((1,), dtype=jnp.float32)

    # Example input x of shape (batch, seq, dim) = (2, 8, 32) -> B = 16 frames.
    x = jax.random.normal(k_x, (2, 8, dim), dtype=jnp.float32)

    indexes, entropy_loss, frame_entropy, reconstruction_loss = multi_kmeans_forward(
        x, centers, frame_entropy_scale, k_fwd, num_iters=4
    )
    jax.block_until_ready((indexes, entropy_loss, frame_entropy, reconstruction_loss))

    assert indexes.shape == (2, 8, num_codebooks)
    assert int(indexes.min()) >= 0 and int(indexes.max()) < codebook_size
    for v in (entropy_loss, frame_entropy, reconstruction_loss):
        assert jnp.isfinite(v).all()

    print("KERNEL_OK")
</pallas_src>

<mosaic_0001>
module attributes {stable_mosaic.version = 11 : i64} {
  func.func @_refine_kernel(%arg0: i32, %arg1: memref<1xf32, #tpu.memory_space<smem>>, %arg2: memref<1xi32, #tpu.memory_space<smem>>, %arg3: memref<16x128xf32, #tpu.memory_space<vmem>>, %arg4: memref<16x64xf32, #tpu.memory_space<vmem>>, %arg5: memref<4x16x32xf32, #tpu.memory_space<vmem>>, %arg6: memref<4x16xf32, #tpu.memory_space<vmem>>, %arg7: memref<16x4xi32, #tpu.memory_space<vmem>>, %arg8: memref<1x6x16xf32, #tpu.memory_space<vmem>>) attributes {dimension_semantics = [#tpu.dimension_semantics<parallel>], iteration_bounds = array<i64: 1>, scalar_prefetch = 0 : i64, scratch_operands = 0 : i64, tpu.core_type = #tpu.core_type<tc>, window_params = [{transform_indices = @transform_0, window_bounds = array<i64: 1>}, {transform_indices = @transform_1, window_bounds = array<i64: 1>}, {transform_indices = @transform_2, window_bounds = array<i64: 16, 128>}, {transform_indices = @transform_3, window_bounds = array<i64: 16, 64>}, {pipeline_mode = #tpu.pipeline_mode<synchronous>, transform_indices = @transform_4, window_bounds = array<i64: 4, 16, 32>}, {pipeline_mode = #tpu.pipeline_mode<synchronous>, transform_indices = @transform_5, window_bounds = array<i64: 4, 16>}, {transform_indices = @transform_6, window_bounds = array<i64: 16, 4>}, {transform_indices = @transform_7, window_bounds = array<i64: 1, 6, 16>}]} {
    %c0 = arith.constant 0 : index
    %0 = memref.load %arg1[%c0] : memref<1xf32, #tpu.memory_space<smem>>
    %c0_0 = arith.constant 0 : index
    %1 = memref.load %arg2[%c0_0] : memref<1xi32, #tpu.memory_space<smem>>
    %c16_i32 = arith.constant 16 : i32
    %2 = arith.muli %arg0, %c16_i32 : i32
    %3 = tpu.iota {dimensions = array<i32: 0>} : vector<16x1xi32>
    %4 = vector.broadcast %2 : i32 to vector<16x1xi32>
    %5 = arith.addi %3, %4 : vector<16x1xi32>
    %6 = vector.broadcast %1 : i32 to vector<16x1xi32>
    %7 = arith.cmpi slt, %5, %6 : vector<16x1xi32>
    %8 = arith.extui %7 : vector<16x1xi1> to vector<16x1xi32>
    %9 = arith.sitofp %8 : vector<16x1xi32> to vector<16x1xf32>
    %c0_1 = arith.constant 0 : index
    %c0_2 = arith.constant 0 : index
    %c0_3 = arith.constant 0 : index
    %10 = vector.load %arg5[%c0_1, %c0_2, %c0_3] : memref<4x16x32xf32, #tpu.memory_space<vmem>>, vector<4x16x32xf32>
    %c0_4 = arith.constant 0 : index
    %c0_5 = arith.constant 0 : index
    %11 = vector.load %arg6[%c0_4, %c0_5] : memref<4x16xf32, #tpu.memory_space<vmem>>, vector<4x16xf32>
    %12 = tpu.iota {dimensions = array<i32: 1>} : vector<16x4xi32>
    %13 = tpu.iota {dimensions = array<i32: 1>} : vector<16x16xi32>
    %c0_i32 = arith.constant 0 : i32
    %14 = vector.broadcast %c0_i32 : i32 to vector<16x4xi32>
    %cst = arith.constant 0.000000e+00 : f32
    %15 = vector.broadcast %cst : f32 to vector<1x1xf32>
    %cst_6 = arith.constant 0.000000e+00 : f32
    %16 = vector.broadcast %cst_6 : f32 to vector<1x1xf32>
    %c0_7 = arith.constant 0 : index
    %c0_8 = arith.constant 0 : index
    %17 = vector.load %arg3[%c0_7, %c0_8] : memref<16x128xf32, #tpu.memory_space<vmem>>, vector<16x32xf32>
    %18 = vector.extract_strided_slice %10 {offsets = [0, 0, 0], sizes = [1, 16, 32], strides = [1, 1, 1]} : vector<4x16x32xf32> to vector<1x16x32xf32>
    %19 = vector.shape_cast %18 : vector<1x16x32xf32> to vector<16x32xf32>
    %20 = vector.extract_strided_slice %11 {offsets = [0, 0], sizes = [1, 16], strides = [1, 1]} : vector<4x16xf32> to vector<1x16xf32>
    %21 = arith.mulf %17, %17 : vector<16x32xf32>
    %cst_9 = arith.constant dense<0.000000e+00> : vector<16xf32>
    %22 = vector.multi_reduction <add>, %21, %cst_9 [1] : vector<16x32xf32> to vector<16xf32>
    %23 = vector.shape_cast %22 : vector<16xf32> to vector<16x1xf32>
    %cst_10 = arith.constant dense<0.000000e+00> : vector<16x16xf32>
    %24 = tpu.matmul %17, %19, %cst_10 {dimension_numbers = #tpu.dot_dimension_numbers<[1], [1], [0], [0], [0, 0, 1, 0], [], []>} : vector<16x32xf32>, vector<16x32xf32>, vector<16x16xf32> -> vector<16x16xf32>
    %cst_11 = arith.constant 2.000000e+00 : f32
    %25 = vector.broadcast %cst_11 : f32 to vector<16x16xf32>
    %26 = arith.mulf %25, %24 : vector<16x16xf32>
    %27 = vector.broadcast %23 : vector<16x1xf32> to vector<16x16xf32>
    %28 = arith.addf %27, %26 : vector<16x16xf32>
    %29 = vector.broadcast %20 : vector<1x16xf32> to vector<16x16xf32>
    %30 = arith.addf %28, %29 : vector<16x16xf32>
    %cst_12 = arith.constant 0.000000e+00 : f32
    %31 = vector.broadcast %cst_12 : f32 to vector<16x16xf32>
    %32 = arith.maximumf %30, %31 : vector<16x16xf32>
    %33 = vector.broadcast %0 : f32 to vector<16x16xf32>
    %34 = arith.mulf %32, %33 : vector<16x16xf32>
    %cst_13 = arith.constant dense<0xFF800000> : vector<16xf32>
    %35 = vector.multi_reduction <maximumf>, %34, %cst_13 [1] : vector<16x16xf32> to vector<16xf32>
    %36 = vector.shape_cast %35 : vector<16xf32> to vector<16x1xf32>
    %37 = vector.broadcast %36 : vector<16x1xf32> to vector<16x16xf32>
    %38 = arith.subf %34, %37 : vector<16x16xf32>
    %39 = math.exp %38 : vector<16x16xf32>
    %cst_14 = arith.constant dense<0.000000e+00> : vector<16xf32>
    %40 = vector.multi_reduction <add>, %39, %cst_14 [1] : vector<16x16xf32> to vector<16xf32>
    %41 = vector.shape_cast %40 : vector<16xf32> to vector<16x1xf32>
    %42 = tpu.reciprocal %41 {approx = true} : vector<16x1xf32> -> vector<16x1xf32>
    %43 = vector.broadcast %42 : vector<16x1xf32> to vector<16x16xf32>
    %44 = arith.mulf %39, %43 : vector<16x16xf32>
    %45 = math.log %41 : vector<16x1xf32>
    %46 = vector.broadcast %45 : vector<16x1xf32> to vector<16x16xf32>
    %47 = arith.subf %38, %46 : vector<16x16xf32>
    %c0_15 = arith.constant 0 : index
    %c0_16 = arith.constant 0 : index
    %48 = vector.load %arg4[%c0_15, %c0_16] : memref<16x64xf32, #tpu.memory_space<vmem>>, vector<16x16xf32>
    %49 = arith.addf %38, %48 : vector<16x16xf32>
    %cst_17 = arith.constant dense<0xFF800000> : vector<16xf32>
    %50 = vector.multi_reduction <maximumf>, %49, %cst_17 [1] : vector<16x16xf32> to vector<16xf32>
    %51 = vector.shape_cast %50 : vector<16xf32> to vector<16x1xf32>
    %52 = vector.broadcast %51 : vector<16x1xf32> to vector<16x16xf32>
    %53 = arith.cmpf oge, %49, %52 : vector<16x16xf32>
    %c16_i32_18 = arith.constant 16 : i32
    %54 = vector.broadcast %c16_i32_18 : i32 to vector<16x16xi32>
    %55 = arith.select %53, %13, %54 : vector<16x16xi1>, vector<16x16xi32>
    %cst_19 = arith.constant dense<2147483647> : vector<16xi32>
    %56 = vector.multi_reduction <minsi>, %55, %cst_19 [1] : vector<16x16xi32> to vector<16xi32>
    %57 = vector.shape_cast %56 : vector<16xi32> to vector<16x1xi32>
    %c0_i32_20 = arith.constant 0 : i32
    %58 = vector.broadcast %c0_i32_20 : i32 to vector<16x4xi32>
    %59 = arith.cmpi eq, %12, %58 : vector<16x4xi32>
    %60 = vector.shape_cast %57 : vector<16x1xi32> to vector<16x1xi32>
    %61 = vector.broadcast %60 : vector<16x1xi32> to vector<16x4xi32>
    %62 = arith.select %59, %61, %14 : vector<16x4xi1>, vector<16x4xi32>
    %63 = vector.broadcast %9 : vector<16x1xf32> to vector<16x16xf32>
    %64 = arith.mulf %44, %63 : vector<16x16xf32>
    %cst_21 = arith.constant dense<0.000000e+00> : vector<16xf32>
    %65 = vector.multi_reduction <add>, %64, %cst_21 [0] : vector<16x16xf32> to vector<16xf32>
    %66 = vector.shape_cast %65 : vector<16xf32> to vector<1x16xf32>
    %c0_22 = arith.constant 0 : index
    %c0_23 = arith.constant 0 : index
    %c0_24 = arith.constant 0 : index
    %67 = vector.load %arg8[%c0_22, %c0_23, %c0_24] : memref<1x6x16xf32, #tpu.memory_space<vmem>>, vector<1x1x16xf32>
    %68 = vector.shape_cast %67 : vector<1x1x16xf32> to vector<1x16xf32>
    %69 = vector.shape_cast %66 : vector<1x16xf32> to vector<1x1x16xf32>
    tpu.vector_store %arg8[%c0_22, %c0_23, %c0_24], %69 {strides = array<i32>} : memref<1x6x16xf32, #tpu.memory_space<vmem>>, vector<1x1x16xf32>,
    %70 = arith.mulf %47, %64 : vector<16x16xf32>
    %71 = vector.shape_cast %70 : vector<16x16xf32> to vector<1x16x16xf32>
    %cst_25 = arith.constant dense<0.000000e+00> : vector<1xf32>
    %72 = vector.multi_reduction <add>, %71, %cst_25 [1, 2] : vector<1x16x16xf32> to vector<1xf32>
    %73 = vector.shape_cast %72 : vector<1xf32> to vector<1x1x1xf32>
    %74 = vector.extract %73[0, 0, 0] : f32 from vector<1x1x1xf32>
    %75 = vector.broadcast %74 : f32 to vector<1x1xf32>
    %76 = arith.subf %15, %75 : vector<1x1xf32>
    %77 = arith.mulf %32, %64 : vector<16x16xf32>
    %78 = vector.shape_cast %77 : vector<16x16xf32> to vector<1x16x16xf32>
    %cst_26 = arith.constant dense<0.000000e+00> : vector<1xf32>
    %79 = vector.multi_reduction <add>, %78, %cst_26 [1, 2] : vector<1x16x16xf32> to vector<1xf32>
    %80 = vector.shape_cast %79 : vector<1xf32> to vector<1x1x1xf32>
    %81 = vector.extract %80[0, 0, 0] : f32 from vector<1x1x1xf32>
    %82 = vector.broadcast %81 : f32 to vector<1x1xf32>
    %83 = arith.addf %16, %82 : vector<1x1xf32>
    %c0_27 = arith.constant 0 : index
    %c32 = arith.constant 32 : index
    %84 = vector.load %arg3[%c0_27, %c32] : memref<16x128xf32, #tpu.memory_space<vmem>>, vector<16x32xf32>
    %85 = vector.extract_strided_slice %10 {offsets = [1, 0, 0], sizes = [1, 16, 32], strides = [1, 1, 1]} : vector<4x16x32xf32> to vector<1x16x32xf32>
    %86 = vector.shape_cast %85 : vector<1x16x32xf32> to vector<16x32xf32>
    %87 = vector.extract_strided_slice %11 {offsets = [1, 0], sizes = [1, 16], strides = [1, 1]} : vector<4x16xf32> to vector<1x16xf32>
    %88 = arith.mulf %84, %84 : vector<16x32xf32>
    %cst_28 = arith.constant dense<0.000000e+00> : vector<16xf32>
    %89 = vector.multi_reduction <add>, %88, %cst_28 [1] : vector<16x32xf32> to vector<16xf32>
    %90 = vector.shape_cast %89 : vector<16xf32> to vector<16x1xf32>
    %cst_29 = arith.constant dense<0.000000e+00> : vector<16x16xf32>
    %91 = tpu.matmul %84, %86, %cst_29 {dimension_numbers = #tpu.dot_dimension_numbers<[1], [1], [0], [0], [0, 0, 1, 0], [], []>} : vector<16x32xf32>, vector<16x32xf32>, vector<16x16xf32> -> vector<16x16xf32>
    %cst_30 = arith.constant 2.000000e+00 : f32
    %92 = vector.broadcast %cst_30 : f32 to vector<16x16xf32>
    %93 = arith.mulf %92, %91 : vector<16x16xf32>
    %94 = vector.broadcast %90 : vector<16x1xf32> to vector<16x16xf32>
    %95 = arith.addf %94, %93 : vector<16x16xf32>
    %96 = vector.broadcast %87 : vector<1x16xf32> to vector<16x16xf32>
    %97 = arith.addf %95, %96 : vector<16x16xf32>
    %cst_31 = arith.constant 0.000000e+00 : f32
    %98 = vector.broadcast %cst_31 : f32 to vector<16x16xf32>
    %99 = arith.maximumf %97, %98 : vector<16x16xf32>
    %100 = vector.broadcast %0 : f32 to vector<16x16xf32>
    %101 = arith.mulf %99, %100 : vector<16x16xf32>
    %cst_32 = arith.constant dense<0xFF800000> : vector<16xf32>
    %102 = vector.multi_reduction <maximumf>, %101, %cst_32 [1] : vector<16x16xf32> to vector<16xf32>
    %103 = vector.shape_cast %102 : vector<16xf32> to vector<16x1xf32>
    %104 = vector.broadcast %103 : vector<16x1xf32> to vector<16x16xf32>
    %105 = arith.subf %101, %104 : vector<16x16xf32>
    %106 = math.exp %105 : vector<16x16xf32>
    %cst_33 = arith.constant dense<0.000000e+00> : vector<16xf32>
    %107 = vector.multi_reduction <add>, %106, %cst_33 [1] : vector<16x16xf32> to vector<16xf32>
    %108 = vector.shape_cast %107 : vector<16xf32> to vector<16x1xf32>
    %109 = tpu.reciprocal %108 {approx = true} : vector<16x1xf32> -> vector<16x1xf32>
    %110 = vector.broadcast %109 : vector<16x1xf32> to vector<16x16xf32>
    %111 = arith.mulf %106, %110 : vector<16x16xf32>
    %112 = math.log %108 : vector<16x1xf32>
    %113 = vector.broadcast %112 : vector<16x1xf32> to vector<16x16xf32>
    %114 = arith.subf %105, %113 : vector<16x16xf32>
    %c0_34 = arith.constant 0 : index
    %c16 = arith.constant 16 : index
    %115 = vector.load %arg4[%c0_34, %c16] : memref<16x64xf32, #tpu.memory_space<vmem>>, vector<16x16xf32>
    %116 = arith.addf %105, %115 : vector<16x16xf32>
    %cst_35 = arith.constant dense<0xFF800000> : vector<16xf32>
    %117 = vector.multi_reduction <maximumf>, %116, %cst_35 [1] : vector<16x16xf32> to vector<16xf32>
    %118 = vector.shape_cast %117 : vector<16xf32> to vector<16x1xf32>
    %119 = vector.broadcast %118 : vector<16x1xf32> to vector<16x16xf32>
    %120 = arith.cmpf oge, %116, %119 : vector<16x16xf32>
    %c16_i32_36 = arith.constant 16 : i32
    %121 = vector.broadcast %c16_i32_36 : i32 to vector<16x16xi32>
    %122 = arith.select %120, %13, %121 : vector<16x16xi1>, vector<16x16xi32>
    %cst_37 = arith.constant dense<2147483647> : vector<16xi32>
    %123 = vector.multi_reduction <minsi>, %122, %cst_37 [1] : vector<16x16xi32> to vector<16xi32>
    %124 = vector.shape_cast %123 : vector<16xi32> to vector<16x1xi32>
    %c1_i32 = arith.constant 1 : i32
    %125 = vector.broadcast %c1_i32 : i32 to vector<16x4xi32>
    %126 = arith.cmpi eq, %12, %125 : vector<16x4xi32>
    %127 = vector.shape_cast %124 : vector<16x1xi32> to vector<16x1xi32>
    %128 = vector.broadcast %127 : vector<16x1xi32> to vector<16x4xi32>
    %129 = arith.select %126, %128, %62 : vector<16x4xi1>, vector<16x4xi32>
    %130 = vector.broadcast %9 : vector<16x1xf32> to vector<16x16xf32>
    %131 = arith.mulf %111, %130 : vector<16x16xf32>
    %cst_38 = arith.constant dense<0.000000e+00> : vector<16xf32>
    %132 = vector.multi_reduction <add>, %131, %cst_38 [0] : vector<16x16xf32> to vector<16xf32>
    %133 = vector.shape_cast %132 : vector<16xf32> to vector<1x16xf32>
    %c0_39 = arith.constant 0 : index
    %c1 = arith.constant 1 : index
    %c0_40 = arith.constant 0 : index
    %134 = vector.load %arg8[%c0_39, %c1, %c0_40] : memref<1x6x16xf32, #tpu.memory_space<vmem>>, vector<1x1x16xf32>
    %135 = vector.shape_cast %134 : vector<1x1x16xf32> to vector<1x16xf32>
    %136 = vector.shape_cast %133 : vector<1x16xf32> to vector<1x1x16xf32>
    tpu.vector_store %arg8[%c0_39, %c1, %c0_40], %136 {strides = array<i32>} : memref<1x6x16xf32, #tpu.memory_space<vmem>>, vector<1x1x16xf32>,
    %137 = arith.mulf %114, %131 : vector<16x16xf32>
    %138 = vector.shape_cast %137 : vector<16x16xf32> to vector<1x16x16xf32>
    %cst_41 = arith.constant dense<0.000000e+00> : vector<1xf32>
    %139 = vector.multi_reduction <add>, %138, %cst_41 [1, 2] : vector<1x16x16xf32> to vector<1xf32>
    %140 = vector.shape_cast %139 : vector<1xf32> to vector<1x1x1xf32>
    %141 = vector.extract %140[0, 0, 0] : f32 from vector<1x1x1xf32>
    %142 = vector.broadcast %141 : f32 to vector<1x1xf32>
    %143 = arith.subf %76, %142 : vector<1x1xf32>
    %144 = arith.mulf %99, %131 : vector<16x16xf32>
    %145 = vector.shape_cast %144 : vector<16x16xf32> to vector<1x16x16xf32>
    %cst_42 = arith.constant dense<0.000000e+00> : vector<1xf32>
    %146 = vector.multi_reduction <add>, %145, %cst_42 [1, 2] : vector<1x16x16xf32> to vector<1xf32>
    %147 = vector.shape_cast %146 : vector<1xf32> to vector<1x1x1xf32>
    %148 = vector.extract %147[0, 0, 0] : f32 from vector<1x1x1xf32>
    %149 = vector.broadcast %148 : f32 to vector<1x1xf32>
    %150 = arith.addf %83, %149 : vector<1x1xf32>
    %c0_43 = arith.constant 0 : index
    %c64 = arith.constant 64 : index
    %151 = vector.load %arg3[%c0_43, %c64] : memref<16x128xf32, #tpu.memory_space<vmem>>, vector<16x32xf32>
    %152 = vector.extract_strided_slice %10 {offsets = [2, 0, 0], sizes = [1, 16, 32], strides = [1, 1, 1]} : vector<4x16x32xf32> to vector<1x16x32xf32>
    %153 = vector.shape_cast %152 : vector<1x16x32xf32> to vector<16x32xf32>
    %154 = vector.extract_strided_slice %11 {offsets = [2, 0], sizes = [1, 16], strides = [1, 1]} : vector<4x16xf32> to vector<1x16xf32>
    %155 = arith.mulf %151, %151 : vector<16x32xf32>
    %cst_44 = arith.constant dense<0.000000e+00> : vector<16xf32>
    %156 = vector.multi_reduction <add>, %155, %cst_44 [1] : vector<16x32xf32> to vector<16xf32>
    %157 = vector.shape_cast %156 : vector<16xf32> to vector<16x1xf32>
    %cst_45 = arith.constant dense<0.000000e+00> : vector<16x16xf32>
    %158 = tpu.matmul %151, %153, %cst_45 {dimension_numbers = #tpu.dot_dimension_numbers<[1], [1], [0], [0], [0, 0, 1, 0], [], []>} : vector<16x32xf32>, vector<16x32xf32>, vector<16x16xf32> -> vector<16x16xf32>
    %cst_46 = arith.constant 2.000000e+00 : f32
    %159 = vector.broadcast %cst_46 : f32 to vector<16x16xf32>
    %160 = arith.mulf %159, %158 : vector<16x16xf32>
    %161 = vector.broadcast %157 : vector<16x1xf32> to vector<16x16xf32>
    %162 = arith.addf %161, %160 : vector<16x16xf32>
    %163 = vector.broadcast %154 : vector<1x16xf32> to vector<16x16xf32>
    %164 = arith.addf %162, %163 : vector<16x16xf32>
    %cst_47 = arith.constant 0.000000e+00 : f32
    %165 = vector.broadcast %cst_47 : f32 to vector<16x16xf32>
    %166 = arith.maximumf %164, %165 : vector<16x16xf32>
    %167 = vector.broadcast %0 : f32 to vector<16x16xf32>
    %168 = arith.mulf %166, %167 : vector<16x16xf32>
    %cst_48 = arith.constant dense<0xFF800000> : vector<16xf32>
    %169 = vector.multi_reduction <maximumf>, %168, %cst_48 [1] : vector<16x16xf32> to vector<16xf32>
    %170 = vector.shape_cast %169 : vector<16xf32> to vector<16x1xf32>
    %171 = vector.broadcast %170 : vector<16x1xf32> to vector<16x16xf32>
    %172 = arith.subf %168, %171 : vector<16x16xf32>
    %173 = math.exp %172 : vector<16x16xf32>
    %cst_49 = arith.constant dense<0.000000e+00> : vector<16xf32>
    %174 = vector.multi_reduction <add>, %173, %cst_49 [1] : vector<16x16xf32> to vector<16xf32>
    %175 = vector.shape_cast %174 : vector<16xf32> to vector<16x1xf32>
    %176 = tpu.reciprocal %175 {approx = true} : vector<16x1xf32> -> vector<16x1xf32>
    %177 = vector.broadcast %176 : vector<16x1xf32> to vector<16x16xf32>
    %178 = arith.mulf %173, %177 : vector<16x16xf32>
    %179 = math.log %175 : vector<16x1xf32>
    %180 = vector.broadcast %179 : vector<16x1xf32> to vector<16x16xf32>
    %181 = arith.subf %172, %180 : vector<16x16xf32>
    %c0_50 = arith.constant 0 : index
    %c32_51 = arith.constant 32 : index
    %182 = vector.load %arg4[%c0_50, %c32_51] : memref<16x64xf32, #tpu.memory_space<vmem>>, vector<16x16xf32>
    %183 = arith.addf %172, %182 : vector<16x16xf32>
    %cst_52 = arith.constant dense<0xFF800000> : vector<16xf32>
    %184 = vector.multi_reduction <maximumf>, %183, %cst_52 [1] : vector<16x16xf32> to vector<16xf32>
    %185 = vector.shape_cast %184 : vector<16xf32> to vector<16x1xf32>
    %186 = vector.broadcast %185 : vector<16x1xf32> to vector<16x16xf32>
    %187 = arith.cmpf oge, %183, %186 : vector<16x16xf32>
    %c16_i32_53 = arith.constant 16 : i32
    %188 = vector.broadcast %c16_i32_53 : i32 to vector<16x16xi32>
    %189 = arith.select %187, %13, %188 : vector<16x16xi1>, vector<16x16xi32>
    %cst_54 = arith.constant dense<2147483647> : vector<16xi32>
    %190 = vector.multi_reduction <minsi>, %189, %cst_54 [1] : vector<16x16xi32> to vector<16xi32>
    %191 = vector.shape_cast %190 : vector<16xi32> to vector<16x1xi32>
    %c2_i32 = arith.constant 2 : i32
    %192 = vector.broadcast %c2_i32 : i32 to vector<16x4xi32>
    %193 = arith.cmpi eq, %12, %192 : vector<16x4xi32>
    %194 = vector.shape_cast %191 : vector<16x1xi32> to vector<16x1xi32>
    %195 = vector.broadcast %194 : vector<16x1xi32> to vector<16x4xi32>
    %196 = arith.select %193, %195, %129 : vector<16x4xi1>, vector<16x4xi32>
    %197 = vector.broadcast %9 : vector<16x1xf32> to vector<16x16xf32>
    %198 = arith.mulf %178, %197 : vector<16x16xf32>
    %cst_55 = arith.constant dense<0.000000e+00> : vector<16xf32>
    %199 = vector.multi_reduction <add>, %198, %cst_55 [0] : vector<16x16xf32> to vector<16xf32>
    %200 = vector.shape_cast %199 : vector<16xf32> to vector<1x16xf32>
    %c0_56 = arith.constant 0 : index
    %c2 = arith.constant 2 : index
    %c0_57 = arith.constant 0 : index
    %201 = vector.load %arg8[%c0_56, %c2, %c0_57] : memref<1x6x16xf32, #tpu.memory_space<vmem>>, vector<1x1x16xf32>
    %202 = vector.shape_cast %201 : vector<1x1x16xf32> to vector<1x16xf32>
    %203 = vector.shape_cast %200 : vector<1x16xf32> to vector<1x1x16xf32>
    tpu.vector_store %arg8[%c0_56, %c2, %c0_57], %203 {strides = array<i32>} : memref<1x6x16xf32, #tpu.memory_space<vmem>>, vector<1x1x16xf32>,
    %204 = arith.mulf %181, %198 : vector<16x16xf32>
    %205 = vector.shape_cast %204 : vector<16x16xf32> to vector<1x16x16xf32>
    %cst_58 = arith.constant dense<0.000000e+00> : vector<1xf32>
    %206 = vector.multi_reduction <add>, %205, %cst_58 [1, 2] : vector<1x16x16xf32> to vector<1xf32>
    %207 = vector.shape_cast %206 : vector<1xf32> to vector<1x1x1xf32>
    %208 = vector.extract %207[0, 0, 0] : f32 from vector<1x1x1xf32>
    %209 = vector.broadcast %208 : f32 to vector<1x1xf32>
    %210 = arith.subf %143, %209 : vector<1x1xf32>
    %211 = arith.mulf %166, %198 : vector<16x16xf32>
    %212 = vector.shape_cast %211 : vector<16x16xf32> to vector<1x16x16xf32>
    %cst_59 = arith.constant dense<0.000000e+00> : vector<1xf32>
    %213 = vector.multi_reduction <add>, %212, %cst_59 [1, 2] : vector<1x16x16xf32> to vector<1xf32>
    %214 = vector.shape_cast %213 : vector<1xf32> to vector<1x1x1xf32>
    %215 = vector.extract %214[0, 0, 0] : f32 from vector<1x1x1xf32>
    %216 = vector.broadcast %215 : f32 to vector<1x1xf32>
    %217 = arith.addf %150, %216 : vector<1x1xf32>
    %c0_60 = arith.constant 0 : index
    %c96 = arith.constant 96 : index
    %218 = vector.load %arg3[%c0_60, %c96] : memref<16x128xf32, #tpu.memory_space<vmem>>, vector<16x32xf32>
    %219 = vector.extract_strided_slice %10 {offsets = [3, 0, 0], sizes = [1, 16, 32], strides = [1, 1, 1]} : vector<4x16x32xf32> to vector<1x16x32xf32>
    %220 = vector.shape_cast %219 : vector<1x16x32xf32> to vector<16x32xf32>
    %221 = vector.extract_strided_slice %11 {offsets = [3, 0], sizes = [1, 16], strides = [1, 1]} : vector<4x16xf32> to vector<1x16xf32>
    %222 = arith.mulf %218, %218 : vector<16x32xf32>
    %cst_61 = arith.constant dense<0.000000e+00> : vector<16xf32>
    %223 = vector.multi_reduction <add>, %222, %cst_61 [1] : vector<16x32xf32> to vector<16xf32>
    %224 = vector.shape_cast %223 : vector<16xf32> to vector<16x1xf32>
    %cst_62 = arith.constant dense<0.000000e+00> : vector<16x16xf32>
    %225 = tpu.matmul %218, %220, %cst_62 {dimension_numbers = #tpu.dot_dimension_numbers<[1], [1], [0], [0], [0, 0, 1, 0], [], []>} : vector<16x32xf32>, vector<16x32xf32>, vector<16x16xf32> -> vector<16x16xf32>
    %cst_63 = arith.constant 2.000000e+00 : f32
    %226 = vector.broadcast %cst_63 : f32 to vector<16x16xf32>
    %227 = arith.mulf %226, %225 : vector<16x16xf32>
    %228 = vector.broadcast %224 : vector<16x1xf32> to vector<16x16xf32>
    %229 = arith.addf %228, %227 : vector<16x16xf32>
    %230 = vector.broadcast %221 : vector<1x16xf32> to vector<16x16xf32>
    %231 = arith.addf %229, %230 : vector<16x16xf32>
    %cst_64 = arith.constant 0.000000e+00 : f32
    %232 = vector.broadcast %cst_64 : f32 to vector<16x16xf32>
    %233 = arith.maximumf %231, %232 : vector<16x16xf32>
    %234 = vector.broadcast %0 : f32 to vector<16x16xf32>
    %235 = arith.mulf %233, %234 : vector<16x16xf32>
    %cst_65 = arith.constant dense<0xFF800000> : vector<16xf32>
    %236 = vector.multi_reduction <maximumf>, %235, %cst_65 [1] : vector<16x16xf32> to vector<16xf32>
    %237 = vector.shape_cast %236 : vector<16xf32> to vector<16x1xf32>
    %238 = vector.broadcast %237 : vector<16x1xf32> to vector<16x16xf32>
    %239 = arith.subf %235, %238 : vector<16x16xf32>
    %240 = math.exp %239 : vector<16x16xf32>
    %cst_66 = arith.constant dense<0.000000e+00> : vector<16xf32>
    %241 = vector.multi_reduction <add>, %240, %cst_66 [1] : vector<16x16xf32> to vector<16xf32>
    %242 = vector.shape_cast %241 : vector<16xf32> to vector<16x1xf32>
    %243 = tpu.reciprocal %242 {approx = true} : vector<16x1xf32> -> vector<16x1xf32>
    %244 = vector.broadcast %243 : vector<16x1xf32> to vector<16x16xf32>
    %245 = arith.mulf %240, %244 : vector<16x16xf32>
    %246 = math.log %242 : vector<16x1xf32>
    %247 = vector.broadcast %246 : vector<16x1xf32> to vector<16x16xf32>
    %248 = arith.subf %239, %247 : vector<16x16xf32>
    %c0_67 = arith.constant 0 : index
    %c48 = arith.constant 48 : index
    %249 = vector.load %arg4[%c0_67, %c48] : memref<16x64xf32, #tpu.memory_space<vmem>>, vector<16x16xf32>
    %250 = arith.addf %239, %249 : vector<16x16xf32>
    %cst_68 = arith.constant dense<0xFF800000> : vector<16xf32>
    %251 = vector.multi_reduction <maximumf>, %250, %cst_68 [1] : vector<16x16xf32> to vector<16xf32>
    %252 = vector.shape_cast %251 : vector<16xf32> to vector<16x1xf32>
    %253 = vector.broadcast %252 : vector<16x1xf32> to vector<16x16xf32>
    %254 = arith.cmpf oge, %250, %253 : vector<16x16xf32>
    %c16_i32_69 = arith.constant 16 : i32
    %255 = vector.broadcast %c16_i32_69 : i32 to vector<16x16xi32>
    %256 = arith.select %254, %13, %255 : vector<16x16xi1>, vector<16x16xi32>
    %cst_70 = arith.constant dense<2147483647> : vector<16xi32>
    %257 = vector.multi_reduction <minsi>, %256, %cst_70 [1] : vector<16x16xi32> to vector<16xi32>
    %258 = vector.shape_cast %257 : vector<16xi32> to vector<16x1xi32>
    %c3_i32 = arith.constant 3 : i32
    %259 = vector.broadcast %c3_i32 : i32 to vector<16x4xi32>
    %260 = arith.cmpi eq, %12, %259 : vector<16x4xi32>
    %261 = vector.shape_cast %258 : vector<16x1xi32> to vector<16x1xi32>
    %262 = vector.broadcast %261 : vector<16x1xi32> to vector<16x4xi32>
    %263 = arith.select %260, %262, %196 : vector<16x4xi1>, vector<16x4xi32>
    %264 = vector.broadcast %9 : vector<16x1xf32> to vector<16x16xf32>
    %265 = arith.mulf %245, %264 : vector<16x16xf32>
    %cst_71 = arith.constant dense<0.000000e+00> : vector<16xf32>
    %266 = vector.multi_reduction <add>, %265, %cst_71 [0] : vector<16x16xf32> to vector<16xf32>
    %267 = vector.shape_cast %266 : vector<16xf32> to vector<1x16xf32>
    %c0_72 = arith.constant 0 : index
    %c3 = arith.constant 3 : index
    %c0_73 = arith.constant 0 : index
    %268 = vector.load %arg8[%c0_72, %c3, %c0_73] : memref<1x6x16xf32, #tpu.memory_space<vmem>>, vector<1x1x16xf32>
    %269 = vector.shape_cast %268 : vector<1x1x16xf32> to vector<1x16xf32>
    %270 = vector.shape_cast %267 : vector<1x16xf32> to vector<1x1x16xf32>
    tpu.vector_store %arg8[%c0_72, %c3, %c0_73], %270 {strides = array<i32>} : memref<1x6x16xf32, #tpu.memory_space<vmem>>, vector<1x1x16xf32>,
    %271 = arith.mulf %248, %265 : vector<16x16xf32>
    %272 = vector.shape_cast %271 : vector<16x16xf32> to vector<1x16x16xf32>
    %cst_74 = arith.constant dense<0.000000e+00> : vector<1xf32>
    %273 = vector.multi_reduction <add>, %272, %cst_74 [1, 2] : vector<1x16x16xf32> to vector<1xf32>
    %274 = vector.shape_cast %273 : vector<1xf32> to vector<1x1x1xf32>
    %275 = vector.extract %274[0, 0, 0] : f32 from vector<1x1x1xf32>
    %276 = vector.broadcast %275 : f32 to vector<1x1xf32>
    %277 = arith.subf %210, %276 : vector<1x1xf32>
    %278 = arith.mulf %233, %265 : vector<16x16xf32>
    %279 = vector.shape_cast %278 : vector<16x16xf32> to vector<1x16x16xf32>
    %cst_75 = arith.constant dense<0.000000e+00> : vector<1xf32>
    %280 = vector.multi_reduction <add>, %279, %cst_75 [1, 2] : vector<1x16x16xf32> to vector<1xf32>
    %281 = vector.shape_cast %280 : vector<1xf32> to vector<1x1x1xf32>
    %282 = vector.extract %281[0, 0, 0] : f32 from vector<1x1x1xf32>
    %283 = vector.broadcast %282 : f32 to vector<1x1xf32>
    %284 = arith.addf %217, %283 : vector<1x1xf32>
    %c0_76 = arith.constant 0 : index
    %c0_77 = arith.constant 0 : index
    %285 = vector.load %arg7[%c0_76, %c0_77] : memref<16x4xi32, #tpu.memory_space<vmem>>, vector<16x4xi32>
    tpu.vector_store %arg7[%c0_76, %c0_77], %263 {strides = array<i32>} : memref<16x4xi32, #tpu.memory_space<vmem>>, vector<16x4xi32>,
    %286 = vector.shape_cast %277 : vector<1x1xf32> to vector<1x1xf32>
    %287 = vector.broadcast %286 : vector<1x1xf32> to vector<1x16xf32>
    %c0_78 = arith.constant 0 : index
    %c4 = arith.constant 4 : index
    %c0_79 = arith.constant 0 : index
    %288 = vector.load %arg8[%c0_78, %c4, %c0_79] : memref<1x6x16xf32, #tpu.memory_space<vmem>>, vector<1x1x16xf32>
    %289 = vector.shape_cast %288 : vector<1x1x16xf32> to vector<1x16xf32>
    %290 = vector.shape_cast %287 : vector<1x16xf32> to vector<1x1x16xf32>
    tpu.vector_store %arg8[%c0_78, %c4, %c0_79], %290 {strides = array<i32>} : memref<1x6x16xf32, #tpu.memory_space<vmem>>, vector<1x1x16xf32>,
    %291 = vector.shape_cast %284 : vector<1x1xf32> to vector<1x1xf32>
    %292 = vector.broadcast %291 : vector<1x1xf32> to vector<1x16xf32>
    %c0_80 = arith.constant 0 : index
    %c5 = arith.constant 5 : index
    %c0_81 = arith.constant 0 : index
    %293 = vector.load %arg8[%c0_80, %c5, %c0_81] : memref<1x6x16xf32, #tpu.memory_space<vmem>>, vector<1x1x16xf32>
    %294 = vector.shape_cast %293 : vector<1x1x16xf32> to vector<1x16xf32>
    %295 = vector.shape_cast %292 : vector<1x16xf32> to vector<1x1x16xf32>
    tpu.vector_store %arg8[%c0_80, %c5, %c0_81], %295 {strides = array<i32>} : memref<1x6x16xf32, #tpu.memory_space<vmem>>, vector<1x1x16xf32>,
    return
  }
  func.func @transform_0(%arg0: i32) -> i32 {
    %c0_i32 = arith.constant 0 : i32
    %c0_i32_0 = arith.constant 0 : i32
    return %c0_i32 : i32
  }
  func.func @transform_1(%arg0: i32) -> i32 {
    %c0_i32 = arith.constant 0 : i32
    %c0_i32_0 = arith.constant 0 : i32
    return %c0_i32 : i32
  }
  func.func @transform_2(%arg0: i32) -> (i32, i32) {
    %c0_i32 = arith.constant 0 : i32
    %c0_i32_0 = arith.constant 0 : i32
    return %arg0, %c0_i32 : i32, i32
  }
  func.func @transform_3(%arg0: i32) -> (i32, i32) {
    %c0_i32 = arith.constant 0 : i32
    %c0_i32_0 = arith.constant 0 : i32
    return %arg0, %c0_i32 : i32, i32
  }
  func.func @transform_4(%arg0: i32) -> (i32, i32, i32) {
    %c0_i32 = arith.constant 0 : i32
    %c0_i32_0 = arith.constant 0 : i32
    %c0_i32_1 = arith.constant 0 : i32
    %c0_i32_2 = arith.constant 0 : i32
    return %c0_i32, %c0_i32_0, %c0_i32_1 : i32, i32, i32
  }
  func.func @transform_5(%arg0: i32) -> (i32, i32) {
    %c0_i32 = arith.constant 0 : i32
    %c0_i32_0 = arith.constant 0 : i32
    %c0_i32_1 = arith.constant 0 : i32
    return %c0_i32, %c0_i32_0 : i32, i32
  }
  func.func @transform_6(%arg0: i32) -> (i32, i32) {
    %c0_i32 = arith.constant 0 : i32
    %c0_i32_0 = arith.constant 0 : i32
    return %arg0, %c0_i32 : i32, i32
  }
  func.func @transform_7(%arg0: i32) -> (i32, i32, i32) {
    %c0_i32 = arith.constant 0 : i32
    %c0_i32_0 = arith.constant 0 : i32
    %c0_i32_1 = arith.constant 0 : i32
    return %arg0, %c0_i32, %c0_i32_0 : i32, i32, i32
  }
}

module attributes {stable_mosaic.version = 11 : i64} {
  func.func @_refine_kernel(%arg0: i32, %arg1: memref<1xf32, #tpu.memory_space<smem>>, %arg2: memref<1xi32, #tpu.memory_space<smem>>, %arg3: memref<16x128xf32, #tpu.memory_space<vmem>>, %arg4: memref<16x64xf32, #tpu.memory_space<vmem>>, %arg5: memref<4x16x32xf32, #tpu.memory_space<vmem>>, %arg6: memref<4x16xf32, #tpu.memory_space<vmem>>, %arg7: memref<16x4xi32, #tpu.memory_space<vmem>>, %arg8: memref<1x6x16xf32, #tpu.memory_space<vmem>>) attributes {dimension_semantics = [#tpu.dimension_semantics<parallel>], iteration_bounds = array<i64: 1>, scalar_prefetch = 0 : i64, scratch_operands = 0 : i64, tpu.core_type = #tpu.core_type<tc>, window_params = [{transform_indices = @transform_0, window_bounds = array<i64: 1>}, {transform_indices = @transform_1, window_bounds = array<i64: 1>}, {transform_indices = @transform_2, window_bounds = array<i64: 16, 128>}, {transform_indices = @transform_3, window_bounds = array<i64: 16, 64>}, {pipeline_mode = #tpu.pipeline_mode<synchronous>, transform_indices = @transform_4, window_bounds = array<i64: 4, 16, 32>}, {pipeline_mode = #tpu.pipeline_mode<synchronous>, transform_indices = @transform_5, window_bounds = array<i64: 4, 16>}, {transform_indices = @transform_6, window_bounds = array<i64: 16, 4>}, {transform_indices = @transform_7, window_bounds = array<i64: 1, 6, 16>}]} {
    %c0 = arith.constant 0 : index
    %0 = memref.load %arg1[%c0] : memref<1xf32, #tpu.memory_space<smem>>
    %c0_0 = arith.constant 0 : index
    %1 = memref.load %arg2[%c0_0] : memref<1xi32, #tpu.memory_space<smem>>
    %c16_i32 = arith.constant 16 : i32
    %2 = arith.muli %arg0, %c16_i32 : i32
    %3 = tpu.iota {dimensions = array<i32: 0>} : vector<16x1xi32>
    %4 = vector.broadcast %2 : i32 to vector<16x1xi32>
    %5 = arith.addi %3, %4 : vector<16x1xi32>
    %6 = vector.broadcast %1 : i32 to vector<16x1xi32>
    %7 = arith.cmpi slt, %5, %6 : vector<16x1xi32>
    %8 = arith.extui %7 : vector<16x1xi1> to vector<16x1xi32>
    %9 = arith.sitofp %8 : vector<16x1xi32> to vector<16x1xf32>
    %c0_1 = arith.constant 0 : index
    %c0_2 = arith.constant 0 : index
    %c0_3 = arith.constant 0 : index
    %10 = vector.load %arg5[%c0_1, %c0_2, %c0_3] : memref<4x16x32xf32, #tpu.memory_space<vmem>>, vector<4x16x32xf32>
    %c0_4 = arith.constant 0 : index
    %c0_5 = arith.constant 0 : index
    %11 = vector.load %arg6[%c0_4, %c0_5] : memref<4x16xf32, #tpu.memory_space<vmem>>, vector<4x16xf32>
    %12 = tpu.iota {dimensions = array<i32: 1>} : vector<16x4xi32>
    %13 = tpu.iota {dimensions = array<i32: 1>} : vector<16x16xi32>
    %c0_i32 = arith.constant 0 : i32
    %14 = vector.broadcast %c0_i32 : i32 to vector<16x4xi32>
    %cst = arith.constant 0.000000e+00 : f32
    %15 = vector.broadcast %cst : f32 to vector<1x1xf32>
    %cst_6 = arith.constant 0.000000e+00 : f32
    %16 = vector.broadcast %cst_6 : f32 to vector<1x1xf32>
    %c0_7 = arith.constant 0 : index
    %c0_8 = arith.constant 0 : index
    %17 = vector.load %arg3[%c0_7, %c0_8] : memref<16x128xf32, #tpu.memory_space<vmem>>, vector<16x32xf32>
    %18 = vector.extract_strided_slice %10 {offsets = [0, 0, 0], sizes = [1, 16, 32], strides = [1, 1, 1]} : vector<4x16x32xf32> to vector<1x16x32xf32>
    %19 = vector.shape_cast %18 : vector<1x16x32xf32> to vector<16x32xf32>
    %20 = vector.extract_strided_slice %11 {offsets = [0, 0], sizes = [1, 16], strides = [1, 1]} : vector<4x16xf32> to vector<1x16xf32>
    %21 = arith.mulf %17, %17 : vector<16x32xf32>
    %cst_9 = arith.constant dense<0.000000e+00> : vector<16xf32>
    %22 = vector.multi_reduction <add>, %21, %cst_9 [1] : vector<16x32xf32> to vector<16xf32>
    %23 = vector.shape_cast %22 : vector<16xf32> to vector<16x1xf32>
    %cst_10 = arith.constant dense<0.000000e+00> : vector<16x16xf32>
    %24 = tpu.matmul %17, %19, %cst_10 {dimension_numbers = #tpu.dot_dimension_numbers<[1], [1], [0], [0], [0, 0, 1, 0], [], []>} : vector<16x32xf32>, vector<16x32xf32>, vector<16x16xf32> -> vector<16x16xf32>
    %cst_11 = arith.constant 2.000000e+00 : f32
    %25 = vector.broadcast %cst_11 : f32 to vector<16x16xf32>
    %26 = arith.mulf %25, %24 : vector<16x16xf32>
    %27 = vector.broadcast %23 : vector<16x1xf32> to vector<16x16xf32>
    %28 = arith.addf %27, %26 : vector<16x16xf32>
    %29 = vector.broadcast %20 : vector<1x16xf32> to vector<16x16xf32>
    %30 = arith.addf %28, %29 : vector<16x16xf32>
    %cst_12 = arith.constant 0.000000e+00 : f32
    %31 = vector.broadcast %cst_12 : f32 to vector<16x16xf32>
    %32 = arith.maximumf %30, %31 : vector<16x16xf32>
    %33 = vector.broadcast %0 : f32 to vector<16x16xf32>
    %34 = arith.mulf %32, %33 : vector<16x16xf32>
    %cst_13 = arith.constant dense<0xFF800000> : vector<16xf32>
    %35 = vector.multi_reduction <maximumf>, %34, %cst_13 [1] : vector<16x16xf32> to vector<16xf32>
    %36 = vector.shape_cast %35 : vector<16xf32> to vector<16x1xf32>
    %37 = vector.broadcast %36 : vector<16x1xf32> to vector<16x16xf32>
    %38 = arith.subf %34, %37 : vector<16x16xf32>
    %39 = math.exp %38 : vector<16x16xf32>
    %cst_14 = arith.constant dense<0.000000e+00> : vector<16xf32>
    %40 = vector.multi_reduction <add>, %39, %cst_14 [1] : vector<16x16xf32> to vector<16xf32>
    %41 = vector.shape_cast %40 : vector<16xf32> to vector<16x1xf32>
    %42 = tpu.reciprocal %41 {approx = true} : vector<16x1xf32> -> vector<16x1xf32>
    %43 = vector.broadcast %42 : vector<16x1xf32> to vector<16x16xf32>
    %44 = arith.mulf %39, %43 : vector<16x16xf32>
    %45 = math.log %41 : vector<16x1xf32>
    %46 = vector.broadcast %45 : vector<16x1xf32> to vector<16x16xf32>
    %47 = arith.subf %38, %46 : vector<16x16xf32>
    %c0_15 = arith.constant 0 : index
    %c0_16 = arith.constant 0 : index
    %48 = vector.load %arg4[%c0_15, %c0_16] : memref<16x64xf32, #tpu.memory_space<vmem>>, vector<16x16xf32>
    %49 = arith.addf %38, %48 : vector<16x16xf32>
    %cst_17 = arith.constant dense<0xFF800000> : vector<16xf32>
    %50 = vector.multi_reduction <maximumf>, %49, %cst_17 [1] : vector<16x16xf32> to vector<16xf32>
    %51 = vector.shape_cast %50 : vector<16xf32> to vector<16x1xf32>
    %52 = vector.broadcast %51 : vector<16x1xf32> to vector<16x16xf32>
    %53 = arith.cmpf oge, %49, %52 : vector<16x16xf32>
    %c16_i32_18 = arith.constant 16 : i32
    %54 = vector.broadcast %c16_i32_18 : i32 to vector<16x16xi32>
    %55 = arith.select %53, %13, %54 : vector<16x16xi1>, vector<16x16xi32>
    %cst_19 = arith.constant dense<2147483647> : vector<16xi32>
    %56 = vector.multi_reduction <minsi>, %55, %cst_19 [1] : vector<16x16xi32> to vector<16xi32>
    %57 = vector.shape_cast %56 : vector<16xi32> to vector<16x1xi32>
    %c0_i32_20 = arith.constant 0 : i32
    %58 = vector.broadcast %c0_i32_20 : i32 to vector<16x4xi32>
    %59 = arith.cmpi eq, %12, %58 : vector<16x4xi32>
    %60 = vector.shape_cast %57 : vector<16x1xi32> to vector<16x1xi32>
    %61 = vector.broadcast %60 : vector<16x1xi32> to vector<16x4xi32>
    %62 = arith.select %59, %61, %14 : vector<16x4xi1>, vector<16x4xi32>
    %63 = vector.broadcast %9 : vector<16x1xf32> to vector<16x16xf32>
    %64 = arith.mulf %44, %63 : vector<16x16xf32>
    %cst_21 = arith.constant dense<0.000000e+00> : vector<16xf32>
    %65 = vector.multi_reduction <add>, %64, %cst_21 [0] : vector<16x16xf32> to vector<16xf32>
    %66 = vector.shape_cast %65 : vector<16xf32> to vector<1x16xf32>
    %c0_22 = arith.constant 0 : index
    %c0_23 = arith.constant 0 : index
    %c0_24 = arith.constant 0 : index
    %67 = vector.load %arg8[%c0_22, %c0_23, %c0_24] : memref<1x6x16xf32, #tpu.memory_space<vmem>>, vector<1x1x16xf32>
    %68 = vector.shape_cast %67 : vector<1x1x16xf32> to vector<1x16xf32>
    %69 = vector.shape_cast %66 : vector<1x16xf32> to vector<1x1x16xf32>
    tpu.vector_store %arg8[%c0_22, %c0_23, %c0_24], %69 {strides = array<i32>} : memref<1x6x16xf32, #tpu.memory_space<vmem>>, vector<1x1x16xf32>,
    %70 = arith.mulf %47, %64 : vector<16x16xf32>
    %71 = vector.shape_cast %70 : vector<16x16xf32> to vector<1x16x16xf32>
    %cst_25 = arith.constant dense<0.000000e+00> : vector<1xf32>
    %72 = vector.multi_reduction <add>, %71, %cst_25 [1, 2] : vector<1x16x16xf32> to vector<1xf32>
    %73 = vector.shape_cast %72 : vector<1xf32> to vector<1x1x1xf32>
    %74 = vector.extract %73[0, 0, 0] : f32 from vector<1x1x1xf32>
    %75 = vector.broadcast %74 : f32 to vector<1x1xf32>
    %76 = arith.subf %15, %75 : vector<1x1xf32>
    %77 = arith.mulf %32, %64 : vector<16x16xf32>
    %78 = vector.shape_cast %77 : vector<16x16xf32> to vector<1x16x16xf32>
    %cst_26 = arith.constant dense<0.000000e+00> : vector<1xf32>
    %79 = vector.multi_reduction <add>, %78, %cst_26 [1, 2] : vector<1x16x16xf32> to vector<1xf32>
    %80 = vector.shape_cast %79 : vector<1xf32> to vector<1x1x1xf32>
    %81 = vector.extract %80[0, 0, 0] : f32 from vector<1x1x1xf32>
    %82 = vector.broadcast %81 : f32 to vector<1x1xf32>
    %83 = arith.addf %16, %82 : vector<1x1xf32>
    %c0_27 = arith.constant 0 : index
    %c32 = arith.constant 32 : index
    %84 = vector.load %arg3[%c0_27, %c32] : memref<16x128xf32, #tpu.memory_space<vmem>>, vector<16x32xf32>
    %85 = vector.extract_strided_slice %10 {offsets = [1, 0, 0], sizes = [1, 16, 32], strides = [1, 1, 1]} : vector<4x16x32xf32> to vector<1x16x32xf32>
    %86 = vector.shape_cast %85 : vector<1x16x32xf32> to vector<16x32xf32>
    %87 = vector.extract_strided_slice %11 {offsets = [1, 0], sizes = [1, 16], strides = [1, 1]} : vector<4x16xf32> to vector<1x16xf32>
    %88 = arith.mulf %84, %84 : vector<16x32xf32>
    %cst_28 = arith.constant dense<0.000000e+00> : vector<16xf32>
    %89 = vector.multi_reduction <add>, %88, %cst_28 [1] : vector<16x32xf32> to vector<16xf32>
    %90 = vector.shape_cast %89 : vector<16xf32> to vector<16x1xf32>
    %cst_29 = arith.constant dense<0.000000e+00> : vector<16x16xf32>
    %91 = tpu.matmul %84, %86, %cst_29 {dimension_numbers = #tpu.dot_dimension_numbers<[1], [1], [0], [0], [0, 0, 1, 0], [], []>} : vector<16x32xf32>, vector<16x32xf32>, vector<16x16xf32> -> vector<16x16xf32>
    %cst_30 = arith.constant 2.000000e+00 : f32
    %92 = vector.broadcast %cst_30 : f32 to vector<16x16xf32>
    %93 = arith.mulf %92, %91 : vector<16x16xf32>
    %94 = vector.broadcast %90 : vector<16x1xf32> to vector<16x16xf32>
    %95 = arith.addf %94, %93 : vector<16x16xf32>
    %96 = vector.broadcast %87 : vector<1x16xf32> to vector<16x16xf32>
    %97 = arith.addf %95, %96 : vector<16x16xf32>
    %cst_31 = arith.constant 0.000000e+00 : f32
    %98 = vector.broadcast %cst_31 : f32 to vector<16x16xf32>
    %99 = arith.maximumf %97, %98 : vector<16x16xf32>
    %100 = vector.broadcast %0 : f32 to vector<16x16xf32>
    %101 = arith.mulf %99, %100 : vector<16x16xf32>
    %cst_32 = arith.constant dense<0xFF800000> : vector<16xf32>
    %102 = vector.multi_reduction <maximumf>, %101, %cst_32 [1] : vector<16x16xf32> to vector<16xf32>
    %103 = vector.shape_cast %102 : vector<16xf32> to vector<16x1xf32>
    %104 = vector.broadcast %103 : vector<16x1xf32> to vector<16x16xf32>
    %105 = arith.subf %101, %104 : vector<16x16xf32>
    %106 = math.exp %105 : vector<16x16xf32>
    %cst_33 = arith.constant dense<0.000000e+00> : vector<16xf32>
    %107 = vector.multi_reduction <add>, %106, %cst_33 [1] : vector<16x16xf32> to vector<16xf32>
    %108 = vector.shape_cast %107 : vector<16xf32> to vector<16x1xf32>
    %109 = tpu.reciprocal %108 {approx = true} : vector<16x1xf32> -> vector<16x1xf32>
    %110 = vector.broadcast %109 : vector<16x1xf32> to vector<16x16xf32>
    %111 = arith.mulf %106, %110 : vector<16x16xf32>
    %112 = math.log %108 : vector<16x1xf32>
    %113 = vector.broadcast %112 : vector<16x1xf32> to vector<16x16xf32>
    %114 = arith.subf %105, %113 : vector<16x16xf32>
    %c0_34 = arith.constant 0 : index
    %c16 = arith.constant 16 : index
    %115 = vector.load %arg4[%c0_34, %c16] : memref<16x64xf32, #tpu.memory_space<vmem>>, vector<16x16xf32>
    %116 = arith.addf %105, %115 : vector<16x16xf32>
    %cst_35 = arith.constant dense<0xFF800000> : vector<16xf32>
    %117 = vector.multi_reduction <maximumf>, %116, %cst_35 [1] : vector<16x16xf32> to vector<16xf32>
    %118 = vector.shape_cast %117 : vector<16xf32> to vector<16x1xf32>
    %119 = vector.broadcast %118 : vector<16x1xf32> to vector<16x16xf32>
    %120 = arith.cmpf oge, %116, %119 : vector<16x16xf32>
    %c16_i32_36 = arith.constant 16 : i32
    %121 = vector.broadcast %c16_i32_36 : i32 to vector<16x16xi32>
    %122 = arith.select %120, %13, %121 : vector<16x16xi1>, vector<16x16xi32>
    %cst_37 = arith.constant dense<2147483647> : vector<16xi32>
    %123 = vector.multi_reduction <minsi>, %122, %cst_37 [1] : vector<16x16xi32> to vector<16xi32>
    %124 = vector.shape_cast %123 : vector<16xi32> to vector<16x1xi32>
    %c1_i32 = arith.constant 1 : i32
    %125 = vector.broadcast %c1_i32 : i32 to vector<16x4xi32>
    %126 = arith.cmpi eq, %12, %125 : vector<16x4xi32>
    %127 = vector.shape_cast %124 : vector<16x1xi32> to vector<16x1xi32>
    %128 = vector.broadcast %127 : vector<16x1xi32> to vector<16x4xi32>
    %129 = arith.select %126, %128, %62 : vector<16x4xi1>, vector<16x4xi32>
    %130 = vector.broadcast %9 : vector<16x1xf32> to vector<16x16xf32>
    %131 = arith.mulf %111, %130 : vector<16x16xf32>
    %cst_38 = arith.constant dense<0.000000e+00> : vector<16xf32>
    %132 = vector.multi_reduction <add>, %131, %cst_38 [0] : vector<16x16xf32> to vector<16xf32>
    %133 = vector.shape_cast %132 : vector<16xf32> to vector<1x16xf32>
    %c0_39 = arith.constant 0 : index
    %c1 = arith.constant 1 : index
    %c0_40 = arith.constant 0 : index
    %134 = vector.load %arg8[%c0_39, %c1, %c0_40] : memref<1x6x16xf32, #tpu.memory_space<vmem>>, vector<1x1x16xf32>
    %135 = vector.shape_cast %134 : vector<1x1x16xf32> to vector<1x16xf32>
    %136 = vector.shape_cast %133 : vector<1x16xf32> to vector<1x1x16xf32>
    tpu.vector_store %arg8[%c0_39, %c1, %c0_40], %136 {strides = array<i32>} : memref<1x6x16xf32, #tpu.memory_space<vmem>>, vector<1x1x16xf32>,
    %137 = arith.mulf %114, %131 : vector<16x16xf32>
    %138 = vector.shape_cast %137 : vector<16x16xf32> to vector<1x16x16xf32>
    %cst_41 = arith.constant dense<0.000000e+00> : vector<1xf32>
    %139 = vector.multi_reduction <add>, %138, %cst_41 [1, 2] : vector<1x16x16xf32> to vector<1xf32>
    %140 = vector.shape_cast %139 : vector<1xf32> to vector<1x1x1xf32>
    %141 = vector.extract %140[0, 0, 0] : f32 from vector<1x1x1xf32>
    %142 = vector.broadcast %141 : f32 to vector<1x1xf32>
    %143 = arith.subf %76, %142 : vector<1x1xf32>
    %144 = arith.mulf %99, %131 : vector<16x16xf32>
    %145 = vector.shape_cast %144 : vector<16x16xf32> to vector<1x16x16xf32>
    %cst_42 = arith.constant dense<0.000000e+00> : vector<1xf32>
    %146 = vector.multi_reduction <add>, %145, %cst_42 [1, 2] : vector<1x16x16xf32> to vector<1xf32>
    %147 = vector.shape_cast %146 : vector<1xf32> to vector<1x1x1xf32>
    %148 = vector.extract %147[0, 0, 0] : f32 from vector<1x1x1xf32>
    %149 = vector.broadcast %148 : f32 to vector<1x1xf32>
    %150 = arith.addf %83, %149 : vector<1x1xf32>
    %c0_43 = arith.constant 0 : index
    %c64 = arith.constant 64 : index
    %151 = vector.load %arg3[%c0_43, %c64] : memref<16x128xf32, #tpu.memory_space<vmem>>, vector<16x32xf32>
    %152 = vector.extract_strided_slice %10 {offsets = [2, 0, 0], sizes = [1, 16, 32], strides = [1, 1, 1]} : vector<4x16x32xf32> to vector<1x16x32xf32>
    %153 = vector.shape_cast %152 : vector<1x16x32xf32> to vector<16x32xf32>
    %154 = vector.extract_strided_slice %11 {offsets = [2, 0], sizes = [1, 16], strides = [1, 1]} : vector<4x16xf32> to vector<1x16xf32>
    %155 = arith.mulf %151, %151 : vector<16x32xf32>
    %cst_44 = arith.constant dense<0.000000e+00> : vector<16xf32>
    %156 = vector.multi_reduction <add>, %155, %cst_44 [1] : vector<16x32xf32> to vector<16xf32>
    %157 = vector.shape_cast %156 : vector<16xf32> to vector<16x1xf32>
    %cst_45 = arith.constant dense<0.000000e+00> : vector<16x16xf32>
    %158 = tpu.matmul %151, %153, %cst_45 {dimension_numbers = #tpu.dot_dimension_numbers<[1], [1], [0], [0], [0, 0, 1, 0], [], []>} : vector<16x32xf32>, vector<16x32xf32>, vector<16x16xf32> -> vector<16x16xf32>
    %cst_46 = arith.constant 2.000000e+00 : f32
    %159 = vector.broadcast %cst_46 : f32 to vector<16x16xf32>
    %160 = arith.mulf %159, %158 : vector<16x16xf32>
    %161 = vector.broadcast %157 : vector<16x1xf32> to vector<16x16xf32>
    %162 = arith.addf %161, %160 : vector<16x16xf32>
    %163 = vector.broadcast %154 : vector<1x16xf32> to vector<16x16xf32>
    %164 = arith.addf %162, %163 : vector<16x16xf32>
    %cst_47 = arith.constant 0.000000e+00 : f32
    %165 = vector.broadcast %cst_47 : f32 to vector<16x16xf32>
    %166 = arith.maximumf %164, %165 : vector<16x16xf32>
    %167 = vector.broadcast %0 : f32 to vector<16x16xf32>
    %168 = arith.mulf %166, %167 : vector<16x16xf32>
    %cst_48 = arith.constant dense<0xFF800000> : vector<16xf32>
    %169 = vector.multi_reduction <maximumf>, %168, %cst_48 [1] : vector<16x16xf32> to vector<16xf32>
    %170 = vector.shape_cast %169 : vector<16xf32> to vector<16x1xf32>
    %171 = vector.broadcast %170 : vector<16x1xf32> to vector<16x16xf32>
    %172 = arith.subf %168, %171 : vector<16x16xf32>
    %173 = math.exp %172 : vector<16x16xf32>
    %cst_49 = arith.constant dense<0.000000e+00> : vector<16xf32>
    %174 = vector.multi_reduction <add>, %173, %cst_49 [1] : vector<16x16xf32> to vector<16xf32>
    %175 = vector.shape_cast %174 : vector<16xf32> to vector<16x1xf32>
    %176 = tpu.reciprocal %175 {approx = true} : vector<16x1xf32> -> vector<16x1xf32>
    %177 = vector.broadcast %176 : vector<16x1xf32> to vector<16x16xf32>
    %178 = arith.mulf %173, %177 : vector<16x16xf32>
    %179 = math.log %175 : vector<16x1xf32>
    %180 = vector.broadcast %179 : vector<16x1xf32> to vector<16x16xf32>
    %181 = arith.subf %172, %180 : vector<16x16xf32>
    %c0_50 = arith.constant 0 : index
    %c32_51 = arith.constant 32 : index
    %182 = vector.load %arg4[%c0_50, %c32_51] : memref<16x64xf32, #tpu.memory_space<vmem>>, vector<16x16xf32>
    %183 = arith.addf %172, %182 : vector<16x16xf32>
    %cst_52 = arith.constant dense<0xFF800000> : vector<16xf32>
    %184 = vector.multi_reduction <maximumf>, %183, %cst_52 [1] : vector<16x16xf32> to vector<16xf32>
    %185 = vector.shape_cast %184 : vector<16xf32> to vector<16x1xf32>
    %186 = vector.broadcast %185 : vector<16x1xf32> to vector<16x16xf32>
    %187 = arith.cmpf oge, %183, %186 : vector<16x16xf32>
    %c16_i32_53 = arith.constant 16 : i32
    %188 = vector.broadcast %c16_i32_53 : i32 to vector<16x16xi32>
    %189 = arith.select %187, %13, %188 : vector<16x16xi1>, vector<16x16xi32>
    %cst_54 = arith.constant dense<2147483647> : vector<16xi32>
    %190 = vector.multi_reduction <minsi>, %189, %cst_54 [1] : vector<16x16xi32> to vector<16xi32>
    %191 = vector.shape_cast %190 : vector<16xi32> to vector<16x1xi32>
    %c2_i32 = arith.constant 2 : i32
    %192 = vector.broadcast %c2_i32 : i32 to vector<16x4xi32>
    %193 = arith.cmpi eq, %12, %192 : vector<16x4xi32>
    %194 = vector.shape_cast %191 : vector<16x1xi32> to vector<16x1xi32>
    %195 = vector.broadcast %194 : vector<16x1xi32> to vector<16x4xi32>
    %196 = arith.select %193, %195, %129 : vector<16x4xi1>, vector<16x4xi32>
    %197 = vector.broadcast %9 : vector<16x1xf32> to vector<16x16xf32>
    %198 = arith.mulf %178, %197 : vector<16x16xf32>
    %cst_55 = arith.constant dense<0.000000e+00> : vector<16xf32>
    %199 = vector.multi_reduction <add>, %198, %cst_55 [0] : vector<16x16xf32> to vector<16xf32>
    %200 = vector.shape_cast %199 : vector<16xf32> to vector<1x16xf32>
    %c0_56 = arith.constant 0 : index
    %c2 = arith.constant 2 : index
    %c0_57 = arith.constant 0 : index
    %201 = vector.load %arg8[%c0_56, %c2, %c0_57] : memref<1x6x16xf32, #tpu.memory_space<vmem>>, vector<1x1x16xf32>
    %202 = vector.shape_cast %201 : vector<1x1x16xf32> to vector<1x16xf32>
    %203 = vector.shape_cast %200 : vector<1x16xf32> to vector<1x1x16xf32>
    tpu.vector_store %arg8[%c0_56, %c2, %c0_57], %203 {strides = array<i32>} : memref<1x6x16xf32, #tpu.memory_space<vmem>>, vector<1x1x16xf32>,
    %204 = arith.mulf %181, %198 : vector<16x16xf32>
    %205 = vector.shape_cast %204 : vector<16x16xf32> to vector<1x16x16xf32>
    %cst_58 = arith.constant dense<0.000000e+00> : vector<1xf32>
    %206 = vector.multi_reduction <add>, %205, %cst_58 [1, 2] : vector<1x16x16xf32> to vector<1xf32>
    %207 = vector.shape_cast %206 : vector<1xf32> to vector<1x1x1xf32>
    %208 = vector.extract %207[0, 0, 0] : f32 from vector<1x1x1xf32>
    %209 = vector.broadcast %208 : f32 to vector<1x1xf32>
    %210 = arith.subf %143, %209 : vector<1x1xf32>
    %211 = arith.mulf %166, %198 : vector<16x16xf32>
    %212 = vector.shape_cast %211 : vector<16x16xf32> to vector<1x16x16xf32>
    %cst_59 = arith.constant dense<0.000000e+00> : vector<1xf32>
    %213 = vector.multi_reduction <add>, %212, %cst_59 [1, 2] : vector<1x16x16xf32> to vector<1xf32>
    %214 = vector.shape_cast %213 : vector<1xf32> to vector<1x1x1xf32>
    %215 = vector.extract %214[0, 0, 0] : f32 from vector<1x1x1xf32>
    %216 = vector.broadcast %215 : f32 to vector<1x1xf32>
    %217 = arith.addf %150, %216 : vector<1x1xf32>
    %c0_60 = arith.constant 0 : index
    %c96 = arith.constant 96 : index
    %218 = vector.load %arg3[%c0_60, %c96] : memref<16x128xf32, #tpu.memory_space<vmem>>, vector<16x32xf32>
    %219 = vector.extract_strided_slice %10 {offsets = [3, 0, 0], sizes = [1, 16, 32], strides = [1, 1, 1]} : vector<4x16x32xf32> to vector<1x16x32xf32>
    %220 = vector.shape_cast %219 : vector<1x16x32xf32> to vector<16x32xf32>
    %221 = vector.extract_strided_slice %11 {offsets = [3, 0], sizes = [1, 16], strides = [1, 1]} : vector<4x16xf32> to vector<1x16xf32>
    %222 = arith.mulf %218, %218 : vector<16x32xf32>
    %cst_61 = arith.constant dense<0.000000e+00> : vector<16xf32>
    %223 = vector.multi_reduction <add>, %222, %cst_61 [1] : vector<16x32xf32> to vector<16xf32>
    %224 = vector.shape_cast %223 : vector<16xf32> to vector<16x1xf32>
    %cst_62 = arith.constant dense<0.000000e+00> : vector<16x16xf32>
    %225 = tpu.matmul %218, %220, %cst_62 {dimension_numbers = #tpu.dot_dimension_numbers<[1], [1], [0], [0], [0, 0, 1, 0], [], []>} : vector<16x32xf32>, vector<16x32xf32>, vector<16x16xf32> -> vector<16x16xf32>
    %cst_63 = arith.constant 2.000000e+00 : f32
    %226 = vector.broadcast %cst_63 : f32 to vector<16x16xf32>
    %227 = arith.mulf %226, %225 : vector<16x16xf32>
    %228 = vector.broadcast %224 : vector<16x1xf32> to vector<16x16xf32>
    %229 = arith.addf %228, %227 : vector<16x16xf32>
    %230 = vector.broadcast %221 : vector<1x16xf32> to vector<16x16xf32>
    %231 = arith.addf %229, %230 : vector<16x16xf32>
    %cst_64 = arith.constant 0.000000e+00 : f32
    %232 = vector.broadcast %cst_64 : f32 to vector<16x16xf32>
    %233 = arith.maximumf %231, %232 : vector<16x16xf32>
    %234 = vector.broadcast %0 : f32 to vector<16x16xf32>
    %235 = arith.mulf %233, %234 : vector<16x16xf32>
    %cst_65 = arith.constant dense<0xFF800000> : vector<16xf32>
    %236 = vector.multi_reduction <maximumf>, %235, %cst_65 [1] : vector<16x16xf32> to vector<16xf32>
    %237 = vector.shape_cast %236 : vector<16xf32> to vector<16x1xf32>
    %238 = vector.broadcast %237 : vector<16x1xf32> to vector<16x16xf32>
    %239 = arith.subf %235, %238 : vector<16x16xf32>
    %240 = math.exp %239 : vector<16x16xf32>
    %cst_66 = arith.constant dense<0.000000e+00> : vector<16xf32>
    %241 = vector.multi_reduction <add>, %240, %cst_66 [1] : vector<16x16xf32> to vector<16xf32>
    %242 = vector.shape_cast %241 : vector<16xf32> to vector<16x1xf32>
    %243 = tpu.reciprocal %242 {approx = true} : vector<16x1xf32> -> vector<16x1xf32>
    %244 = vector.broadcast %243 : vector<16x1xf32> to vector<16x16xf32>
    %245 = arith.mulf %240, %244 : vector<16x16xf32>
    %246 = math.log %242 : vector<16x1xf32>
    %247 = vector.broadcast %246 : vector<16x1xf32> to vector<16x16xf32>
    %248 = arith.subf %239, %247 : vector<16x16xf32>
    %c0_67 = arith.constant 0 : index
    %c48 = arith.constant 48 : index
    %249 = vector.load %arg4[%c0_67, %c48] : memref<16x64xf32, #tpu.memory_space<vmem>>, vector<16x16xf32>
    %250 = arith.addf %239, %249 : vector<16x16xf32>
    %cst_68 = arith.constant dense<0xFF800000> : vector<16xf32>
    %251 = vector.multi_reduction <maximumf>, %250, %cst_68 [1] : vector<16x16xf32> to vector<16xf32>
    %252 = vector.shape_cast %251 : vector<16xf32> to vector<16x1xf32>
    %253 = vector.broadcast %252 : vector<16x1xf32> to vector<16x16xf32>
    %254 = arith.cmpf oge, %250, %253 : vector<16x16xf32>
    %c16_i32_69 = arith.constant 16 : i32
    %255 = vector.broadcast %c16_i32_69 : i32 to vector<16x16xi32>
    %256 = arith.select %254, %13, %255 : vector<16x16xi1>, vector<16x16xi32>
    %cst_70 = arith.constant dense<2147483647> : vector<16xi32>
    %257 = vector.multi_reduction <minsi>, %256, %cst_70 [1] : vector<16x16xi32> to vector<16xi32>
    %258 = vector.shape_cast %257 : vector<16xi32> to vector<16x1xi32>
    %c3_i32 = arith.constant 3 : i32
    %259 = vector.broadcast %c3_i32 : i32 to vector<16x4xi32>
    %260 = arith.cmpi eq, %12, %259 : vector<16x4xi32>
    %261 = vector.shape_cast %258 : vector<16x1xi32> to vector<16x1xi32>
    %262 = vector.broadcast %261 : vector<16x1xi32> to vector<16x4xi32>
    %263 = arith.select %260, %262, %196 : vector<16x4xi1>, vector<16x4xi32>
    %264 = vector.broadcast %9 : vector<16x1xf32> to vector<16x16xf32>
    %265 = arith.mulf %245, %264 : vector<16x16xf32>
    %cst_71 = arith.constant dense<0.000000e+00> : vector<16xf32>
    %266 = vector.multi_reduction <add>, %265, %cst_71 [0] : vector<16x16xf32> to vector<16xf32>
    %267 = vector.shape_cast %266 : vector<16xf32> to vector<1x16xf32>
    %c0_72 = arith.constant 0 : index
    %c3 = arith.constant 3 : index
    %c0_73 = arith.constant 0 : index
    %268 = vector.load %arg8[%c0_72, %c3, %c0_73] : memref<1x6x16xf32, #tpu.memory_space<vmem>>, vector<1x1x16xf32>
    %269 = vector.shape_cast %268 : vector<1x1x16xf32> to vector<1x16xf32>
    %270 = vector.shape_cast %267 : vector<1x16xf32> to vector<1x1x16xf32>
    tpu.vector_store %arg8[%c0_72, %c3, %c0_73], %270 {strides = array<i32>} : memref<1x6x16xf32, #tpu.memory_space<vmem>>, vector<1x1x16xf32>,
    %271 = arith.mulf %248, %265 : vector<16x16xf32>
    %272 = vector.shape_cast %271 : vector<16x16xf32> to vector<1x16x16xf32>
    %cst_74 = arith.constant dense<0.000000e+00> : vector<1xf32>
    %273 = vector.multi_reduction <add>, %272, %cst_74 [1, 2] : vector<1x16x16xf32> to vector<1xf32>
    %274 = vector.shape_cast %273 : vector<1xf32> to vector<1x1x1xf32>
    %275 = vector.extract %274[0, 0, 0] : f32 from vector<1x1x1xf32>
    %276 = vector.broadcast %275 : f32 to vector<1x1xf32>
    %277 = arith.subf %210, %276 : vector<1x1xf32>
    %278 = arith.mulf %233, %265 : vector<16x16xf32>
    %279 = vector.shape_cast %278 : vector<16x16xf32> to vector<1x16x16xf32>
    %cst_75 = arith.constant dense<0.000000e+00> : vector<1xf32>
    %280 = vector.multi_reduction <add>, %279, %cst_75 [1, 2] : vector<1x16x16xf32> to vector<1xf32>
    %281 = vector.shape_cast %280 : vector<1xf32> to vector<1x1x1xf32>
    %282 = vector.extract %281[0, 0, 0] : f32 from vector<1x1x1xf32>
    %283 = vector.broadcast %282 : f32 to vector<1x1xf32>
    %284 = arith.addf %217, %283 : vector<1x1xf32>
    %c0_76 = arith.constant 0 : index
    %c0_77 = arith.constant 0 : index
    %285 = vector.load %arg7[%c0_76, %c0_77] : memref<16x4xi32, #tpu.memory_space<vmem>>, vector<16x4xi32>
    tpu.vector_store %arg7[%c0_76, %c0_77], %263 {strides = array<i32>} : memref<16x4xi32, #tpu.memory_space<vmem>>, vector<16x4xi32>,
    %286 = vector.shape_cast %277 : vector<1x1xf32> to vector<1x1xf32>
    %287 = vector.broadcast %286 : vector<1x1xf32> to vector<1x16xf32>
    %c0_78 = arith.constant 0 : index
    %c4 = arith.constant 4 : index
    %c0_79 = arith.constant 0 : index
    %288 = vector.load %arg8[%c0_78, %c4, %c0_79] : memref<1x6x16xf32, #tpu.memory_space<vmem>>, vector<1x1x16xf32>
    %289 = vector.shape_cast %288 : vector<1x1x16xf32> to vector<1x16xf32>
    %290 = vector.shape_cast %287 : vector<1x16xf32> to vector<1x1x16xf32>
    tpu.vector_store %arg8[%c0_78, %c4, %c0_79], %290 {strides = array<i32>} : memref<1x6x16xf32, #tpu.memory_space<vmem>>, vector<1x1x16xf32>,
    %291 = vector.shape_cast %284 : vector<1x1xf32> to vector<1x1xf32>
    %292 = vector.broadcast %291 : vector<1x1xf32> to vector<1x16xf32>
    %c0_80 = arith.constant 0 : index
    %c5 = arith.constant 5 : index
    %c0_81 = arith.constant 0 : index
    %293 = vector.load %arg8[%c0_80, %c5, %c0_81] : memref<1x6x16xf32, #tpu.memory_space<vmem>>, vector<1x1x16xf32>
    %294 = vector.shape_cast %293 : vector<1x1x16xf32> to vector<1x16xf32>
    %295 = vector.shape_cast %292 : vector<1x16xf32> to vector<1x1x16xf32>
    tpu.vector_store %arg8[%c0_80, %c5, %c0_81], %295 {strides = array<i32>} : memref<1x6x16xf32, #tpu.memory_space<vmem>>, vector<1x1x16xf32>,
    return
  }
  func.func @transform_0(%arg0: i32) -> i32 {
    %c0_i32 = arith.constant 0 : i32
    %c0_i32_0 = arith.constant 0 : i32
    return %c0_i32 : i32
  }
  func.func @transform_1(%arg0: i32) -> i32 {
    %c0_i32 = arith.constant 0 : i32
    %c0_i32_0 = arith.constant 0 : i32
    return %c0_i32 : i32
  }
  func.func @transform_2(%arg0: i32) -> (i32, i32) {
    %c0_i32 = arith.constant 0 : i32
    %c0_i32_0 = arith.constant 0 : i32
    return %arg0, %c0_i32 : i32, i32
  }
  func.func @transform_3(%arg0: i32) -> (i32, i32) {
    %c0_i32 = arith.constant 0 : i32
    %c0_i32_0 = arith.constant 0 : i32
    return %arg0, %c0_i32 : i32, i32
  }
  func.func @transform_4(%arg0: i32) -> (i32, i32, i32) {
    %c0_i32 = arith.constant 0 : i32
    %c0_i32_0 = arith.constant 0 : i32
    %c0_i32_1 = arith.constant 0 : i32
    %c0_i32_2 = arith.constant 0 : i32
    return %c0_i32, %c0_i32_0, %c0_i32_1 : i32, i32, i32
  }
  func.func @transform_5(%arg0: i32) -> (i32, i32) {
    %c0_i32 = arith.constant 0 : i32
    %c0_i32_0 = arith.constant 0 : i32
    %c0_i32_1 = arith.constant 0 : i32
    return %c0_i32, %c0_i32_0 : i32, i32
  }
  func.func @transform_6(%arg0: i32) -> (i32, i32) {
    %c0_i32 = arith.constant 0 : i32
    %c0_i32_0 = arith.constant 0 : i32
    return %arg0, %c0_i32 : i32, i32
  }
  func.func @transform_7(%arg0: i32) -> (i32, i32, i32) {
    %c0_i32 = arith.constant 0 : i32
    %c0_i32_0 = arith.constant 0 : i32
    %c0_i32_1 = arith.constant 0 : i32
    return %arg0, %c0_i32, %c0_i32_0 : i32, i32, i32
  }
}

</mosaic_0001>

<bundles_post_ra>
// kernel: multi_kmeans_forward.7
= control target key start
LH: loop header
LB: loop body
LE: loop exit
PB: predicated region body
PF: predicated region fallthrough
CT: control target
= control target key end

     0   :  { %vm58_vm0 = vcmask 261120   ;;  %s919_s28 = smov 64   ;;  %s920_s29 = smov 96   ;;  %vm112_vm1 = vcmask 130048   ;;  %vm199_vm6 = vcmask 122880   ;;  %s1500_s2 = inlined_call_operand.vmem [shape: f32[16,128], index: 2, kind: input, shape index: {}]   ;;  %s1501_s4 = inlined_call_operand.vmem [shape: f32[4,16,32], index: 4, kind: input, shape index: {}]   ;;  %s1502_s3 = inlined_call_operand.vmem [shape: f32[16,64], index: 3, kind: input, shape index: {}]   ;;  %s1503_s5 = inlined_call_operand.vmem [shape: f32[4,16], index: 5, kind: input, shape index: {}]   ;;  %s1504_s0 = inlined_call_operand.<no memory space> [shape: f32[1], index: 0, kind: input, shape index: {}]   ;;  %s1505_s1 = inlined_call_operand.<no memory space> [shape: s32[1], index: 1, kind: input, shape index: {}]   ;;  %s1506_s7 = inlined_call_operand.vmem [shape: f32[1,6,16], index: 7, kind: output, shape index: {1}]   ;;  %s1507_s6 = inlined_call_operand.vmem [shape: s32[16,4], index: 6, kind: output, shape index: {0}]  }
   0x1   :  { %v428_v0 = vld [vmem:[%s1500_s2] sm:$0xff]  ;;  %v44_v1 = vld [vmem:[%s1501_s4 + $0x8] sm:$0xff]  ;;  %s921_s9 = smov 32   ;;  %v46_v9 = vld [vmem:[%s1501_s4 + $0x18] sm:$0xff]  ;;  %s922_s25 = smov 112   ;;  %v1046_v45 = vstv %s1504_s0 }
   0x2   :  { %448 = vrot.lane.b32.xlu0 %v428_v0, %s919_s28  ;;  %253 = vrot.lane.b32.xlu1 %v428_v0, %s920_s29  ;;  %v429_v2 = vld [vmem:[%s1500_s2 + $0x8] sm:$0xff]  ;;  %v43_v3 = vld [vmem:[%s1501_s4] sm:$0xff]  ;;  %v430_v5 = vmul.f32 %v428_v0, %v428_v0  ;;  %s923_s30 = smov 80  }
   0x3   :  { %833 = vmatpush.xpose.msk.msra.mxu0 %vm58_vm0, %v44_v1  ;;  %645 = vrot.lane.b32.xlu2 %v429_v2, %s921_s9  ;;  %v431_v4 = vmul.f32 %v429_v2, %v429_v2  ;;  %v48_v8 = vld [vmem:[%s1501_s4 + $0x28] sm:$0xff]  ;;  %v47_v10 = vld [vmem:[%s1501_s4 + $0x20] sm:$0xff]  ;;  %v45_v11 = vld [vmem:[%s1501_s4 + $0x10] sm:$0xff] }
   0x4   :  { %v59_v7 = vsel %vm58_vm0, %v430_v5, 0.0  ;;  %841 = vmatpush.xpose.msk.msra.mxu2 %vm58_vm0, %v48_v8  ;;  %837 = vmatpush.xpose.msk.msra.mxu1 %vm58_vm0, %v46_v9  ;;  %v50_v12 = vld [vmem:[%s1501_s4 + $0x38] sm:$0xff]  ;;  %v49_v13 = vld [vmem:[%s1501_s4 + $0x30] sm:$0xff]  ;;  %v1018_v14 = vld [vmem:[%s1502_s3] sm:$0xff] }
   0x5   :  { %v62_v6 = vsel %vm58_vm0, %v431_v4, 0.0  ;;  %845 = vmatpush.xpose.msk.msra.mxu3 %vm58_vm0, %v50_v12  ;;  %v1033_v29 = vld [vmem:[%s1503_s5] sm:$0xf]  ;;  %v1067_v52 = vld [vmem:[%s1502_s3 + $0x8] sm:$0xff] }
   0x6   :  { %v104_v32 = vperm.slane %v1033_v29, 0  ;;  %v489_v1 = vperm.slane %v1033_v29, 2 }
   0x7   :  { %834 = vmatpush.xpose.msk.msra.mxu0 %vm58_vm0, %v43_v3 }
   0x8   :  { %842 = vmatpush.xpose.msk.msra.mxu2 %vm58_vm0, %v47_v10  ;;  %838 = vmatpush.xpose.msk.msra.mxu1 %vm58_vm0, %v45_v11 }
   0x9   :  { %846 = vmatpush.xpose.msk.msra.mxu3 %vm58_vm0, %v49_v13 }
   0xa   :  { %643 = vrot.lane.b32.xlu0 %v428_v0, %s921_s9  ;;  %450 = vrot.lane.b32.xlu1 %v429_v2, %s919_s28 }
   0xb   :  { %835 = vmatmul.msk.f32.vlgmr.msra.gmra.mxu0 %vm58_vm0, %v428_v0  ;;  %255 = vrot.lane.b32.xlu2 %v429_v2, %s920_s29  ;;  %v294_v0 = vperm.slane %v1033_v29, 1 }
  0x13   :  { %836 = vmatmul.msk.f32.gmra.mxu0 %vm58_vm0, %v429_v2  ;;  %241 = vrot.lane.b32.xlu2 %v431_v4, %s920_s29 }
  0x1b   :  { %631 = vrot.lane.b32.xlu2 %v431_v4, %s921_s9 }
  0x34   :  { %63 = vadd.xlane.f32.xlu1 %v62_v6  ;;  %60 = vadd.xlane.f32.xlu0 %v59_v7 }
  0x48   :  { %434 = vrot.lane.b32.xlu0 %v430_v5, %s919_s28 }
  0x4d   :  { %239 = vrot.lane.b32.xlu1 %v430_v5, %s920_s29 }
  0x50   :  { %629 = vrot.lane.b32.xlu0 %v430_v5, %s921_s9  ;;  %v684_v5 = vperm.slane %v1033_v29, 3 }
  0x55   :  { %436 = vrot.lane.b32.xlu1 %v431_v4, %s919_s28 }
  0x58   :  { %333 = vrot.lane.b32.xlu0 %v1018_v14, %s922_s25 }
  0x5d   :  { %v646_v19 = vpop.permute.xlu2 %645 }
  0x65   :  { %v256_v20 = vpop.permute.xlu2 %255 }
  0x6d   :  { %v242_v21 = vpop.permute.xlu2 %241 }
  0x6e   :  { %v248_v22 = vsel %vm58_vm0, %v242_v21, 0.0 }
  0x74   :  { %v449_v15 = vpop.permute.xlu0 %448  ;;  %v254_v16 = vpop.permute.xlu1 %253 }
  0x75   :  { %843 = vmatmul.msk.f32.vlgmr.msra.gmra.mxu2 %vm58_vm0, %v449_v15  ;;  %839 = vmatmul.msk.f32.vlgmr.msra.gmra.mxu1 %vm58_vm0, %v254_v16  ;;  %v632_v30 = vpop.permute.xlu2 %631 }
  0x76   :  { %v638_v36 = vsel %vm58_vm0, %v632_v30, 0.0 }
  0x7c   :  { %v644_v17 = vpop.permute.xlu0 %643  ;;  %v451_v18 = vpop.permute.xlu1 %450 }
  0x7d   :  { %847 = vmatmul.msk.f32.vlgmr.msra.gmra.mxu3 %vm58_vm0, %v644_v17  ;;  %844 = vmatmul.msk.f32.gmra.mxu2 %vm58_vm0, %v451_v18 }
  0x7e   :  { %840 = vmatmul.msk.f32.gmra.mxu1 %vm58_vm0, %v256_v20 }
  0x7f   :  { %249 = vadd.xlane.f32.xlu1 %v248_v22 }
  0x85   :  { %848 = vmatmul.msk.f32.gmra.mxu3 %vm58_vm0, %v646_v19 }
  0x88   :  { %v94_v24 = vpop.f32.mrf.mxu0 }
  0x89   :  { %v100_v28 = vmul.f32 2.0, %v94_v24 }
  0x90   :  { %v97_v35 = vpop.f32.mrf.mxu0 }
  0x91   :  { %v101_v40 = vmul.f32 2.0, %v97_v35 }
  0xa7   :  { %v61_v23 = vpop.xlane.xlu0 %60  ;;  %v64_v25 = vpop.xlane.xlu1 %63 }
  0xa8   :  { %v102_v33 = vadd.f32 %v100_v28, %v61_v23  ;;  %v103_v43 = vadd.f32 %v101_v40, %v64_v25 }
  0xaa   :  { %v1039_v39 = vadd.f32 %v104_v32, %v102_v33  ;;  %v1048_v46 = vadd.f32 %v104_v32, %v103_v43 }
  0xac   :  { %v107_v42 = vmax.f32 %v1039_v39, 0.0  ;;  %v108_v48 = vmax.f32 %v1048_v46, 0.0 }
  0xae   :  { %v110_v47 = vmul.f32 %v1046_v45, %v107_v42  ;;  %v1058_v50 = vmul.f32 %v1046_v45, %v108_v48 }
  0xb0   :  { %v113_v49 = vsel %vm112_vm1, %v110_v47, -inf  ;;  %v116_v51 = vsel %vm112_vm1, %v1058_v50, -inf }
  0xba   :  { %v435_v26 = vpop.permute.xlu0 %434 }
  0xbb   :  { %v440_v27 = vsel %vm58_vm0, %v435_v26, 0.0 }
  0xbc   :  { %441 = vadd.xlane.f32.xlu0 %v440_v27 }
  0xbf   :  { %v240_v31 = vpop.permute.xlu1 %239 }
  0xc0   :  { %v245_v34 = vsel %vm58_vm0, %v240_v31, 0.0 }
  0xc1   :  { %246 = vadd.xlane.f32.xlu2 %v245_v34 }
  0xc2   :  { %v630_v37 = vpop.permute.xlu0 %629 }
  0xc3   :  { %v635_v38 = vsel %vm58_vm0, %v630_v37, 0.0 }
  0xc4   :  { %639 = vadd.xlane.f32.xlu0 %v638_v36  ;;  %636 = vadd.xlane.f32.xlu1 %v635_v38 }
  0xc7   :  { %v437_v41 = vpop.permute.xlu1 %436 }
  0xc8   :  { %v443_v44 = vsel %vm58_vm0, %v437_v41, 0.0 }
  0xc9   :  { %444 = vadd.xlane.f32.xlu2 %v443_v44 }
  0xca   :  { %v1075_v54 = vpop.permute.xlu0 %333 }
  0xd1   :  { %114 = vmax.xlane.f32.xlu2 %v113_v49 }
  0xd8   :  { %530 = vrot.lane.b32.xlu0 %v1067_v52, %s920_s29 }
  0xd9   :  { %117 = vmax.xlane.f32.xlu2 %v116_v51 }
  0xdd   :  { %528 = vrot.lane.b32.xlu1 %v1018_v14, %s920_s29 }
  0xf1   :  { %335 = vrot.lane.b32.xlu2 %v1067_v52, %s922_s25 }
  0xf2   :  { %v284_v53 = vpop.f32.mrf.mxu1  ;;  %v250_v55 = vpop.xlane.xlu1 %249 }
  0xf3   :  { %v290_v59 = vmul.f32 2.0, %v284_v53 }
  0xf8   :  { %v479_v56 = vpop.f32.mrf.mxu2 }
  0xf9   :  { %723 = vrot.lane.b32.xlu2 %v1018_v14, %s923_s30  ;;  %v485_v60 = vmul.f32 2.0, %v479_v56 }
  0xfb   :  { %v287_v57 = vpop.f32.mrf.mxu1 }
  0xfc   :  { %v291_v62 = vmul.f32 2.0, %v287_v57 }
  0xfe   :  { %v293_v9 = vadd.f32 %v291_v62, %v250_v55 }
 0x100   :  { %v674_v61 = vpop.f32.mrf.mxu3  ;;  %v482_v8 = vpop.f32.mrf.mxu2  ;;  %v1090_v17 = vadd.f32 %v294_v0, %v293_v9 }
 0x101   :  { %v680_v4 = vmul.f32 2.0, %v674_v61  ;;  %v486_v15 = vmul.f32 2.0, %v482_v8 }
 0x102   :  { %v298_v25 = vmax.f32 %v1090_v17, 0.0 }
 0x104   :  { %v300_v32 = vmul.f32 %v298_v25, %v1046_v45 }
 0x106   :  { %v304_v38 = vsel %vm112_vm1, %v300_v32, -inf }
 0x108   :  { %v677_v24 = vpop.f32.mrf.mxu3 }
 0x109   :  { %v681_v30 = vmul.f32 2.0, %v677_v24 }
 0x12f   :  { %v442_v58 = vpop.xlane.xlu0 %441 }
 0x130   :  { %v487_v2 = vadd.f32 %v485_v60, %v442_v58 }
 0x132   :  { %v1082_v11 = vadd.f32 %v489_v1, %v487_v2 }
 0x134   :  { %v247_v63 = vpop.xlane.xlu2 %246  ;;  %v492_v20 = vmax.f32 %v1082_v11, 0.0 }
 0x135   :  { %v292_v3 = vadd.f32 %v290_v59, %v247_v63 }
 0x136   :  { %v494_v28 = vmul.f32 %v492_v20, %v1046_v45 }
 0x137   :  { %v1080_v6 = vadd.f32 %v294_v0, %v292_v3  ;;  %v637_v7 = vpop.xlane.xlu1 %636  ;;  %v640_v29 = vpop.xlane.xlu0 %639 }
 0x138   :  { %v682_v10 = vadd.f32 %v680_v4, %v637_v7  ;;  %v683_v33 = vadd.f32 %v681_v30, %v640_v29  ;;  %v496_v36 = vsel %vm112_vm1, %v494_v28, -inf }
 0x139   :  { %v297_v12 = vmax.f32 %v1080_v6, 0.0 }
 0x13a   :  { %v1085_v13 = vadd.f32 %v684_v5, %v682_v10  ;;  %v1117_v40 = vadd.f32 %v684_v5, %v683_v33 }
 0x13b   :  { %v299_v16 = vmul.f32 %v297_v12, %v1046_v45 }
 0x13c   :  { %v687_v18 = vmax.f32 %v1085_v13, 0.0  ;;  %v445_v19 = vpop.xlane.xlu2 %444 }
 0x13d   :  { %v488_v21 = vadd.f32 %v486_v15, %v445_v19  ;;  %v301_v22 = vsel %vm112_vm1, %v299_v16, -inf }
 0x13e   :  { %302 = vmax.xlane.f32.xlu1 %v301_v22  ;;  %v689_v23 = vmul.f32 %v687_v18, %v1046_v45  ;;  %v30_v22 = vlaneseq }
 0x13f   :  { %v1100_v27 = vadd.f32 %v489_v1, %v488_v21 }
 0x140   :  { %v691_v26 = vsel %vm112_vm1, %v689_v23, -inf  ;;  %v1182_v29 = vand.u32 127, %v30_v22 }
 0x141   :  { %692 = vmax.xlane.f32.xlu0 %v691_v26  ;;  %v493_v34 = vmax.f32 %v1100_v27, 0.0 }
 0x143   :  { %v495_v43 = vmul.f32 %v493_v34, %v1046_v45 }
 0x144   :  { %v115_v31 = vpop.xlane.xlu2 %114 }
 0x145   :  { %v1109_v35 = vsub.f32 %v110_v47, %v115_v31  ;;  %v688_v47 = vmax.f32 %v1117_v40, 0.0 }
 0x146   :  { %497 = vmax.xlane.f32.xlu1 %v496_v36 }
 0x147   :  { %v1114_v37 = vadd.f32 %v1018_v14, %v1109_v35  ;;  %v499_v14 = vsel %vm112_vm1, %v495_v43, -inf  ;;  %v1133_v53 = vmul.f32 %v688_v47, %v1046_v45  ;;  %v121_v57 = vmul.f32 1.442695, %v1109_v35 }
 0x149   :  { %305 = vmax.xlane.f32.xlu0 %v304_v38  ;;  %v145_v41 = vsel %vm112_vm1, %v1114_v37, -inf  ;;  %v694_v55 = vsel %vm112_vm1, %v1133_v53, -inf }
 0x14a   :  { %146 = vmax.xlane.f32.xlu2 %v145_v41  ;;  %v1154_v62 = vpop.permute.xlu0 %530 }
 0x14c   :  { %v118_v44 = vpop.xlane.xlu2 %117 }
 0x14d   :  { %v1126_v49 = vsub.f32 %v1058_v50, %v118_v44 }
 0x14e   :  { %500 = vmax.xlane.f32.xlu1 %v499_v14 }
 0x14f   :  { %v123_v51 = vmul.f32 1.442695, %v1126_v49  ;;  %v1150_v59 = vadd.f32 %v1067_v52, %v1126_v49  ;;  %v529_v61 = vpop.permute.xlu1 %528 }
 0x151   :  { %871 = vpow2.f32 %v123_v51  ;;  %v148_v60 = vsel %vm112_vm1, %v1150_v59, -inf }
 0x152   :  { %873 = vpow2.f32 %v121_v57 }
 0x154   :  { %v336_v63 = vpop.permute.xlu2 %335 }
 0x156   :  { %695 = vmax.xlane.f32.xlu1 %v694_v55 }
 0x157   :  { %v1137_v56 = vpop.eup %871 }
 0x158   :  { %v128_v50 = vsel %vm112_vm1, %v1137_v56, 0.0  ;;  %v1144_v58 = vpop.eup %873 }
 0x159   :  { %v125_v45 = vsel %vm112_vm1, %v1144_v58, 0.0 }
 0x15c   :  { %v724_v7 = vpop.permute.xlu2 %723 }
 0x15d   :  { %725 = vrot.lane.b32.xlu0 %v1067_v52, %s923_s30 }
 0x15e   :  { %129 = vadd.xlane.f32.xlu1 %v128_v50 }
 0x187   :  { %126 = vadd.xlane.f32.xlu0 %v125_v45 }
 0x18f   :  { %149 = vmax.xlane.f32.xlu0 %v148_v60 }
 0x1b1   :  { %v303_v0 = vpop.xlane.xlu1 %302 }
 0x1b2   :  { %v1156_v1 = vsub.f32 %v299_v16, %v303_v0 }
 0x1b4   :  { %v309_v2 = vmul.f32 1.442695, %v1156_v1  ;;  %v693_v3 = vpop.xlane.xlu0 %692  ;;  %v1161_v4 = vadd.f32 %v1075_v54, %v1156_v1 }
 0x1b5   :  { %v1163_v52 = vsub.f32 %v689_v23, %v693_v3 }
 0x1b6   :  { %875 = vpow2.f32 %v309_v2  ;;  %v341_v5 = vsel %vm112_vm1, %v1161_v4, -inf }
 0x1b7   :  { %342 = vmax.xlane.f32.xlu2 %v341_v5  ;;  %v699_v8 = vmul.f32 1.442695, %v1163_v52 }
 0x1b9   :  { %v498_v9 = vpop.xlane.xlu1 %497  ;;  %877 = vpow2.f32 %v699_v8 }
 0x1ba   :  { %v1168_v10 = vsub.f32 %v494_v28, %v498_v9 }
 0x1bc   :  { %v1170_v15 = vpop.eup %875  ;;  %v504_v16 = vmul.f32 1.442695, %v1168_v10  ;;  %v306_v19 = vpop.xlane.xlu0 %305 }
 0x1bd   :  { %v1173_v54 = vsub.f32 %v300_v32, %v306_v19  ;;  %v313_v21 = vsel %vm112_vm1, %v1170_v15, 0.0  ;;  %v147_v24 = vpop.xlane.xlu2 %146 }
 0x1be   :  { %879 = vpow2.f32 %v504_v16  ;;  %vm151_vm2 = vcmp.ge.f32.partialorder %v1114_v37, %v147_v24  ;;  %v1201_v37 = vadd.f32 %v529_v61, %v1168_v10  ;;  %v31_v24 = vshrl.u32 %v30_v22, 7 }
 0x1bf   :  { %314 = vadd.xlane.f32.xlu2 %v313_v21  ;;  %v1178_v23 = vadd.f32 %v336_v63, %v1173_v54  ;;  %v1186_v31 = vpop.eup %877  ;;  %v153_v36 = vsel %vm151_vm2, %v1182_v29, 16  ;;  %v311_v14 = vmul.f32 1.442695, %v1173_v54  ;;  %v1217_v63 = vadd.f32 %v724_v7, %v1163_v52 }
 0x1c0   :  { %v703_v38 = vsel %vm112_vm1, %v1186_v31, 0.0  ;;  %v1196_v41 = vsel %vm112_vm1, %v153_v36, 2147483647  ;;  %v536_v57 = vsel %vm112_vm1, %v1201_v37, -inf }
 0x1c1   :  { %v501_v26 = vpop.xlane.xlu1 %500  ;;  %v344_v28 = vsel %vm112_vm1, %v1178_v23, -inf  ;;  %v157_v51 = vshra.s32 %v1196_v41, 16  ;;  %v731_v3 = vsel %vm112_vm1, %v1217_v63, -inf }
 0x1c2   :  { %v1184_v30 = vsub.f32 %v495_v43, %v501_v26  ;;  %345 = vmax.xlane.f32.xlu1 %v344_v28  ;;  %v32_v26 = vadd.s32 8, %v31_v24  ;;  %v36_v28 = vstv %s1505_s1 }
 0x1c3   :  { %v1214_v61 = vcvt.s32.f32 %v157_v51  ;;  %vm37_vm4 = vcmp.lt.s32.totalorder %v31_v24, %v36_v28 }
 0x1c4   :  { %v506_v32 = vmul.f32 1.442695, %v1184_v30  ;;  %v1190_v33 = vpop.eup %879  ;;  %v1238_v16 = vadd.f32 %v1154_v62, %v1184_v30  ;;  %vm38_vm3 = vcmp.lt.s32.totalorder %v32_v26, %v36_v28 }
 0x1c5   :  { %v508_v43 = vsel %vm112_vm1, %v1190_v33, 0.0 }
 0x1c6   :  { %881 = vpow2.f32 %v506_v32  ;;  %v539_v19 = vsel %vm112_vm1, %v1238_v16, -inf }
 0x1c7   :  { %704 = vadd.xlane.f32.xlu2 %v703_v38  ;;  %883 = vpow2.f32 %v311_v14  ;;  %v924_v14 = vmov 0.0  }
 0x1c8   :  { %v1246_v51 = vsel %vm38_vm3, 1.0, %v924_v14 }
 0x1c9   :  { %v696_v55 = vpop.xlane.xlu1 %695 }
 0x1ca   :  { %509 = vadd.xlane.f32.xlu1 %v508_v43  ;;  %v1212_v60 = vsub.f32 %v1133_v53, %v696_v55 }
 0x1cc   :  { %v1203_v44 = vpop.eup %881  ;;  %v701_v2 = vmul.f32 1.442695, %v1212_v60 }
 0x1cd   :  { %v511_v50 = vsel %vm112_vm1, %v1203_v44, 0.0  ;;  %v1226_v5 = vpop.eup %883 }
 0x1ce   :  { %512 = vadd.xlane.f32.xlu0 %v511_v50  ;;  %885 = vpow2.f32 %v701_v2  ;;  %v316_v7 = vsel %vm112_vm1, %v1226_v5, 0.0  ;;  %v1249_v50 = vsel %vm37_vm4, 1.0, %v924_v14  ;;  %vm185_vm4 = vcmp.eq.s32.totalorder %v1182_v29, 0 }
 0x1cf   :  { %v726_v45 = vpop.permute.xlu0 %725  ;;  %537 = vmax.xlane.f32.xlu2 %v536_v57 }
 0x1d0   :  { %v1220_v0 = vadd.f32 %v726_v45, %v1212_v60 }
 0x1d1   :  { %v130_v21 = vpop.xlane.xlu1 %129 }
 0x1d2   :  { %160 = vmin.xlane.f32.xlu1 %v1214_v61  ;;  %v734_v53 = vsel %vm112_vm1, %v1220_v0, -inf  ;;  %887 = vrcp.f32 %v130_v21 }
 0x1d3   :  { %889 = vlog2.f32 %v130_v21 }
 0x1d4   :  { %v1232_v8 = vpop.eup %885 }
 0x1d5   :  { %v706_v9 = vsel %vm112_vm1, %v1232_v8, 0.0 }
 0x1d6   :  { %732 = vmax.xlane.f32.xlu0 %v731_v3 }
 0x1d7   :  { %735 = vmax.xlane.f32.xlu2 %v734_v53 }
 0x1d8   :  { %v888_v32 = vpop.eup %887 }
 0x1d9   :  { %v890_v36 = vpop.eup %889  ;;  %v134_v62 = vmul.f32 %v888_v32, %v1137_v56 }
 0x1da   :  { %317 = vadd.xlane.f32.xlu1 %v316_v7  ;;  %v138_v43 = vmul.f32 0.6931472, %v890_v36 }
 0x1db   :  { %v189_v57 = vmul.f32 %v1246_v51, %v134_v62 }
 0x1dc   :  { %v140_v55 = vsub.f32 %v1126_v49, %v138_v43 }
 0x1dd   :  { %v218_v14 = vmul.f32 %v189_v57, %v108_v48 }
 0x1de   :  { %v202_v49 = vmul.f32 %v189_v57, %v140_v55 }
 0x1e2   :  { %707 = vadd.xlane.f32.xlu1 %v706_v9 }
 0x1ea   :  { %540 = vmax.xlane.f32.xlu1 %v539_v19 }
 0x1fa   :  { %v127_v38 = vpop.xlane.xlu0 %126 }
 0x1fb   :  { %891 = vrcp.f32 %v127_v38 }
 0x1fc   :  { %893 = vlog2.f32 %v127_v38  ;;  %v204_v38 = vsel %vm112_vm1, %v202_v49, 0.0 }
 0x201   :  { %v892_v22 = vpop.eup %891 }
 0x202   :  { %v894_v45 = vpop.eup %893  ;;  %v133_v2 = vmul.f32 %v892_v22, %v1144_v58  ;;  %v150_v3 = vpop.xlane.xlu0 %149  ;;  %v191_v58 = vsel %vm112_vm1, %v189_v57, 0.0 }
 0x203   :  { %v136_v53 = vmul.f32 0.6931472, %v894_v45  ;;  %vm152_vm5 = vcmp.ge.f32.partialorder %v1150_v59, %v150_v3 }
 0x204   :  { %v154_v56 = vsel %vm152_vm5, %v1182_v29, 16  ;;  %v188_v7 = vmul.f32 %v1249_v50, %v133_v2  ;;  %v220_v2 = vsel %vm112_vm1, %v218_v14, 0.0  ;;  %vm381_vm5 = vcmp.eq.s32.totalorder %v1182_v29, 1 }
 0x205   :  { %v139_v9 = vsub.f32 %v1109_v35, %v136_v53  ;;  %v1258_v19 = vsel %vm112_vm1, %v154_v56, 2147483647 }
 0x206   :  { %v172_v21 = vshra.s32 %v1258_v19, 16  ;;  %v190_v24 = vsel %vm112_vm1, %v188_v7, 0.0  ;;  %v217_v35 = vmul.f32 %v188_v7, %v107_v42 }
 0x207   :  { %v192_v26 = vadd.f32 %v191_v58, %v190_v24  ;;  %v201_v28 = vmul.f32 %v188_v7, %v139_v9 }
 0x208   :  { %v1263_v32 = vcvt.s32.f32 %v172_v21  ;;  %v219_v55 = vsel %vm112_vm1, %v217_v35, 0.0 }
 0x209   :  { %v193_v59 = vrot.slane %v192_v26, 4  ;;  %v203_v36 = vsel %vm112_vm1, %v201_v28, 0.0  ;;  %v221_v3 = vadd.f32 %v220_v2, %v219_v55 }
 0x20a   :  { %175 = vmin.xlane.f32.xlu2 %v1263_v32  ;;  %v205_v62 = vadd.f32 %v204_v38, %v203_v36 }
 0x20b   :  { %v194_v43 = vadd.f32 %v193_v59, %v192_v26  ;;  %v156_v59 = vand.u32 65535, %v1196_v41 }
 0x20c   :  { %206 = vadd.xlane.f32.xlu0 %v205_v62 }
 0x20d   :  { %v195_v22 = vrot.slane %v194_v43, 2 }
 0x20f   :  { %v196_v45 = vadd.f32 %v195_v22, %v194_v43  ;;  %v158_v22 = vcvt.s32.f32 %v156_v59 }
 0x211   :  { %v197_v53 = vrot.slane %v196_v45, 1 }
 0x212   :  { %222 = vadd.xlane.f32.xlu2 %v221_v3 }
 0x213   :  { %v198_v39 = vadd.f32 %v197_v53, %v196_v45 }
 0x215   :  { %200 = vst.msk [vmem:[%s1506_s7] sm:$0x1] %vm199_vm6, %v198_v39 }
 0x22a   :  { %v343_v42 = vpop.xlane.xlu2 %342 }
 0x22b   :  { %vm347_vm7 = vcmp.ge.f32.partialorder %v1161_v4, %v343_v42 }
 0x22c   :  { %v349_v46 = vsel %vm347_vm7, %v1182_v29, 16  ;;  %vm576_vm7 = vcmp.eq.s32.totalorder %v1182_v29, 2 }
 0x22d   :  { %v1281_v48 = vsel %vm112_vm1, %v349_v46, 2147483647 }
 0x22e   :  { %v353_v57 = vshra.s32 %v1281_v48, 16 }
 0x230   :  { %v1284_v56 = vcvt.s32.f32 %v353_v57 }
 0x232   :  { %356 = vmin.xlane.f32.xlu1 %v1284_v56  ;;  %v1287_v7 = vpop.xlane.xlu2 %314 }
 0x235   :  { %v346_v9 = vpop.xlane.xlu1 %345 }
 0x236   :  { %vm348_vm8 = vcmp.ge.f32.partialorder %v1178_v23, %v346_v9 }
 0x237   :  { %v350_v49 = vsel %vm348_vm8, %v1182_v29, 16 }
 0x238   :  { %v1292_v4 = vsel %vm112_vm1, %v350_v49, 2147483647 }
 0x239   :  { %v368_v21 = vshra.s32 %v1292_v4, 16 }
 0x23a   :  { %v1295_v24 = vpop.xlane.xlu2 %704 }
 0x23b   :  { %v1297_v58 = vcvt.s32.f32 %v368_v21 }
 0x23d   :  { %v510_v26 = vpop.xlane.xlu1 %509  ;;  %371 = vmin.xlane.f32.xlu1 %v1297_v58 }
 0x23e   :  { %895 = vrcp.f32 %v510_v26 }
 0x23f   :  { %897 = vlog2.f32 %v510_v26 }
 0x241   :  { %v513_v28 = vpop.xlane.xlu0 %512 }
 0x242   :  { %899 = vrcp.f32 %v513_v28  ;;  %v538_v23 = vpop.xlane.xlu2 %537 }
 0x243   :  { %901 = vlog2.f32 %v513_v28  ;;  %vm542_vm9 = vcmp.ge.f32.partialorder %v1201_v37, %v538_v23 }
 0x244   :  { %v896_v36 = vpop.eup %895  ;;  %v544_v38 = vsel %vm542_vm9, %v1182_v29, 16  ;;  %903 = vrcp.f32 %v1287_v7  ;;  %vm818_vm9 = vcmask 31744  }
 0x245   :  { %v898_v35 = vpop.eup %897  ;;  %v516_v62 = vmul.f32 %v896_v36, %v1190_v33  ;;  %v1305_v43 = vsel %vm112_vm1, %v544_v38, 2147483647  ;;  %v1307_v14 = vpop.xlane.xlu1 %160  ;;  %905 = vrcp.f32 %v1295_v24 }
 0x246   :  { %v519_v55 = vmul.f32 0.6931472, %v898_v35  ;;  %vm162_vm10 = vcmp.eq.f32.partialorder %v1214_v61, %v1307_v14  ;;  %v548_v41 = vshra.s32 %v1305_v43, 16 }
 0x247   :  { %v163_v45 = vsel %vm162_vm10, %v158_v22, inf  ;;  %v1317_v3 = vmul.f32 %v1249_v50, %v516_v62 }
 0x248   :  { %v900_v37 = vpop.eup %899  ;;  %v522_v2 = vsub.f32 %v1168_v10, %v519_v55  ;;  %164 = vmin.xlane.f32.xlu0 %v163_v45  ;;  %v1314_v33 = vcvt.s32.f32 %v548_v41 }
 0x249   :  { %v902_v53 = vpop.eup %901  ;;  %v517_v39 = vmul.f32 %v900_v37, %v1203_v44  ;;  %v581_v9 = vsel %vm112_vm1, %v1317_v3, 0.0 }
 0x24a   :  { %v521_v42 = vmul.f32 0.6931472, %v902_v53  ;;  %551 = vmin.xlane.f32.xlu2 %v1314_v33  ;;  %v591_v57 = vmul.f32 %v1317_v3, %v522_v2  ;;  %v904_v49 = vpop.eup %903 }
 0x24b   :  { %v1322_v61 = vmul.f32 %v1246_v51, %v517_v39  ;;  %v321_v23 = vmul.f32 %v904_v49, %v1170_v15  ;;  %v906_v35 = vpop.eup %905 }
 0x24c   :  { %v523_v46 = vsub.f32 %v1184_v30, %v521_v42  ;;  %v593_v30 = vsel %vm112_vm1, %v591_v57, 0.0  ;;  %v711_v2 = vmul.f32 %v906_v35, %v1186_v31 }
 0x24d   :  { %v1327_v10 = vpop.xlane.xlu1 %317  ;;  %v582_v44 = vsel %vm112_vm1, %v1322_v61, 0.0  ;;  %v1340_v45 = vmul.f32 %v1249_v50, %v321_v23 }
 0x24e   :  { %907 = vrcp.f32 %v1327_v10  ;;  %v583_v21 = vadd.f32 %v582_v44, %v581_v9  ;;  %v592_v26 = vmul.f32 %v1322_v61, %v523_v46  ;;  %v774_v57 = vmul.f32 %v1249_v50, %v711_v2 }
 0x24f   :  { %v386_v42 = vsel %vm112_vm1, %v1340_v45, 0.0 }
 0x250   :  { %v584_v28 = vrot.slane %v583_v21, 4  ;;  %v594_v59 = vsel %vm112_vm1, %v592_v26, 0.0  ;;  %v802_v50 = vmul.f32 %v774_v57, %v687_v18 }
 0x251   :  { %v595_v36 = vadd.f32 %v594_v59, %v593_v30 }
 0x252   :  { %v585_v38 = vadd.f32 %v584_v28, %v583_v21  ;;  %v804_v13 = vsel %vm112_vm1, %v802_v50, 0.0 }
 0x253   :  { %596 = vadd.xlane.f32.xlu2 %v595_v36 }
 0x254   :  { %v908_v62 = vpop.eup %907  ;;  %v586_v22 = vrot.slane %v585_v38, 2 }
 0x255   :  { %v322_v55 = vmul.f32 %v908_v62, %v1226_v5  ;;  %v708_v41 = vpop.xlane.xlu1 %707 }
 0x256   :  { %v587_v37 = vadd.f32 %v586_v22, %v585_v38  ;;  %909 = vrcp.f32 %v708_v41 }
 0x257   :  { %v1344_v53 = vmul.f32 %v1246_v51, %v322_v55  ;;  %911 = vlog2.f32 %v708_v41 }
 0x258   :  { %v588_v15 = vrot.slane %v587_v37, 1  ;;  %913 = vlog2.f32 %v1295_v24 }
 0x259   :  { %v387_v39 = vsel %vm112_vm1, %v1344_v53, 0.0  ;;  %v413_v22 = vmul.f32 %v1344_v53, %v298_v25  ;;  %915 = vlog2.f32 %v1327_v10  ;;  %v1402_v10 = vpop.xlane.xlu2 %735 }
 0x25a   :  { %v589_v46 = vadd.f32 %v588_v15, %v587_v37  ;;  %v388_v5 = vadd.f32 %v387_v39, %v386_v42  ;;  %v412_v15 = vmul.f32 %v1340_v45, %v297_v12  ;;  %917 = vlog2.f32 %v1287_v7 }
 0x25b   :  { %v415_v17 = vsel %vm112_vm1, %v413_v22, 0.0  ;;  %vm738_vm2 = vcmp.ge.f32.partialorder %v1220_v0, %v1402_v10 }
 0x25c   :  { %v910_v9 = vpop.eup %909  ;;  %v389_v44 = vrot.slane %v388_v5, 4  ;;  %590 = vst.msk [vmem:[%s1506_s7 + $0x2] sm:$0x1] %vm199_vm6, %v589_v46 }
 0x25d   :  { %v712_v31 = vmul.f32 %v910_v9, %v1232_v8  ;;  %v541_v49 = vpop.xlane.xlu1 %540  ;;  %v912_v23 = vpop.eup %911  ;;  %v776_v8 = vsel %vm112_vm1, %v774_v57, 0.0  ;;  %v414_v9 = vsel %vm112_vm1, %v412_v15, 0.0 }
 0x25e   :  { %vm543_vm11 = vcmp.ge.f32.partialorder %v1238_v16, %v541_v49  ;;  %v390_v21 = vadd.f32 %v389_v44, %v388_v5  ;;  %v716_v55 = vmul.f32 0.6931472, %v912_v23  ;;  %v733_v44 = vpop.xlane.xlu0 %732  ;;  %v416_v6 = vadd.f32 %v415_v17, %v414_v9 }
 0x25f   :  { %v545_v26 = vsel %vm543_vm11, %v1182_v29, 16  ;;  %v775_v28 = vmul.f32 %v1246_v51, %v712_v31  ;;  %v914_v51 = vpop.eup %913  ;;  %vm737_vm12 = vcmp.ge.f32.partialorder %v1217_v63, %v733_v44 }
 0x260   :  { %v1363_v30 = vsel %vm112_vm1, %v545_v26, 2147483647  ;;  %v391_v59 = vrot.slane %v390_v21, 2  ;;  %v714_v40 = vmul.f32 0.6931472, %v914_v51  ;;  %v718_v42 = vsub.f32 %v1212_v60, %v716_v55  ;;  %v916_v50 = vpop.eup %915 }
 0x261   :  { %v563_v24 = vshra.s32 %v1363_v30, 16  ;;  %v777_v36 = vsel %vm112_vm1, %v775_v28, 0.0  ;;  %v803_v16 = vmul.f32 %v775_v28, %v688_v47  ;;  %v918_v7 = vpop.eup %917 }
 0x262   :  { %v778_v38 = vadd.f32 %v777_v36, %v776_v8  ;;  %v392_v35 = vadd.f32 %v391_v59, %v390_v21  ;;  %v717_v25 = vsub.f32 %v1163_v52, %v714_v40  ;;  %v787_v12 = vmul.f32 %v775_v28, %v718_v42 }
 0x263   :  { %v1370_v62 = vcvt.s32.f32 %v563_v24  ;;  %v805_v18 = vsel %vm112_vm1, %v803_v16, 0.0  ;;  %v739_v52 = vsel %vm737_vm12, %v1182_v29, 16  ;;  %v324_v23 = vmul.f32 0.6931472, %v918_v7 }
 0x264   :  { %v779_v41 = vrot.slane %v778_v38, 4  ;;  %v806_v37 = vadd.f32 %v805_v18, %v804_v13  ;;  %v393_v2 = vrot.slane %v392_v35, 1  ;;  %v786_v49 = vmul.f32 %v774_v57, %v717_v25 }
 0x265   :  { %566 = vmin.xlane.f32.xlu0 %v1370_v62  ;;  %v789_v21 = vsel %vm112_vm1, %v787_v12, 0.0  ;;  %v1400_v63 = vsel %vm112_vm1, %v739_v52, 2147483647  ;;  %v326_v57 = vmul.f32 0.6931472, %v916_v50  ;;  %v171_v24 = vand.u32 65535, %v1258_v19 }
 0x266   :  { %v780_v47 = vadd.f32 %v779_v41, %v778_v38  ;;  %807 = vadd.xlane.f32.xlu2 %v806_v37  ;;  %v394_v39 = vadd.f32 %v393_v2, %v392_v35  ;;  %v788_v26 = vsel %vm112_vm1, %v786_v49, 0.0  ;;  %v743_v59 = vshra.s32 %v1400_v63, 16 }
 0x267   :  { %v790_v28 = vadd.f32 %v789_v21, %v788_v26  ;;  %v328_v8 = vsub.f32 %v1173_v54, %v326_v57  ;;  %v327_v16 = vsub.f32 %v1156_v1, %v324_v23  ;;  %v173_v35 = vcvt.s32.f32 %v171_v24 }
 0x268   :  { %v781_v46 = vrot.slane %v780_v47, 2  ;;  %395 = vst.msk [vmem:[%s1506_s7 + $0x1] sm:$0x1] %vm199_vm6, %v394_v39  ;;  %v1407_v36 = vcvt.s32.f32 %v743_v59  ;;  %v547_v12 = vand.u32 65535, %v1305_v43  ;;  %v740_v43 = vsel %vm738_vm2, %v1182_v29, 16 }
 0x269   :  { %v397_v18 = vmul.f32 %v1344_v53, %v328_v8  ;;  %v396_v54 = vmul.f32 %v1340_v45, %v327_v16  ;;  %v607_v45 = vmul.f32 %v1317_v3, %v492_v20  ;;  %v367_v3 = vand.u32 65535, %v1292_v4 }
 0x26a   :  { %v782_v5 = vadd.f32 %v781_v46, %v780_v47  ;;  %v549_v52 = vcvt.s32.f32 %v547_v12  ;;  %v1454_v50 = vsel %vm112_vm1, %v740_v43, 2147483647 }
 0x26b   :  { %v399_v55 = vsel %vm112_vm1, %v397_v18, 0.0  ;;  %v398_v37 = vsel %vm112_vm1, %v396_v54, 0.0  ;;  %v609_v25 = vsel %vm112_vm1, %v607_v45, 0.0 }
 0x26c   :  { %v783_v31 = vrot.slane %v782_v5, 1  ;;  %v400_v40 = vadd.f32 %v399_v55, %v398_v37 }
 0x26d   :  { %417 = vadd.xlane.f32.xlu0 %v416_v6  ;;  %v369_v6 = vcvt.s32.f32 %v367_v3 }
 0x26e   :  { %v784_v60 = vadd.f32 %v783_v31, %v782_v5 }
 0x270   :  { %785 = vst.msk [vmem:[%s1506_s7 + $0x3] sm:$0x1] %vm199_vm6, %v784_v60 }
 0x275   :  { %791 = vadd.xlane.f32.xlu0 %v790_v28 }
 0x27d   :  { %746 = vmin.xlane.f32.xlu0 %v1407_v36  ;;  %v1411_v38 = vpop.xlane.xlu2 %175 }
 0x27e   :  { %vm177_vm13 = vcmp.eq.f32.partialorder %v1263_v32, %v1411_v38  ;;  %v608_v32 = vmul.f32 %v1322_v61, %v493_v34  ;;  %v352_v34 = vand.u32 65535, %v1281_v48  ;;  %v167_v48 = vcvt.f32.s32 %v1307_v14 }
 0x27f   :  { %v207_v51 = vpop.xlane.xlu0 %206  ;;  %v178_v13 = vsel %vm177_vm13, %v173_v35, inf  ;;  %v182_v10 = vcvt.f32.s32 %v1411_v38 }
 0x280   :  { %v208_v22 = vrot.slane %v207_v51, 4  ;;  %179 = vmin.xlane.f32.xlu1 %v178_v13  ;;  %v610_v46 = vsel %vm112_vm1, %v608_v32, 0.0  ;;  %v354_v11 = vcvt.s32.f32 %v352_v34  ;;  %v168_v49 = vshll.u32 %v167_v48, 16 }
 0x281   :  { %v611_v5 = vadd.f32 %v610_v46, %v609_v25 }
 0x282   :  { %v209_v19 = vadd.f32 %v208_v22, %v207_v51  ;;  %v183_v51 = vshll.u32 %v182_v10, 16 }
 0x284   :  { %v210_v1 = vrot.slane %v209_v19, 2 }
 0x285   :  { %v223_v41 = vpop.xlane.xlu2 %222 }
 0x286   :  { %v224_v2 = vrot.slane %v223_v41, 4  ;;  %v211_v47 = vadd.f32 %v210_v1, %v209_v19 }
 0x288   :  { %v225_v15 = vadd.f32 %v224_v2, %v223_v41  ;;  %401 = vadd.xlane.f32.xlu1 %v400_v40  ;;  %v212_v53 = vrot.slane %v211_v47, 1 }
 0x28a   :  { %v226_v39 = vrot.slane %v225_v15, 2  ;;  %v213_v42 = vadd.f32 %v212_v53, %v211_v47 }
 0x28c   :  { %849 = vpush %v213_v42  ;;  %v227_v17 = vadd.f32 %v226_v39, %v225_v15 }
 0x28e   :  { %v228_v9 = vrot.slane %v227_v17, 1 }
 0x290   :  { %612 = vadd.xlane.f32.xlu1 %v611_v5  ;;  %v229_v27 = vadd.f32 %v228_v9, %v227_v17 }
 0x292   :  { %851 = vpush %v229_v27 }
 0x2a5   :  { %v1428_v61 = vpop.xlane.xlu1 %356 }
 0x2a6   :  { %vm358_vm14 = vcmp.eq.f32.partialorder %v1284_v56, %v1428_v61  ;;  %v363_v43 = vcvt.f32.s32 %v1428_v61 }
 0x2a7   :  { %v359_v20 = vsel %vm358_vm14, %v354_v11, inf }
 0x2a8   :  { %360 = vmin.xlane.f32.xlu1 %v359_v20 }
 0x2b0   :  { %v1433_v44 = vpop.xlane.xlu1 %371 }
 0x2b1   :  { %vm373_vm15 = vcmp.eq.f32.partialorder %v1297_v58, %v1433_v44  ;;  %v562_v58 = vand.u32 65535, %v1363_v30  ;;  %v742_v30 = vand.u32 65535, %v1400_v63  ;;  %v378_v10 = vcvt.f32.s32 %v1433_v44 }
 0x2b2   :  { %v374_v31 = vsel %vm373_vm15, %v369_v6, inf }
 0x2b3   :  { %375 = vmin.xlane.f32.xlu0 %v374_v31  ;;  %v564_v28 = vcvt.s32.f32 %v562_v58 }
 0x2bb   :  { %v165_v60 = vpop.xlane.xlu0 %164 }
 0x2bc   :  { %v166_v21 = vcvt.f32.s32 %v165_v60 }
 0x2bd   :  { %v1439_v56 = vpop.xlane.xlu2 %551  ;;  %s850_s14 = spop %849 }
 0x2be   :  { %v1441_v26 = vadd.s32 %v168_v49, %v166_v21  ;;  %vm553_vm0 = vcmp.eq.f32.partialorder %v1314_v33, %v1439_v56  ;;  %v758_v33 = vshra.s32 %v1454_v50, 16  ;;  %v558_v61 = vcvt.f32.s32 %v1439_v56 }
 0x2bf   :  { %v554_v4 = vsel %vm553_vm0, %v549_v52, inf }
 0x2c0   :  { %555 = vmin.xlane.f32.xlu1 %v554_v4  ;;  %v1457_v59 = vcvt.s32.f32 %v758_v33 }
 0x2c3   :  { %s852_s15 = spop %851 }
 0x2c4   :  { %v231_v56 = vstv %s852_s15 }
 0x2c6   :  { %v597_v24 = vpop.xlane.xlu2 %596 }
 0x2c7   :  { %v598_v13 = vrot.slane %v597_v24, 4 }
 0x2c9   :  { %v599_v54 = vadd.f32 %v598_v13, %v597_v24  ;;  %v379_v24 = vshll.u32 %v378_v10, 16  ;;  %v559_v13 = vshll.u32 %v558_v61, 16 }
 0x2d8   :  { %v1449_v14 = vpop.xlane.xlu0 %566 }
 0x2d9   :  { %vm568_vm3 = vcmp.eq.f32.partialorder %v1370_v62, %v1449_v14  ;;  %v744_v62 = vcvt.s32.f32 %v742_v30  ;;  %v808_v19 = vpop.xlane.xlu2 %807 }
 0x2da   :  { %v569_v7 = vsel %vm568_vm3, %v564_v28, inf  ;;  %v809_v37 = vrot.slane %v808_v19, 4 }
 0x2db   :  { %570 = vmin.xlane.f32.xlu1 %v569_v7  ;;  %v364_v7 = vshll.u32 %v363_v43, 16 }
 0x2dc   :  { %v810_v15 = vadd.f32 %v809_v37, %v808_v19 }
 0x2de   :  { %v811_v25 = vrot.slane %v810_v15, 2 }
 0x2e0   :  { %v418_v57 = vpop.xlane.xlu0 %417  ;;  %v812_v48 = vadd.f32 %v811_v25, %v810_v15  ;;  %v573_v15 = vcvt.f32.s32 %v1449_v14 }
 0x2e1   :  { %v419_v16 = vrot.slane %v418_v57, 4 }
 0x2e2   :  { %v813_v21 = vrot.slane %v812_v48, 1 }
 0x2e3   :  { %761 = vmin.xlane.f32.xlu1 %v1457_v59  ;;  %v420_v63 = vadd.f32 %v419_v16, %v418_v57 }
 0x2e4   :  { %v814_v58 = vadd.f32 %v813_v21, %v812_v48 }
 0x2e5   :  { %v421_v55 = vrot.slane %v420_v63, 2 }
 0x2e7   :  { %v422_v32 = vadd.f32 %v421_v55, %v420_v63  ;;  %v215_v63 = vstv %s850_s14 }
 0x2e8   :  { %v792_v0 = vpop.xlane.xlu0 %791 }
 0x2e9   :  { %v793_v1 = vrot.slane %v792_v0, 4  ;;  %v423_v17 = vrot.slane %v422_v32, 1 }
 0x2eb   :  { %v794_v47 = vadd.f32 %v793_v1, %v792_v0  ;;  %v424_v20 = vadd.f32 %v423_v17, %v422_v32  ;;  %v186_v0 = vsel %vm185_vm4, %v1441_v26, 0 }
 0x2ed   :  { %v795_v42 = vrot.slane %v794_v47, 2 }
 0x2ef   :  { %v796_v3 = vadd.f32 %v795_v42, %v794_v47 }
 0x2f0   :  { %v1462_v23 = vpop.xlane.xlu0 %746 }
 0x2f1   :  { %vm748_vm1 = vcmp.eq.f32.partialorder %v1407_v36, %v1462_v23  ;;  %v600_v36 = vrot.slane %v599_v54, 2  ;;  %v797_v60 = vrot.slane %v796_v3, 1 }
 0x2f2   :  { %v749_v8 = vsel %vm748_vm1, %v744_v62, inf }
 0x2f3   :  { %750 = vmin.xlane.f32.xlu2 %v749_v8  ;;  %v180_v35 = vpop.xlane.xlu1 %179  ;;  %v601_v45 = vadd.f32 %v600_v36, %v599_v54  ;;  %v798_v4 = vadd.f32 %v797_v60, %v796_v3  ;;  %v216_v54 = vsub.f32 0.0, %v215_v63 }
 0x2f4   :  { %v181_v18 = vcvt.f32.s32 %v180_v35 }
 0x2f5   :  { %v602_v27 = vrot.slane %v601_v45, 1 }
 0x2f6   :  { %v184_v22 = vadd.s32 %v183_v51, %v181_v18 }
 0x2f7   :  { %v603_v31 = vadd.f32 %v602_v27, %v601_v45  ;;  %v574_v45 = vshll.u32 %v573_v15, 16  ;;  %v753_v27 = vcvt.f32.s32 %v1462_v23 }
 0x2f8   :  { %v187_v38 = vsel %vm185_vm4, %v184_v22, 0 }
 0x2fb   :  { %v402_v41 = vpop.xlane.xlu1 %401 }
 0x2fc   :  { %v403_v2 = vrot.slane %v402_v41, 4 }
 0x2fe   :  { %v404_v40 = vadd.f32 %v403_v2, %v402_v41 }
 0x300   :  { %v405_v53 = vrot.slane %v404_v40, 2 }
 0x302   :  { %v406_v39 = vadd.f32 %v405_v53, %v404_v40 }
 0x303   :  { %v613_v46 = vpop.xlane.xlu1 %612 }
 0x304   :  { %v614_v5 = vrot.slane %v613_v46, 4  ;;  %v407_v9 = vrot.slane %v406_v39, 1 }
 0x306   :  { %v615_v34 = vadd.f32 %v614_v5, %v613_v46  ;;  %v408_v11 = vadd.f32 %v407_v9, %v406_v39  ;;  %v757_v46 = vand.u32 65535, %v1454_v50 }
 0x308   :  { %v616_v6 = vrot.slane %v615_v34, 2  ;;  %853 = vpush %v408_v11  ;;  %v759_v5 = vcvt.s32.f32 %v757_v46  ;;  %v754_v11 = vshll.u32 %v753_v27, 16 }
 0x309   :  { %855 = vpush %v424_v20 }
 0x30a   :  { %857 = vpush %v603_v31  ;;  %v617_v12 = vadd.f32 %v616_v6, %v615_v34 }
 0x30c   :  { %v618_v49 = vrot.slane %v617_v12, 1 }
 0x30e   :  { %v619_v52 = vadd.f32 %v618_v49, %v617_v12 }
 0x310   :  { %859 = vpush %v619_v52 }
 0x311   :  { %861 = vpush %v798_v4 }
 0x312   :  { %863 = vpush %v814_v58 }
 0x31b   :  { %v361_v28 = vpop.xlane.xlu1 %360 }
 0x31c   :  { %v362_v33 = vcvt.f32.s32 %v361_v28 }
 0x31e   :  { %v365_v57 = vadd.s32 %v364_v7, %v362_v33 }
 0x320   :  { %v382_v30 = vsel %vm381_vm5, %v365_v57, %v186_v0 }
 0x326   :  { %v376_v62 = vpop.xlane.xlu0 %375 }
 0x327   :  { %v377_v8 = vcvt.f32.s32 %v376_v62 }
 0x329   :  { %v380_v16 = vadd.s32 %v379_v24, %v377_v8 }
 0x32b   :  { %v383_v35 = vsel %vm381_vm5, %v380_v16, %v187_v38 }
 0x333   :  { %v556_v51 = vpop.xlane.xlu1 %555 }
 0x334   :  { %v557_v18 = vcvt.f32.s32 %v556_v51 }
 0x336   :  { %v560_v22 = vadd.s32 %v559_v13, %v557_v18 }
 0x338   :  { %v577_v26 = vsel %vm576_vm7, %v560_v22, %v382_v30 }
 0x339   :  { %s854_s16 = spop %853 }
 0x33a   :  { %v410_v44 = vstv %s854_s16  ;;  %s856_s17 = spop %855 }
 0x33b   :  { %v411_v19 = vsub.f32 %v216_v54, %v410_v44  ;;  %v426_v38 = vstv %s856_s17  ;;  %s858_s18 = spop %857 }
 0x33c   :  { %v427_v55 = vadd.f32 %v426_v38, %v231_v56  ;;  %v605_v1 = vstv %s858_s18 }
 0x33d   :  { %v606_v41 = vsub.f32 %v411_v19, %v605_v1 }
 0x341   :  { %s860_s19 = spop %859 }
 0x342   :  { %v621_v36 = vstv %s860_s19  ;;  %s862_s20 = spop %861 }
 0x343   :  { %v622_v37 = vadd.f32 %v621_v36, %v427_v55  ;;  %v800_v2 = vstv %s862_s20  ;;  %s864_s21 = spop %863 }
 0x344   :  { %v801_v40 = vsub.f32 %v606_v41, %v800_v2  ;;  %v816_v47 = vstv %s864_s21 }
 0x345   :  { %v817_v32 = vadd.f32 %v816_v47, %v622_v37 }
 0x346   :  { %821 = vst.msk [vmem:[%s1506_s7 + $0x4] sm:$0x1] %vm199_vm6, %v801_v40 }
 0x347   :  { %822 = vst.msk [vmem:[%s1506_s7 + $0x5] sm:$0x1] %vm199_vm6, %v817_v32  ;;  %vm771_vm6 = vcmp.eq.s32.totalorder %v1182_v29, 3 }
 0x34e   :  { %v571_v53 = vpop.xlane.xlu1 %570 }
 0x34f   :  { %v572_v39 = vcvt.f32.s32 %v571_v53 }
 0x351   :  { %v575_v42 = vadd.s32 %v574_v45, %v572_v39 }
 0x353   :  { %v578_v17 = vsel %vm576_vm7, %v575_v42, %v383_v35 }
 0x356   :  { %v762_v25 = vpop.xlane.xlu1 %761 }
 0x357   :  { %vm763_vm8 = vcmp.eq.f32.partialorder %v1457_v59, %v762_v25  ;;  %v768_v50 = vcvt.f32.s32 %v762_v25 }
 0x358   :  { %v764_v9 = vsel %vm763_vm8, %v759_v5, inf }
 0x359   :  { %765 = vmin.xlane.f32.xlu0 %v764_v9  ;;  %v769_v31 = vshll.u32 %v768_v50, 16 }
 0x366   :  { %v751_v34 = vpop.xlane.xlu2 %750 }
 0x367   :  { %v752_v14 = vcvt.f32.s32 %v751_v34 }
 0x369   :  { %v755_v20 = vadd.s32 %v754_v11, %v752_v14 }
 0x36b   :  { %v772_v3 = vsel %vm771_vm6, %v755_v20, %v577_v26 }
 0x36c   :  { %819 = vst.msk [vmem:[%s1507_s6] sm:$0xff] %vm818_vm9, %v772_v3 }
 0x3cc   :  { %v766_v6 = vpop.xlane.xlu0 %765 }
 0x3cd   :  { %v767_v59 = vcvt.f32.s32 %v766_v6 }
 0x3cf   :  { %v770_v48 = vadd.s32 %v769_v31, %v767_v59 }
 0x3d1   :  { %v773_v12 = vsel %vm771_vm6, %v770_v48, %v578_v17 }
 0x3d2   :  { %820 = vst.msk [vmem:[%s1507_s6 + $0x8] sm:$0xff] %vm818_vm9, %v773_v12 }

// kernel: multi_kmeans_forward.4
= control target key start
LH: loop header
LB: loop body
LE: loop exit
PB: predicated region body
PF: predicated region fallthrough
CT: control target
= control target key end

     0   :  { %vm59_vm0 = vcmask 261120   ;;  %s959_s28 = smov 64   ;;  %s960_s29 = smov 96   ;;  %s1520_s0 = inlined_call_operand.<no memory space> [shape: f32[1], index: 0, kind: input, shape index: {}]   ;;  %s1521_s1 = inlined_call_operand.<no memory space> [shape: s32[1], index: 1, kind: input, shape index: {}]   ;;  %s1522_s2 = inlined_call_operand.vmem [shape: f32[16,128], index: 2, kind: input, shape index: {}]   ;;  %s1523_s3 = inlined_call_operand.vmem [shape: f32[16,64], index: 3, kind: input, shape index: {}]   ;;  %s1524_s4 = inlined_call_operand.vmem [shape: f32[4,16,32], index: 4, kind: input, shape index: {}]   ;;  %s1525_s5 = inlined_call_operand.vmem [shape: f32[4,16], index: 5, kind: input, shape index: {}]   ;;  %s1526_s6 = inlined_call_operand.vmem [shape: s32[16,4], index: 6, kind: output, shape index: {0}]   ;;  %s1527_s7 = inlined_call_operand.hbm [shape: f32[1,6,16], index: 7, kind: output, shape index: {1}]  }
   0x1   :  { %v429_v0 = vld [vmem:[%s1522_s2] sm:$0xff]  ;;  %v45_v1 = vld [vmem:[%s1524_s4 + $0x8] sm:$0xff] }
   0x2   :  { %449 = vrot.lane.b32.xlu0 %v429_v0, %s959_s28  ;;  %254 = vrot.lane.b32.xlu1 %v429_v0, %s960_s29  ;;  %v430_v2 = vld [vmem:[%s1522_s2 + $0x8] sm:$0xff] }
   0x3   :  { %15 = vsyncpa [#allocation5], 0  ;;  %846 = vmatpush.xpose.msk.msra.mxu0 %vm59_vm0, %v45_v1  ;;  %s961_s9 = smov 32   ;;  %v44_v3 = vld [vmem:[%s1524_s4] sm:$0xff]  ;;  %v431_v4 = vmul.f32 %v429_v0, %v429_v0  ;;  %v432_v5 = vmul.f32 %v430_v2, %v430_v2  ;;  %v47_v8 = vld [vmem:[%s1524_s4 + $0x18] sm:$0xff]  ;;  %v1078_v40 = vstv %s1520_s0  ;;  %vm113_vm1 = vcmask 130048  }
   0x4   :  { %646 = vrot.lane.b32.xlu2 %v430_v2, %s961_s9  ;;  %v49_v9 = vld [vmem:[%s1524_s4 + $0x28] sm:$0xff]  ;;  %850 = vmatpush.xpose.msk.msra.mxu1 %vm59_vm0, %v47_v8  ;;  %v46_v10 = vld [vmem:[%s1524_s4 + $0x10] sm:$0xff]  ;;  %v48_v11 = vld [vmem:[%s1524_s4 + $0x20] sm:$0xff]  ;;  %s962_s26 = smov 112   ;;  %vm200_vm8 = vcmask 122880   ;;  %s965_s12 = smov [#allocation4]  }
   0x5   :  { %v63_v6 = vsel %vm59_vm0, %v432_v5, 0.0  ;;  %v60_v7 = vsel %vm59_vm0, %v431_v4, 0.0  ;;  %854 = vmatpush.xpose.msk.msra.mxu2 %vm59_vm0, %v49_v9  ;;  %v51_v13 = vld [vmem:[%s1524_s4 + $0x38] sm:$0xff]  ;;  %v50_v15 = vld [vmem:[%s1524_s4 + $0x30] sm:$0xff]  ;;  %v1066_v26 = vld [vmem:[%s1525_s5] sm:$0xf] }
   0x6   :  { %858 = vmatpush.xpose.msk.msra.mxu3 %vm59_vm0, %v51_v13  ;;  %v105_v29 = vperm.slane %v1066_v26, 0  ;;  %v490_v54 = vperm.slane %v1066_v26, 2  ;;  %v295_v62 = vperm.slane %v1066_v26, 1  ;;  %v685_v13 = vperm.slane %v1066_v26, 3  ;;  %s831_s13 = sshll.u32 %s965_s12, 4  ;;  %s833_s17 = sshll.u32 %s1527_s7, 4  ;;  %s832_s13 = int_to_ptr.vmem [resolvable:$true] %s831_s13  ;;  %s834_s17 = int_to_ptr.hbm [resolvable:$true] %s833_s17 }
   0x7   :  { %847 = vmatpush.xpose.msk.msra.mxu0 %vm59_vm0, %v44_v3 }
   0x8   :  { %851 = vmatpush.xpose.msk.msra.mxu1 %vm59_vm0, %v46_v10 }
   0x9   :  { %855 = vmatpush.xpose.msk.msra.mxu2 %vm59_vm0, %v48_v11 }
   0xa   :  { %644 = vrot.lane.b32.xlu0 %v429_v0, %s961_s9  ;;  %451 = vrot.lane.b32.xlu1 %v430_v2, %s959_s28 }
   0xb   :  { %848 = vmatmul.msk.f32.vlgmr.msra.gmra.mxu0 %vm59_vm0, %v429_v0  ;;  %859 = vmatpush.xpose.msk.msra.mxu3 %vm59_vm0, %v50_v15 }
   0xc   :  { %256 = vrot.lane.b32.xlu2 %v430_v2, %s960_s29 }
  0x13   :  { %849 = vmatmul.msk.f32.gmra.mxu0 %vm59_vm0, %v430_v2 }
  0x14   :  { %435 = vrot.lane.b32.xlu2 %v431_v4, %s959_s28 }
  0x34   :  { %64 = vadd.xlane.f32.xlu1 %v63_v6  ;;  %61 = vadd.xlane.f32.xlu0 %v60_v7 }
  0x48   :  { %240 = vrot.lane.b32.xlu0 %v431_v4, %s960_s29 }
  0x4d   :  { %242 = vrot.lane.b32.xlu1 %v432_v5, %s960_s29 }
  0x50   :  { %437 = vrot.lane.b32.xlu0 %v432_v5, %s959_s28 }
  0x55   :  { %630 = vrot.lane.b32.xlu1 %v431_v4, %s961_s9 }
  0x58   :  { %632 = vrot.lane.b32.xlu0 %v432_v5, %s961_s9 }
  0x5e   :  { %v647_v12 = vpop.permute.xlu2 %646 }
  0x66   :  { %v257_v14 = vpop.permute.xlu2 %256 }
  0x6e   :  { %v436_v18 = vpop.permute.xlu2 %435 }
  0x6f   :  { %v441_v21 = vsel %vm59_vm0, %v436_v18, 0.0 }
  0x74   :  { %v450_v16 = vpop.permute.xlu0 %449  ;;  %v255_v17 = vpop.permute.xlu1 %254 }
  0x75   :  { %852 = vmatmul.msk.f32.vlgmr.msra.gmra.mxu1 %vm59_vm0, %v255_v17  ;;  %856 = vmatmul.msk.f32.vlgmr.msra.gmra.mxu2 %vm59_vm0, %v450_v16 }
  0x7c   :  { %v452_v19 = vpop.permute.xlu1 %451  ;;  %v645_v20 = vpop.permute.xlu0 %644 }
  0x7d   :  { %857 = vmatmul.msk.f32.gmra.mxu2 %vm59_vm0, %v452_v19  ;;  %860 = vmatmul.msk.f32.vlgmr.msra.gmra.mxu3 %vm59_vm0, %v645_v20 }
  0x7e   :  { %853 = vmatmul.msk.f32.gmra.mxu1 %vm59_vm0, %v257_v14 }
  0x82   :  { %442 = vadd.xlane.f32.xlu0 %v441_v21 }
  0x85   :  { %861 = vmatmul.msk.f32.gmra.mxu3 %vm59_vm0, %v647_v12 }
  0x88   :  { %v95_v23 = vpop.f32.mrf.mxu0 }
  0x89   :  { %v101_v24 = vmul.f32 2.0, %v95_v23 }
  0x90   :  { %v98_v31 = vpop.f32.mrf.mxu0 }
  0x91   :  { %v102_v33 = vmul.f32 2.0, %v98_v31 }
  0xa7   :  { %v62_v22 = vpop.xlane.xlu0 %61  ;;  %v65_v25 = vpop.xlane.xlu1 %64 }
  0xa8   :  { %v103_v27 = vadd.f32 %v101_v24, %v62_v22  ;;  %v104_v38 = vadd.f32 %v102_v33, %v65_v25  ;;  %v525_v22 = vld [vmem:[%s1523_s3] sm:$0xff]  ;;  %v331_v24 = vld [vmem:[%s1523_s3 + $0x8] sm:$0xff]  ;;  %s963_s3 = smov 80  }
  0xaa   :  { %v1070_v32 = vadd.f32 %v105_v29, %v103_v27  ;;  %v1085_v42 = vadd.f32 %v105_v29, %v104_v38 }
  0xac   :  { %v108_v36 = vmax.f32 %v1070_v32, 0.0  ;;  %v109_v47 = vmax.f32 %v1085_v42, 0.0 }
  0xae   :  { %v1083_v41 = vmul.f32 %v1078_v40, %v108_v36  ;;  %v1095_v49 = vmul.f32 %v1078_v40, %v109_v47 }
  0xb0   :  { %v114_v45 = vsel %vm113_vm1, %v1083_v41, -inf  ;;  %v117_v50 = vsel %vm113_vm1, %v1095_v49, -inf }
  0xba   :  { %v241_v28 = vpop.permute.xlu0 %240 }
  0xbb   :  { %v246_v30 = vsel %vm59_vm0, %v241_v28, 0.0 }
  0xbc   :  { %247 = vadd.xlane.f32.xlu2 %v246_v30 }
  0xbf   :  { %v243_v34 = vpop.permute.xlu1 %242 }
  0xc0   :  { %v249_v35 = vsel %vm59_vm0, %v243_v34, 0.0 }
  0xc1   :  { %250 = vadd.xlane.f32.xlu1 %v249_v35 }
  0xc2   :  { %v438_v37 = vpop.permute.xlu0 %437 }
  0xc3   :  { %v444_v39 = vsel %vm59_vm0, %v438_v37, 0.0 }
  0xc4   :  { %445 = vadd.xlane.f32.xlu2 %v444_v39 }
  0xc7   :  { %v631_v43 = vpop.permute.xlu1 %630 }
  0xc8   :  { %v636_v44 = vsel %vm59_vm0, %v631_v43, 0.0 }
  0xc9   :  { %637 = vadd.xlane.f32.xlu1 %v636_v44 }
  0xca   :  { %v633_v46 = vpop.permute.xlu0 %632 }
  0xcb   :  { %v639_v48 = vsel %vm59_vm0, %v633_v46, 0.0 }
  0xcc   :  { %640 = vadd.xlane.f32.xlu0 %v639_v48  ;;  %115 = vmax.xlane.f32.xlu2 %v114_v45 }
  0xd4   :  { %118 = vmax.xlane.f32.xlu2 %v117_v50 }
  0xf2   :  { %v285_v60 = vpop.f32.mrf.mxu1 }
  0xf3   :  { %v291_v61 = vmul.f32 2.0, %v285_v60 }
  0xf5   :  { %v443_v52 = vpop.xlane.xlu0 %442 }
  0xf8   :  { %v480_v51 = vpop.f32.mrf.mxu2 }
  0xf9   :  { %v486_v53 = vmul.f32 2.0, %v480_v51 }
  0xfb   :  { %v488_v55 = vadd.f32 %v486_v53, %v443_v52  ;;  %v288_v63 = vpop.f32.mrf.mxu1 }
  0xfc   :  { %v292_v2 = vmul.f32 2.0, %v288_v63 }
  0xfd   :  { %v1100_v56 = vadd.f32 %v490_v54, %v488_v55 }
  0xff   :  { %v493_v57 = vmax.f32 %v1100_v56, 0.0 }
 0x100   :  { %v675_v9 = vpop.f32.mrf.mxu3  ;;  %v483_v25 = vpop.f32.mrf.mxu2 }
 0x101   :  { %v1106_v58 = vmul.f32 %v493_v57, %v1078_v40  ;;  %v681_v11 = vmul.f32 2.0, %v675_v9  ;;  %v487_v27 = vmul.f32 2.0, %v483_v25 }
 0x103   :  { %v497_v59 = vsel %vm113_vm1, %v1106_v58, -inf }
 0x104   :  { %498 = vmax.xlane.f32.xlu2 %v497_v59 }
 0x108   :  { %v678_v30 = vpop.f32.mrf.mxu3 }
 0x109   :  { %v682_v35 = vmul.f32 2.0, %v678_v30 }
 0x12f   :  { %v248_v0 = vpop.xlane.xlu2 %247 }
 0x130   :  { %v293_v1 = vadd.f32 %v291_v61, %v248_v0 }
 0x132   :  { %v1111_v3 = vadd.f32 %v295_v62, %v293_v1 }
 0x134   :  { %v298_v4 = vmax.f32 %v1111_v3, 0.0  ;;  %v251_v5 = vpop.xlane.xlu1 %250 }
 0x135   :  { %v294_v6 = vadd.f32 %v292_v2, %v251_v5 }
 0x136   :  { %v1117_v7 = vmul.f32 %v298_v4, %v1078_v40 }
 0x137   :  { %v1119_v8 = vadd.f32 %v295_v62, %v294_v6  ;;  %v446_v23 = vpop.xlane.xlu2 %445 }
 0x138   :  { %v302_v10 = vsel %vm113_vm1, %v1117_v7, -inf  ;;  %v489_v29 = vadd.f32 %v487_v27, %v446_v23 }
 0x139   :  { %v299_v12 = vmax.f32 %v1119_v8, 0.0  ;;  %303 = vmax.xlane.f32.xlu1 %v302_v10 }
 0x13a   :  { %v1151_v33 = vadd.f32 %v490_v54, %v489_v29 }
 0x13b   :  { %v1128_v14 = vmul.f32 %v299_v12, %v1078_v40 }
 0x13c   :  { %v638_v15 = vpop.xlane.xlu1 %637  ;;  %v494_v37 = vmax.f32 %v1151_v33, 0.0 }
 0x13d   :  { %v683_v16 = vadd.f32 %v681_v11, %v638_v15  ;;  %v305_v17 = vsel %vm113_vm1, %v1128_v14, -inf }
 0x13e   :  { %306 = vmax.xlane.f32.xlu0 %v305_v17  ;;  %v496_v43 = vmul.f32 %v494_v37, %v1078_v40 }
 0x13f   :  { %v1132_v18 = vadd.f32 %v685_v13, %v683_v16  ;;  %v116_v26 = vpop.xlane.xlu2 %115  ;;  %v641_v34 = vpop.xlane.xlu0 %640 }
 0x140   :  { %v1148_v28 = vsub.f32 %v1083_v41, %v116_v26  ;;  %v684_v38 = vadd.f32 %v682_v35, %v641_v34  ;;  %v500_v45 = vsel %vm113_vm1, %v496_v43, -inf  ;;  %v31_v35 = vlaneseq }
 0x141   :  { %v688_v19 = vmax.f32 %v1132_v18, 0.0 }
 0x142   :  { %v122_v31 = vmul.f32 1.442695, %v1148_v28  ;;  %v1154_v39 = vadd.f32 %v685_v13, %v684_v38  ;;  %v144_v51 = vadd.f32 %v525_v22, %v1148_v28  ;;  %v1222_v38 = vand.u32 127, %v31_v35 }
 0x143   :  { %v690_v20 = vmul.f32 %v688_v19, %v1078_v40 }
 0x144   :  { %885 = vpow2.f32 %v122_v31  ;;  %v689_v44 = vmax.f32 %v1154_v39, 0.0  ;;  %v146_v52 = vsel %vm113_vm1, %v144_v51, -inf }
 0x145   :  { %v692_v21 = vsel %vm113_vm1, %v690_v20, -inf }
 0x146   :  { %693 = vmax.xlane.f32.xlu2 %v692_v21  ;;  %v691_v48 = vmul.f32 %v689_v44, %v1078_v40 }
 0x147   :  { %v119_v53 = vpop.xlane.xlu2 %118 }
 0x148   :  { %v695_v50 = vsel %vm113_vm1, %v691_v48, -inf  ;;  %v1172_v55 = vsub.f32 %v1095_v49, %v119_v53 }
 0x14a   :  { %v1159_v41 = vpop.eup %885  ;;  %v124_v59 = vmul.f32 1.442695, %v1172_v55  ;;  %v1192_v10 = vadd.f32 %v331_v24, %v1172_v55 }
 0x14b   :  { %v126_v46 = vsel %vm113_vm1, %v1159_v41, 0.0 }
 0x14c   :  { %887 = vpow2.f32 %v124_v59  ;;  %v149_v11 = vsel %vm113_vm1, %v1192_v10, -inf }
 0x152   :  { %529 = vrot.lane.b32.xlu1 %v525_v22, %s960_s29  ;;  %334 = vrot.lane.b32.xlu0 %v525_v22, %s962_s26  ;;  %v1178_v0 = vpop.eup %887 }
 0x153   :  { %v129_v49 = vsel %vm113_vm1, %v1178_v0, 0.0 }
 0x15e   :  { %336 = vrot.lane.b32.xlu2 %v331_v24, %s962_s26 }
 0x166   :  { %531 = vrot.lane.b32.xlu2 %v331_v24, %s960_s29 }
 0x177   :  { %v499_v54 = vpop.xlane.xlu2 %498 }
 0x17c   :  { %501 = vmax.xlane.f32.xlu1 %v500_v45  ;;  %127 = vadd.xlane.f32.xlu0 %v126_v46 }
 0x184   :  { %696 = vmax.xlane.f32.xlu1 %v695_v50 }
 0x18f   :  { %147 = vmax.xlane.f32.xlu2 %v146_v52  ;;  %v1231_v52 = vsub.f32 %v1106_v58, %v499_v54 }
 0x191   :  { %v505_v54 = vmul.f32 1.442695, %v1231_v52 }
 0x19d   :  { %724 = vrot.lane.b32.xlu1 %v525_v22, %s963_s3 }
 0x1a7   :  { %726 = vrot.lane.b32.xlu2 %v331_v24, %s963_s3 }
 0x1ac   :  { %v304_v62 = vpop.xlane.xlu1 %303 }
 0x1ad   :  { %v1181_v1 = vsub.f32 %v1117_v7, %v304_v62 }
 0x1af   :  { %v310_v9 = vmul.f32 1.442695, %v1181_v1 }
 0x1b1   :  { %v307_v40 = vpop.xlane.xlu0 %306 }
 0x1b2   :  { %v1201_v16 = vsub.f32 %v1128_v14, %v307_v40 }
 0x1b9   :  { %v694_v60 = vpop.xlane.xlu2 %693 }
 0x1ba   :  { %v1175_v61 = vsub.f32 %v690_v20, %v694_v60 }
 0x1bc   :  { %v700_v63 = vmul.f32 1.442695, %v1175_v61 }
 0x1be   :  { %889 = vpow2.f32 %v700_v63 }
 0x1bf   :  { %891 = vpow2.f32 %v310_v9 }
 0x1c1   :  { %v337_v15 = vpop.permute.xlu2 %336 }
 0x1c2   :  { %v1204_v17 = vadd.f32 %v337_v15, %v1201_v16 }
 0x1c4   :  { %v335_v2 = vpop.permute.xlu0 %334  ;;  %v1194_v7 = vpop.eup %889  ;;  %v345_v22 = vsel %vm113_vm1, %v1204_v17, -inf }
 0x1c5   :  { %v1184_v5 = vadd.f32 %v335_v2, %v1181_v1  ;;  %v704_v13 = vsel %vm113_vm1, %v1194_v7, 0.0  ;;  %v1206_v20 = vpop.eup %891  ;;  %v530_v23 = vpop.permute.xlu1 %529 }
 0x1c6   :  { %v314_v21 = vsel %vm113_vm1, %v1206_v20, 0.0  ;;  %v1238_v60 = vadd.f32 %v530_v23, %v1231_v52 }
 0x1c7   :  { %130 = vadd.xlane.f32.xlu1 %v129_v49  ;;  %v342_v6 = vsel %vm113_vm1, %v1184_v5, -inf }
 0x1c8   :  { %343 = vmax.xlane.f32.xlu0 %v342_v6  ;;  %v537_v58 = vsel %vm113_vm1, %v1238_v60, -inf }
 0x1c9   :  { %v532_v30 = vpop.permute.xlu2 %531 }
 0x1d0   :  { %150 = vmax.xlane.f32.xlu2 %v149_v11  ;;  %705 = vadd.xlane.f32.xlu0 %v704_v13 }
 0x1d8   :  { %315 = vadd.xlane.f32.xlu2 %v314_v21  ;;  %346 = vmax.xlane.f32.xlu0 %v345_v22 }
 0x1ef   :  { %v502_v24 = vpop.xlane.xlu1 %501  ;;  %v128_v23 = vpop.xlane.xlu0 %127 }
 0x1f0   :  { %v1212_v25 = vsub.f32 %v496_v43, %v502_v24  ;;  %v32_v24 = vshrl.u32 %v31_v35, 7 }
 0x1f2   :  { %v507_v14 = vmul.f32 1.442695, %v1212_v25  ;;  %v1254_v49 = vadd.f32 %v532_v30, %v1212_v25 }
 0x1f4   :  { %893 = vpow2.f32 %v507_v14  ;;  %v540_v9 = vsel %vm113_vm1, %v1254_v49, -inf  ;;  %v37_v14 = vstv %s1521_s1 }
 0x1f5   :  { %vm38_vm3 = vcmp.lt.s32.totalorder %v32_v24, %v37_v14 }
 0x1f7   :  { %v697_v26 = vpop.xlane.xlu1 %696 }
 0x1f8   :  { %v1215_v27 = vsub.f32 %v691_v48, %v697_v26  ;;  %v312_v48 = vmul.f32 1.442695, %v1201_v16 }
 0x1fa   :  { %v1217_v29 = vpop.eup %893  ;;  %v702_v31 = vmul.f32 1.442695, %v1215_v27 }
 0x1fb   :  { %v512_v34 = vsel %vm113_vm1, %v1217_v29, 0.0 }
 0x1fc   :  { %895 = vpow2.f32 %v702_v31  ;;  %513 = vadd.xlane.f32.xlu2 %v512_v34  ;;  %v33_v34 = vadd.s32 8, %v32_v24 }
 0x1fd   :  { %897 = vpow2.f32 %v312_v48 }
 0x1fe   :  { %899 = vpow2.f32 %v505_v54  ;;  %vm39_vm4 = vcmp.lt.s32.totalorder %v33_v34, %v37_v14 }
 0x1ff   :  { %901 = vrcp.f32 %v128_v23 }
 0x200   :  { %903 = vlog2.f32 %v128_v23 }
 0x202   :  { %v1224_v43 = vpop.eup %895  ;;  %v148_v45 = vpop.xlane.xlu2 %147 }
 0x203   :  { %vm152_vm2 = vcmp.ge.f32.partialorder %v144_v51, %v148_v45  ;;  %v707_v46 = vsel %vm113_vm1, %v1224_v43, 0.0  ;;  %v1251_v2 = vpop.eup %897 }
 0x204   :  { %v154_v50 = vsel %vm152_vm2, %v1222_v38, 16  ;;  %708 = vadd.xlane.f32.xlu0 %v707_v46  ;;  %v317_v6 = vsel %vm113_vm1, %v1251_v2, 0.0  ;;  %v1260_v11 = vpop.eup %899 }
 0x205   :  { %v1234_v53 = vsel %vm113_vm1, %v154_v50, 2147483647  ;;  %v509_v13 = vsel %vm113_vm1, %v1260_v11, 0.0  ;;  %v902_v26 = vpop.eup %901  ;;  %v964_v50 = vmov 0.0  }
 0x206   :  { %v158_v59 = vshra.s32 %v1234_v53, 16  ;;  %v904_v30 = vpop.eup %903  ;;  %v134_v46 = vmul.f32 %v902_v26, %v1159_v41  ;;  %v1277_v54 = vsel %vm39_vm4, 1.0, %v964_v50 }
 0x207   :  { %v137_v48 = vmul.f32 0.6931472, %v904_v30 }
 0x208   :  { %v1240_v51 = vcvt.s32.f32 %v158_v59  ;;  %v1273_v59 = vsel %vm38_vm3, 1.0, %v964_v50 }
 0x209   :  { %v140_v35 = vsub.f32 %v1148_v28, %v137_v48 }
 0x20a   :  { %v727_v40 = vpop.permute.xlu2 %726  ;;  %161 = vmin.xlane.f32.xlu1 %v1240_v51 }
 0x20b   :  { %v1244_v62 = vadd.f32 %v727_v40, %v1215_v27  ;;  %v189_v40 = vmul.f32 %v1273_v59, %v134_v46 }
 0x20c   :  { %538 = vmax.xlane.f32.xlu0 %v537_v58 }
 0x20d   :  { %v735_v63 = vsel %vm113_vm1, %v1244_v62, -inf }
 0x20e   :  { %736 = vmax.xlane.f32.xlu2 %v735_v63 }
 0x20f   :  { %v725_v15 = vpop.permute.xlu1 %724 }
 0x210   :  { %v1265_v21 = vadd.f32 %v725_v15, %v1175_v61 }
 0x212   :  { %318 = vadd.xlane.f32.xlu1 %v317_v6  ;;  %v732_v22 = vsel %vm113_vm1, %v1265_v21, -inf }
 0x214   :  { %541 = vmax.xlane.f32.xlu0 %v540_v9 }
 0x21a   :  { %510 = vadd.xlane.f32.xlu1 %v509_v13 }
 0x222   :  { %733 = vmax.xlane.f32.xlu1 %v732_v22  ;;  %v202_v22 = vmul.f32 %v189_v40, %v140_v35 }
 0x23a   :  { %v131_v31 = vpop.xlane.xlu1 %130 }
 0x23b   :  { %905 = vrcp.f32 %v131_v31  ;;  %v344_v45 = vpop.xlane.xlu0 %343 }
 0x23c   :  { %907 = vlog2.f32 %v131_v31  ;;  %vm348_vm6 = vcmp.ge.f32.partialorder %v1184_v5, %v344_v45 }
 0x23d   :  { %v350_v31 = vsel %vm348_vm6, %v1222_v38, 16  ;;  %vm382_vm6 = vcmp.eq.s32.totalorder %v1222_v38, 1 }
 0x241   :  { %v906_v58 = vpop.eup %905 }
 0x242   :  { %v908_v63 = vpop.eup %907  ;;  %v135_v6 = vmul.f32 %v906_v58, %v1178_v0  ;;  %v191_v0 = vsel %vm113_vm1, %v189_v40, 0.0  ;;  %v1299_v58 = vsel %vm113_vm1, %v350_v31, 2147483647 }
 0x243   :  { %v139_v9 = vmul.f32 0.6931472, %v908_v63  ;;  %v706_v13 = vpop.xlane.xlu0 %705  ;;  %v151_v15 = vpop.xlane.xlu2 %150 }
 0x244   :  { %909 = vrcp.f32 %v706_v13  ;;  %vm153_vm5 = vcmp.ge.f32.partialorder %v1192_v10, %v151_v15  ;;  %v190_v41 = vmul.f32 %v1277_v54, %v135_v6  ;;  %v218_v15 = vmul.f32 %v189_v40, %v108_v36 }
 0x245   :  { %v141_v23 = vsub.f32 %v1172_v55, %v139_v9  ;;  %911 = vlog2.f32 %v706_v13  ;;  %v155_v28 = vsel %vm153_vm5, %v1222_v38, 16  ;;  %v204_v55 = vsel %vm113_vm1, %v202_v22, 0.0 }
 0x246   :  { %v1286_v24 = vsel %vm113_vm1, %v155_v28, 2147483647  ;;  %v192_v14 = vsel %vm113_vm1, %v190_v41, 0.0  ;;  %v219_v50 = vmul.f32 %v190_v41, %v109_v47  ;;  %vm186_vm5 = vcmp.eq.s32.totalorder %v1222_v38, 0 }
 0x247   :  { %v173_v26 = vshra.s32 %v1286_v24, 16  ;;  %v203_v10 = vmul.f32 %v190_v41, %v141_v23  ;;  %v193_v30 = vadd.f32 %v192_v14, %v191_v0  ;;  %v220_v0 = vsel %vm113_vm1, %v218_v15, 0.0 }
 0x248   :  { %v221_v41 = vsel %vm113_vm1, %v219_v50, 0.0 }
 0x249   :  { %v1292_v34 = vcvt.s32.f32 %v173_v26  ;;  %v205_v5 = vsel %vm113_vm1, %v203_v10, 0.0  ;;  %v194_v45 = vrot.slane %v193_v30, 4  ;;  %v222_v32 = vadd.f32 %v221_v41, %v220_v0 }
 0x24a   :  { %v910_v46 = vpop.eup %909  ;;  %v206_v48 = vadd.f32 %v205_v5, %v204_v55  ;;  %v157_v55 = vand.u32 65535, %v1234_v53 }
 0x24b   :  { %v912_v35 = vpop.eup %911  ;;  %v712_v63 = vmul.f32 %v910_v46, %v1194_v7  ;;  %v347_v6 = vpop.xlane.xlu0 %346  ;;  %176 = vmin.xlane.f32.xlu2 %v1292_v34  ;;  %v195_v9 = vadd.f32 %v194_v45, %v193_v30  ;;  %v354_v7 = vshra.s32 %v1299_v58, 16 }
 0x24c   :  { %v715_v13 = vmul.f32 0.6931472, %v912_v35  ;;  %vm349_vm7 = vcmp.ge.f32.partialorder %v1204_v17, %v347_v6  ;;  %207 = vadd.xlane.f32.xlu0 %v206_v48  ;;  %v316_v31 = vpop.xlane.xlu2 %315  ;;  %v159_v45 = vcvt.s32.f32 %v157_v55 }
 0x24d   :  { %v196_v22 = vrot.slane %v195_v9, 2  ;;  %v1307_v42 = vmul.f32 %v1273_v59, %v712_v63  ;;  %v351_v23 = vsel %vm349_vm7, %v1222_v38, 16  ;;  %v1318_v40 = vcvt.s32.f32 %v354_v7 }
 0x24e   :  { %v718_v47 = vsub.f32 %v1175_v61, %v715_v13  ;;  %v1316_v36 = vsel %vm113_vm1, %v351_v23, 2147483647  ;;  %vm772_vm7 = vcmp.eq.s32.totalorder %v1222_v38, 3 }
 0x24f   :  { %v197_v28 = vadd.f32 %v196_v22, %v195_v9  ;;  %v369_v26 = vshra.s32 %v1316_v36, 16  ;;  %v777_v13 = vsel %vm113_vm1, %v1307_v42, 0.0  ;;  %v368_v3 = vand.u32 65535, %v1316_v36 }
 0x250   :  { %v787_v17 = vmul.f32 %v1307_v42, %v718_v47 }
 0x251   :  { %v198_v14 = vrot.slane %v197_v28, 1  ;;  %v1323_v10 = vcvt.s32.f32 %v369_v26 }
 0x252   :  { %v789_v23 = vsel %vm113_vm1, %v787_v17, 0.0 }
 0x253   :  { %v199_v61 = vadd.f32 %v198_v14, %v197_v28  ;;  %223 = vadd.xlane.f32.xlu2 %v222_v32 }
 0x254   :  { %357 = vmin.xlane.f32.xlu0 %v1318_v40 }
 0x255   :  { %201 = vst.msk [vmem:[#allocation4] sm:$0x1] %vm200_vm8, %v199_v61 }
 0x25b   :  { %372 = vmin.xlane.f32.xlu2 %v1323_v10 }
 0x26f   :  { %v514_v6 = vpop.xlane.xlu2 %513 }
 0x277   :  { %v709_v30 = vpop.xlane.xlu0 %708 }
 0x278   :  { %913 = vrcp.f32 %v709_v30 }
 0x279   :  { %915 = vlog2.f32 %v709_v30 }
 0x27a   :  { %917 = vrcp.f32 %v316_v31 }
 0x27b   :  { %919 = vlog2.f32 %v316_v31 }
 0x27c   :  { %921 = vrcp.f32 %v514_v6 }
 0x27d   :  { %v1327_v5 = vpop.xlane.xlu1 %161  ;;  %923 = vlog2.f32 %v514_v6 }
 0x27e   :  { %v914_v46 = vpop.eup %913  ;;  %vm163_vm9 = vcmp.eq.f32.partialorder %v1240_v51, %v1327_v5 }
 0x27f   :  { %v916_v48 = vpop.eup %915  ;;  %v713_v50 = vmul.f32 %v914_v46, %v1224_v43  ;;  %v164_v35 = vsel %vm163_vm9, %v159_v45, inf  ;;  %vm819_vm9 = vcmask 31744  }
 0x280   :  { %v717_v63 = vmul.f32 0.6931472, %v916_v48  ;;  %165 = vmin.xlane.f32.xlu0 %v164_v35  ;;  %v918_v51 = vpop.eup %917 }
 0x281   :  { %v1333_v9 = vmul.f32 %v1277_v54, %v713_v50  ;;  %v920_v47 = vpop.eup %919  ;;  %v322_v0 = vmul.f32 %v918_v51, %v1206_v20 }
 0x282   :  { %v719_v53 = vsub.f32 %v1215_v27, %v717_v63  ;;  %v325_v14 = vmul.f32 0.6931472, %v920_v47  ;;  %v922_v61 = vpop.eup %921  ;;  %v1364_v47 = vpop.xlane.xlu0 %538 }
 0x283   :  { %v778_v15 = vsel %vm113_vm1, %v1333_v9, 0.0  ;;  %v924_v30 = vpop.eup %923  ;;  %v1348_v45 = vmul.f32 %v1273_v59, %v322_v0  ;;  %v518_v20 = vmul.f32 %v922_v61, %v1217_v29  ;;  %vm543_vm13 = vcmp.ge.f32.partialorder %v1238_v60, %v1364_v47 }
 0x284   :  { %v779_v22 = vadd.f32 %v778_v15, %v777_v13  ;;  %v788_v43 = vmul.f32 %v1333_v9, %v719_v53  ;;  %v328_v55 = vsub.f32 %v1181_v1, %v325_v14  ;;  %v522_v6 = vmul.f32 0.6931472, %v924_v30 }
 0x285   :  { %v319_v41 = vpop.xlane.xlu1 %318  ;;  %v387_v51 = vsel %vm113_vm1, %v1348_v45, 0.0 }
 0x286   :  { %925 = vrcp.f32 %v319_v41  ;;  %v780_v7 = vrot.slane %v779_v22, 4  ;;  %v790_v27 = vsel %vm113_vm1, %v788_v43, 0.0  ;;  %v397_v13 = vmul.f32 %v1348_v45, %v328_v55 }
 0x287   :  { %927 = vlog2.f32 %v319_v41  ;;  %v1343_v28 = vadd.f32 %v790_v27, %v789_v23  ;;  %v524_v29 = vsub.f32 %v1212_v25, %v522_v6 }
 0x288   :  { %v781_v32 = vadd.f32 %v780_v7, %v779_v22  ;;  %v399_v23 = vsel %vm113_vm1, %v397_v13, 0.0 }
 0x28a   :  { %v782_v26 = vrot.slane %v781_v32, 2  ;;  %v542_v13 = vpop.xlane.xlu0 %541 }
 0x28b   :  { %vm544_vm11 = vcmp.ge.f32.partialorder %v1254_v49, %v542_v13  ;;  %v168_v13 = vcvt.f32.s32 %v1327_v5 }
 0x28c   :  { %v926_v31 = vpop.eup %925  ;;  %v783_v46 = vadd.f32 %v782_v26, %v781_v32  ;;  %v546_v39 = vsel %vm544_vm11, %v1222_v38, 16 }
 0x28d   :  { %v928_v17 = vpop.eup %927  ;;  %v323_v48 = vmul.f32 %v926_v31, %v1251_v2  ;;  %v511_v50 = vpop.xlane.xlu1 %510  ;;  %v1402_v49 = vsel %vm113_vm1, %v546_v39, 2147483647 }
 0x28e   :  { %v327_v35 = vmul.f32 0.6931472, %v928_v17  ;;  %929 = vrcp.f32 %v511_v50  ;;  %v784_v63 = vrot.slane %v783_v46, 1 }
 0x28f   :  { %931 = vlog2.f32 %v511_v50  ;;  %v1353_v53 = vmul.f32 %v1277_v54, %v323_v48 }
 0x290   :  { %v329_v1 = vsub.f32 %v1201_v16, %v327_v35  ;;  %v785_v15 = vadd.f32 %v784_v63, %v783_v46  ;;  %v581_v16 = vmul.f32 %v1277_v54, %v518_v20 }
 0x291   :  { %v388_v2 = vsel %vm113_vm1, %v1353_v53, 0.0 }
 0x292   :  { %v389_v22 = vadd.f32 %v388_v2, %v387_v51  ;;  %v398_v43 = vmul.f32 %v1353_v53, %v329_v1  ;;  %786 = vst.msk [vmem:[#allocation4 + $0x3] sm:$0x1] %vm200_vm8, %v785_v15  ;;  %v593_v31 = vmul.f32 %v581_v16, %v524_v29  ;;  %v609_v54 = vmul.f32 %v581_v16, %v494_v37 }
 0x293   :  { %v804_v2 = vmul.f32 %v1333_v9, %v689_v44 }
 0x294   :  { %v930_v41 = vpop.eup %929  ;;  %v390_v7 = vrot.slane %v389_v22, 4  ;;  %v400_v27 = vsel %vm113_vm1, %v398_v43, 0.0  ;;  %v595_v33 = vsel %vm113_vm1, %v593_v31, 0.0  ;;  %v803_v43 = vmul.f32 %v1307_v42, %v688_v19 }
 0x295   :  { %v932_v0 = vpop.eup %931  ;;  %v517_v14 = vmul.f32 %v930_v41, %v1260_v11  ;;  %v734_v32 = vpop.xlane.xlu1 %733  ;;  %v401_v61 = vadd.f32 %v400_v27, %v399_v23  ;;  %v583_v11 = vsel %vm113_vm1, %v581_v16, 0.0  ;;  %v806_v41 = vsel %vm113_vm1, %v804_v2, 0.0 }
 0x296   :  { %v520_v26 = vmul.f32 0.6931472, %v932_v0  ;;  %v391_v30 = vadd.f32 %v390_v7, %v389_v22  ;;  %vm738_vm10 = vcmp.ge.f32.partialorder %v1265_v21, %v734_v32  ;;  %v805_v44 = vsel %vm113_vm1, %v803_v43, 0.0  ;;  %v737_v27 = vpop.xlane.xlu2 %736 }
 0x297   :  { %402 = vadd.xlane.f32.xlu0 %v401_v61  ;;  %v580_v25 = vmul.f32 %v1273_v59, %v517_v14  ;;  %v740_v59 = vsel %vm738_vm10, %v1222_v38, 16  ;;  %v807_v9 = vadd.f32 %v806_v41, %v805_v44  ;;  %v564_v19 = vshra.s32 %v1402_v49, 16 }
 0x298   :  { %v523_v55 = vsub.f32 %v1231_v52, %v520_v26  ;;  %v392_v46 = vrot.slane %v391_v30, 2  ;;  %v611_v52 = vsel %vm113_vm1, %v609_v54, 0.0  ;;  %v1385_v56 = vsel %vm113_vm1, %v740_v59, 2147483647 }
 0x299   :  { %v582_v17 = vsel %vm113_vm1, %v580_v25, 0.0  ;;  %v608_v48 = vmul.f32 %v580_v25, %v493_v57  ;;  %v744_v29 = vshra.s32 %v1385_v56, 16  ;;  %v1407_v42 = vcvt.s32.f32 %v564_v19 }
 0x29a   :  { %v393_v50 = vadd.f32 %v392_v46, %v391_v30  ;;  %v584_v35 = vadd.f32 %v583_v11, %v582_v17  ;;  %v592_v63 = vmul.f32 %v580_v25, %v523_v55  ;;  %v172_v0 = vand.u32 65535, %v1286_v24 }
 0x29b   :  { %v610_v37 = vsel %vm113_vm1, %v608_v48, 0.0  ;;  %v1399_v23 = vcvt.s32.f32 %v744_v29  ;;  %v414_v25 = vmul.f32 %v1353_v53, %v299_v12  ;;  %v413_v54 = vmul.f32 %v1348_v45, %v298_v4 }
 0x29c   :  { %v394_v21 = vrot.slane %v393_v50, 1  ;;  %v585_v20 = vrot.slane %v584_v35, 4  ;;  %v594_v6 = vsel %vm113_vm1, %v592_v63, 0.0  ;;  %v612_v1 = vadd.f32 %v611_v52, %v610_v37 }
 0x29d   :  { %v596_v15 = vadd.f32 %v595_v33, %v594_v6  ;;  %v174_v32 = vcvt.s32.f32 %v172_v0  ;;  %v416_v55 = vsel %vm113_vm1, %v414_v25, 0.0  ;;  %v415_v17 = vsel %vm113_vm1, %v413_v54, 0.0 }
 0x29e   :  { %v395_v57 = vadd.f32 %v394_v21, %v393_v50  ;;  %v586_v51 = vadd.f32 %v585_v20, %v584_v35  ;;  %v417_v48 = vadd.f32 %v416_v55, %v415_v17  ;;  %v545_v4 = vsel %vm543_vm13, %v1222_v38, 16 }
 0x29f   :  { %597 = vadd.xlane.f32.xlu2 %v596_v15  ;;  %613 = vadd.xlane.f32.xlu0 %v612_v1  ;;  %v370_v63 = vcvt.s32.f32 %v368_v3  ;;  %v1432_v33 = vsel %vm113_vm1, %v545_v4, 2147483647  ;;  %vm739_vm15 = vcmp.ge.f32.partialorder %v1244_v62, %v737_v27  ;;  %v353_v62 = vand.u32 65535, %v1299_v58 }
 0x2a0   :  { %v587_v22 = vrot.slane %v586_v51, 2  ;;  %396 = vst.msk [vmem:[#allocation4 + $0x1] sm:$0x1] %vm200_vm8, %v395_v57  ;;  %v549_v36 = vshra.s32 %v1432_v33, 16  ;;  %v741_v47 = vsel %vm739_vm15, %v1222_v38, 16  ;;  %v169_v57 = vshll.u32 %v168_v13, 16 }
 0x2a1   :  { %v355_v6 = vcvt.s32.f32 %v353_v62  ;;  %v563_v27 = vand.u32 65535, %v1402_v49 }
 0x2a2   :  { %v588_v16 = vadd.f32 %v587_v22, %v586_v51  ;;  %v1438_v52 = vcvt.s32.f32 %v549_v36 }
 0x2a4   :  { %v589_v7 = vrot.slane %v588_v16, 1 }
 0x2a6   :  { %v590_v18 = vadd.f32 %v589_v7, %v588_v16 }
 0x2a7   :  { %808 = vadd.xlane.f32.xlu2 %v807_v9  ;;  %747 = vmin.xlane.f32.xlu0 %v1399_v23 }
 0x2a8   :  { %591 = vst.msk [vmem:[#allocation4 + $0x2] sm:$0x1] %vm200_vm8, %v590_v18 }
 0x2af   :  { %567 = vmin.xlane.f32.xlu2 %v1407_v42 }
 0x2be   :  { %v1411_v14 = vpop.xlane.xlu2 %176 }
 0x2bf   :  { %v208_v61 = vpop.xlane.xlu0 %207  ;;  %vm178_vm12 = vcmp.eq.f32.partialorder %v1292_v34, %v1411_v14 }
 0x2c0   :  { %v209_v26 = vrot.slane %v208_v61, 4  ;;  %v179_v30 = vsel %vm178_vm12, %v174_v32, inf  ;;  %v565_v32 = vcvt.s32.f32 %v563_v27 }
 0x2c1   :  { %180 = vmin.xlane.f32.xlu1 %v179_v30 }
 0x2c2   :  { %v210_v31 = vadd.f32 %v209_v26, %v208_v61 }
 0x2c4   :  { %v211_v24 = vrot.slane %v210_v31, 2 }
 0x2c6   :  { %v224_v46 = vpop.xlane.xlu2 %223  ;;  %v212_v11 = vadd.f32 %v211_v24, %v210_v31 }
 0x2c7   :  { %v225_v34 = vrot.slane %v224_v46, 4 }
 0x2c8   :  { %v213_v50 = vrot.slane %v212_v11, 1 }
 0x2c9   :  { %v226_v35 = vadd.f32 %v225_v34, %v224_v46  ;;  %418 = vadd.xlane.f32.xlu1 %v417_v48 }
 0x2ca   :  { %v214_v8 = vadd.f32 %v213_v50, %v212_v11 }
 0x2cb   :  { %v227_v12 = vrot.slane %v226_v35, 2 }
 0x2cc   :  { %862 = vpush %v214_v8 }
 0x2cd   :  { %v228_v45 = vadd.f32 %v227_v12, %v226_v35 }
 0x2ce   :  { %v1427_v53 = vpop.xlane.xlu2 %372 }
 0x2cf   :  { %vm374_vm14 = vcmp.eq.f32.partialorder %v1323_v10, %v1427_v53  ;;  %v229_v59 = vrot.slane %v228_v45, 1  ;;  %v1441_v10 = vsel %vm113_vm1, %v741_v47, 2147483647  ;;  %v548_v47 = vand.u32 65535, %v1432_v33 }
 0x2d0   :  { %v375_v37 = vsel %vm374_vm14, %v370_v63, inf  ;;  %v759_v21 = vshra.s32 %v1441_v10, 16  ;;  %v758_v33 = vand.u32 65535, %v1441_v10 }
 0x2d1   :  { %792 = vadd.xlane.f32.xlu1 %v1343_v28  ;;  %376 = vmin.xlane.f32.xlu0 %v375_v37  ;;  %v230_v60 = vadd.f32 %v229_v59, %v228_v45  ;;  %v1448_v28 = vpop.xlane.xlu0 %357 }
 0x2d2   :  { %v1445_v20 = vcvt.s32.f32 %v759_v21  ;;  %vm359_vm0 = vcmp.eq.f32.partialorder %v1318_v40, %v1448_v28  ;;  %v743_v40 = vand.u32 65535, %v1385_v56  ;;  %v183_v56 = vcvt.f32.s32 %v1411_v14 }
 0x2d3   :  { %864 = vpush %v230_v60  ;;  %v360_v1 = vsel %vm359_vm0, %v355_v6, inf }
 0x2d4   :  { %v745_v5 = vcvt.s32.f32 %v743_v40  ;;  %v184_v25 = vshll.u32 %v183_v56, 16 }
 0x2d9   :  { %552 = vmin.xlane.f32.xlu1 %v1438_v52 }
 0x2e1   :  { %762 = vmin.xlane.f32.xlu1 %v1445_v20 }
 0x2e9   :  { %361 = vmin.xlane.f32.xlu1 %v360_v1 }
 0x2f3   :  { %v166_v15 = vpop.xlane.xlu0 %165 }
 0x2f4   :  { %v167_v51 = vcvt.f32.s32 %v166_v15  ;;  %v550_v15 = vcvt.s32.f32 %v548_v47 }
 0x2f6   :  { %v1454_v2 = vadd.s32 %v169_v57, %v167_v51 }
 0x2f8   :  { %v187_v10 = vsel %vm186_vm5, %v1454_v2, 0 }
 0x2fd   :  { %s863_s1 = spop %862 }
 0x304   :  { %s865_s8 = spop %864 }
 0x305   :  { %v232_v27 = vstv %s865_s8 }
 0x30a   :  { %v403_v22 = vpop.xlane.xlu0 %402 }
 0x30b   :  { %v404_v43 = vrot.slane %v403_v22, 4 }
 0x30d   :  { %v405_v29 = vadd.f32 %v404_v43, %v403_v22 }
 0x30f   :  { %v406_v16 = vrot.slane %v405_v29, 2 }
 0x311   :  { %v407_v41 = vadd.f32 %v406_v16, %v405_v29 }
 0x312   :  { %v598_v39 = vpop.xlane.xlu2 %597  ;;  %v614_v58 = vpop.xlane.xlu0 %613 }
 0x313   :  { %v408_v7 = vrot.slane %v407_v41, 1  ;;  %v599_v26 = vrot.slane %v598_v39, 4  ;;  %v615_v31 = vrot.slane %v614_v58, 4 }
 0x315   :  { %v409_v44 = vadd.f32 %v408_v7, %v407_v41  ;;  %v600_v24 = vadd.f32 %v599_v26, %v598_v39  ;;  %v616_v55 = vadd.f32 %v615_v31, %v614_v58  ;;  %v760_v41 = vcvt.s32.f32 %v758_v33 }
 0x316   :  { %v364_v58 = vcvt.f32.s32 %v1448_v28 }
 0x317   :  { %866 = vpush %v409_v44  ;;  %v601_v49 = vrot.slane %v600_v24, 2  ;;  %v617_v11 = vrot.slane %v616_v55, 2 }
 0x318   :  { %v365_v7 = vshll.u32 %v364_v58, 16 }
 0x319   :  { %v602_v50 = vadd.f32 %v601_v49, %v600_v24  ;;  %v618_v8 = vadd.f32 %v617_v11, %v616_v55 }
 0x31a   :  { %v809_v9 = vpop.xlane.xlu2 %808  ;;  %v1457_v18 = vpop.xlane.xlu0 %747 }
 0x31b   :  { %vm749_vm1 = vcmp.eq.f32.partialorder %v1399_v23, %v1457_v18  ;;  %v810_v46 = vrot.slane %v809_v9, 4  ;;  %v603_v4 = vrot.slane %v602_v50, 1  ;;  %v619_v59 = vrot.slane %v618_v8, 1 }
 0x31c   :  { %v750_v19 = vsel %vm749_vm1, %v745_v5, inf }
 0x31d   :  { %751 = vmin.xlane.f32.xlu1 %v750_v19  ;;  %v604_v36 = vadd.f32 %v603_v4, %v602_v50  ;;  %v620_v6 = vadd.f32 %v619_v59, %v618_v8 }
 0x322   :  { %v1462_v0 = vpop.xlane.xlu2 %567 }
 0x323   :  { %vm569_vm2 = vcmp.eq.f32.partialorder %v1407_v42, %v1462_v0  ;;  %v811_v42 = vadd.f32 %v810_v46, %v809_v9 }
 0x324   :  { %v570_v61 = vsel %vm569_vm2, %v565_v32, inf }
 0x325   :  { %571 = vmin.xlane.f32.xlu0 %v570_v61  ;;  %v812_v3 = vrot.slane %v811_v42, 2 }
 0x327   :  { %v813_v21 = vadd.f32 %v812_v3, %v811_v42 }
 0x329   :  { %v814_v57 = vrot.slane %v813_v21, 1 }
 0x32b   :  { %v815_v29 = vadd.f32 %v814_v57, %v813_v21 }
 0x334   :  { %v181_v30 = vpop.xlane.xlu1 %180 }
 0x335   :  { %v182_v54 = vcvt.f32.s32 %v181_v30 }
 0x337   :  { %v1467_v23 = vadd.s32 %v184_v25, %v182_v54 }
 0x33c   :  { %v419_v17 = vpop.xlane.xlu1 %418 }
 0x33d   :  { %v420_v34 = vrot.slane %v419_v17, 4 }
 0x33f   :  { %v421_v48 = vadd.f32 %v420_v34, %v419_v17  ;;  %v754_v17 = vcvt.f32.s32 %v1457_v18 }
 0x341   :  { %v422_v35 = vrot.slane %v421_v48, 2  ;;  %v755_v8 = vshll.u32 %v754_v17, 16 }
 0x343   :  { %v423_v14 = vadd.f32 %v422_v35, %v421_v48  ;;  %v379_v48 = vcvt.f32.s32 %v1427_v53 }
 0x344   :  { %v793_v12 = vpop.xlane.xlu1 %792  ;;  %v377_v55 = vpop.xlane.xlu0 %376 }
 0x345   :  { %v794_v45 = vrot.slane %v793_v12, 4  ;;  %v424_v63 = vrot.slane %v423_v14, 1  ;;  %v378_v3 = vcvt.f32.s32 %v377_v55  ;;  %v380_v18 = vshll.u32 %v379_v48, 16 }
 0x347   :  { %v795_v37 = vadd.f32 %v794_v45, %v793_v12  ;;  %v425_v60 = vadd.f32 %v424_v63, %v423_v14  ;;  %v574_v14 = vcvt.f32.s32 %v1462_v0  ;;  %v381_v0 = vadd.s32 %v380_v18, %v378_v3 }
 0x348   :  { %s867_s9 = spop %866 }
 0x349   :  { %v796_v62 = vrot.slane %v795_v37, 2  ;;  %868 = vpush %v425_v60  ;;  %v411_v5 = vstv %s867_s9  ;;  %v575_v59 = vshll.u32 %v574_v14, 16 }
 0x34a   :  { %870 = vpush %v604_v36 }
 0x34b   :  { %872 = vpush %v620_v6  ;;  %v797_v1 = vadd.f32 %v796_v62, %v795_v37  ;;  %v188_v62 = vsel %vm186_vm5, %v1467_v23, 0 }
 0x34c   :  { %v1470_v13 = vpop.xlane.xlu1 %552  ;;  %v384_v6 = vsel %vm382_vm6, %v381_v0, %v188_v62 }
 0x34d   :  { %vm554_vm3 = vcmp.eq.f32.partialorder %v1438_v52, %v1470_v13  ;;  %v798_v51 = vrot.slane %v797_v1, 1  ;;  %v559_v49 = vcvt.f32.s32 %v1470_v13 }
 0x34e   :  { %v555_v22 = vsel %vm554_vm3, %v550_v15, inf }
 0x34f   :  { %556 = vmin.xlane.f32.xlu2 %v555_v22  ;;  %v799_v43 = vadd.f32 %v798_v51, %v797_v1  ;;  %v560_v42 = vshll.u32 %v559_v49, 16 }
 0x351   :  { %874 = vpush %v799_v43 }
 0x352   :  { %876 = vpush %v815_v29 }
 0x354   :  { %v1475_v16 = vpop.xlane.xlu1 %762 }
 0x355   :  { %vm764_vm4 = vcmp.eq.f32.partialorder %v1445_v20, %v1475_v16  ;;  %v216_v20 = vstv %s863_s1  ;;  %v769_v63 = vcvt.f32.s32 %v1475_v16 }
 0x356   :  { %v765_v39 = vsel %vm764_vm4, %v760_v41, inf  ;;  %v217_v19 = vsub.f32 0.0, %v216_v20 }
 0x357   :  { %766 = vmin.xlane.f32.xlu2 %v765_v39  ;;  %v770_v47 = vshll.u32 %v769_v63, 16 }
 0x358   :  { %v412_v56 = vsub.f32 %v217_v19, %v411_v5 }
 0x35c   :  { %v362_v52 = vpop.xlane.xlu1 %361 }
 0x35d   :  { %v363_v44 = vcvt.f32.s32 %v362_v52 }
 0x35f   :  { %v366_v40 = vadd.s32 %v365_v7, %v363_v44 }
 0x361   :  { %v383_v9 = vsel %vm382_vm6, %v366_v40, %v187_v10 }
 0x37a   :  { %s869_s10 = spop %868 }
 0x37b   :  { %v427_v28 = vstv %s869_s10  ;;  %s871_s11 = spop %870 }
 0x37c   :  { %v428_v32 = vadd.f32 %v427_v28, %v232_v27  ;;  %v606_v61 = vstv %s871_s11  ;;  %s873_s2 = spop %872 }
 0x37d   :  { %v607_v2 = vsub.f32 %v412_v56, %v606_v61  ;;  %v622_v26 = vstv %s873_s2 }
 0x37e   :  { %v623_v30 = vadd.f32 %v622_v26, %v428_v32 }
 0x382   :  { %s875_s14 = spop %874 }
 0x383   :  { %v801_v25 = vstv %s875_s14  ;;  %s877_s18 = spop %876 }
 0x384   :  { %v802_v31 = vsub.f32 %v607_v2, %v801_v25  ;;  %v817_v54 = vstv %s877_s18 }
 0x385   :  { %v818_v24 = vadd.f32 %v817_v54, %v623_v30 }
 0x386   :  { %822 = vst.msk [vmem:[#allocation4 + $0x4] sm:$0x1] %vm200_vm8, %v802_v31 }
 0x387   :  { %823 = vst.msk [vmem:[#allocation4 + $0x5] sm:$0x1] %vm200_vm8, %v818_v24  ;;  %vm577_vm8 = vcmp.eq.s32.totalorder %v1222_v38, 2 }
 0x388   :  { %836 = dma.vmem_to_hbm [thread:$0]  %s832_s13, 128, %s834_s17, [#allocation5]  }
 0x390   :  { %v752_v46 = vpop.xlane.xlu1 %751 }
 0x391   :  { %v753_v11 = vcvt.f32.s32 %v752_v46 }
 0x393   :  { %v756_v4 = vadd.s32 %v755_v8, %v753_v11 }
 0x398   :  { %v572_v50 = vpop.xlane.xlu0 %571 }
 0x399   :  { %v573_v45 = vcvt.f32.s32 %v572_v50 }
 0x39b   :  { %v576_v60 = vadd.s32 %v575_v59, %v573_v45 }
 0x39d   :  { %v579_v13 = vsel %vm577_vm8, %v576_v60, %v384_v6 }
 0x3c2   :  { %v557_v34 = vpop.xlane.xlu2 %556 }
 0x3c3   :  { %v558_v35 = vcvt.f32.s32 %v557_v34 }
 0x3c5   :  { %v561_v12 = vadd.s32 %v560_v42, %v558_v35 }
 0x3c7   :  { %v578_v53 = vsel %vm577_vm8, %v561_v12, %v383_v9 }
 0x3c8   :  { %v773_v37 = vsel %vm772_vm7, %v756_v4, %v578_v53 }
 0x3c9   :  { %820 = vst.msk [vmem:[%s1526_s6] sm:$0xff] %vm819_vm9, %v773_v37 }
 0x3ca   :  { %v767_v36 = vpop.xlane.xlu2 %766 }
 0x3cb   :  { %v768_v21 = vcvt.f32.s32 %v767_v36 }
 0x3cd   :  { %v771_v1 = vadd.s32 %v770_v47, %v768_v21 }
 0x3cf   :  { %v774_v15 = vsel %vm772_vm7, %v771_v1, %v579_v13 }
 0x3d0   :  { %821 = vst.msk [vmem:[%s1526_s6 + $0x8] sm:$0xff] %vm819_vm9, %v774_v15 }
 0x3d1   :  { %957 = dma.done.wait [#allocation5], 128  }
 0x3d2   :  { %958 = vsyncadd [#allocation5], 4294967168 }
 0x3d3   :  { %843 = vsyncpa [#allocation5], 1 }

</bundles_post_ra>
